<compile_context>
chip_gen: v7x
topology: tpu7x:2x2x1
jax: 0.10.0
libtpu: 0.0.40
codegen_flags: <defaults>
</compile_context>

<pallas_src>
import math
import functools

import jax
import jax.numpy as jnp
from jax import lax
from jax.experimental import pallas as pl
from jax.experimental.pallas import tpu as pltpu

EPS = 1e-6
MASK_BIAS = -1e9   # large finite negative == -inf for softmax, without 0/0 NaN risk


def _tree_sum(xs):
    """Balanced-tree sum of a list of arrays (breaks serial accumulation chains)."""
    xs = list(xs)
    while len(xs) > 1:
        nxt = [xs[i] + xs[i + 1] for i in range(0, len(xs) - 1, 2)]
        if len(xs) % 2:
            nxt.append(xs[-1])
        xs = nxt
    return xs[0]


# ----------------------------------------------------------------------------
# Fused encoder-layer kernel.  grid = (B // Bblk,), one (Bblk, S, D) slab/step.
# ----------------------------------------------------------------------------
def encoder_layer_kernel(x_ref, mbias_ref,
                         ln1g_ref, ln1b_ref,
                         wqkv_ref, bqkv_ref,
                         wo_ref, bo_ref,
                         ln2g_ref, ln2b_ref,
                         w1_ref, b1_ref, w2_ref, b2_ref,
                         o_ref):
    bf16 = jnp.bfloat16
    Bblk, S, D = x_ref.shape
    H = wo_ref.shape[0]
    rows = Bblk * S

    # (Bblk, S, D) -> (rows, D): leading-axis merge, no relayout (S % 8 == 0).
    x = x_ref[...].reshape(rows, D)                          # f32

    # ---- LayerNorm 1 (f32, rsqrt on EUP) ----
    mu = jnp.mean(x, axis=-1, keepdims=True)
    var = jnp.mean(jnp.square(x - mu), axis=-1, keepdims=True)
    xn = (x - mu) * lax.rsqrt(var + EPS) * ln1g_ref[...] + ln1b_ref[...]
    xnb = xn.astype(bf16)

    # ---- multi-head attention ----
    # Per-head Q/K/V come straight out of (rows, D) @ (D, dk) matmuls via
    # leading-axis weight indexing — no lane-unaligned slicing of a fused qkv.
    # 1/sqrt(dk) is already folded into wqkv[0] / bqkv[0].
    contribs = [[] for _ in range(Bblk)]
    for h in range(H):                                       # static unroll (H small)
        q_h = (jnp.dot(xnb, wqkv_ref[0, h, :, :], preferred_element_type=jnp.float32)
               + bqkv_ref[0, h]).astype(bf16)                # (rows, dk)
        k_h = (jnp.dot(xnb, wqkv_ref[1, h, :, :], preferred_element_type=jnp.float32)
               + bqkv_ref[1, h]).astype(bf16)
        v_h = (jnp.dot(xnb, wqkv_ref[2, h, :, :], preferred_element_type=jnp.float32)
               + bqkv_ref[2, h]).astype(bf16)
        for b in range(Bblk):                                # attention is per-batch
            r0 = b * S
            q = q_h[r0:r0 + S]                               # sublane slices (cheap)
            k = k_h[r0:r0 + S]
            v = v_h[r0:r0 + S]
            # q @ k.T without explicit transpose: contract both last dims.
            s = lax.dot_general(q, k, (((1,), (1,)), ((), ())),
                                preferred_element_type=jnp.float32)   # (S, S) f32
            s = s + mbias_ref[b]                             # masked keys -> -1e9
            m = jnp.max(s, axis=-1, keepdims=True)
            e = jnp.exp(s - m)
            # Deferred normalization: scale the (S, dk) result, not the (S, S) probs.
            o_un = jnp.dot(e.astype(bf16), v, preferred_element_type=jnp.float32)
            o_h = o_un * pl.reciprocal(jnp.sum(e, axis=-1, keepdims=True), approx=True)
            # Fold this head straight into the output projection:
            #   attn_concat @ Wo == sum_h o_h @ Wo[h*dk:(h+1)*dk, :]
            contribs[b].append(jnp.dot(o_h.astype(bf16), wo_ref[h],
                                       preferred_element_type=jnp.float32))  # (S, D)

    attn = jnp.concatenate([_tree_sum(c) for c in contribs], axis=0)  # (rows, D)
    x1 = x + bo_ref[...] + attn                              # residual + out-proj bias

    # ---- LayerNorm 2 + position-wise FFN (D -> 4D -> D) + residual ----
    mu2 = jnp.mean(x1, axis=-1, keepdims=True)
    var2 = jnp.mean(jnp.square(x1 - mu2), axis=-1, keepdims=True)
    xn2 = (x1 - mu2) * lax.rsqrt(var2 + EPS) * ln2g_ref[...] + ln2b_ref[...]
    hdn = jnp.dot(xn2.astype(bf16), w1_ref[...],
                  preferred_element_type=jnp.float32) + b1_ref[...]
    hdn = jnp.maximum(hdn, 0.0)                              # ReLU (f32, VPU)
    y = jnp.dot(hdn.astype(bf16), w2_ref[...],
                preferred_element_type=jnp.float32) + b2_ref[...]

    o_ref[...] = (x1 + y).reshape(Bblk, S, D).astype(o_ref.dtype)


# ----------------------------------------------------------------------------
# Parameter preparation (done ONCE, outside the per-call path)
# ----------------------------------------------------------------------------
def prepare_params(params, *, num_heads):
    """Reshape/cast weights for the kernel: per-head Q/K/V layout, bf16 matmul
    operands, 1/sqrt(dk) folded into the Q projection."""
    D = params['wq'].shape[0]
    H = num_heads
    dk = D // H
    f32, bf16 = jnp.float32, jnp.bfloat16
    scale = 1.0 / math.sqrt(dk)

    ph_w = lambda w: w.reshape(D, H, dk).transpose(1, 0, 2)   # (H, D, dk)
    ph_b = lambda b: b.reshape(H, 1, dk)                      # (H, 1, dk)

    wqkv = jnp.stack([ph_w(params['wq'] * scale),
                      ph_w(params['wk']),
                      ph_w(params['wv'])], axis=0).astype(bf16)   # (3, H, D, dk)
    bqkv = jnp.stack([ph_b(params['bq'] * scale),
                      ph_b(params['bk']),
                      ph_b(params['bv'])], axis=0).astype(f32)    # (3, H, 1, dk)

    return {
        'ln1_g': params['ln1_g'].astype(f32), 'ln1_b': params['ln1_b'].astype(f32),
        'wqkv': wqkv, 'bqkv': bqkv,
        'wo': params['wo'].reshape(H, dk, D).astype(bf16),        # (H, dk, D)
        'bo': params['bo'].astype(f32),
        'ln2_g': params['ln2_g'].astype(f32), 'ln2_b': params['ln2_b'].astype(f32),
        'w1': params['w1'].astype(bf16), 'b1': params['b1'].astype(f32),
        'w2': params['w2'].astype(bf16), 'b2': params['b2'].astype(f32),
    }


def _pick_block_b(B, S, target_rows=256):
    """Largest divisor of B with block_b*S <= target_rows, while keeping the
    grid >= 2 steps when B >= 2 (v7x: 2 TensorCores per chip)."""
    best = 1
    for cand in range(1, B + 1):
        if B % cand:
            continue
        if cand * S > target_rows:
            continue
        if B >= 2 and B // cand < 2:
            continue
        best = cand
    return best


# ----------------------------------------------------------------------------
# Wrapper
# ----------------------------------------------------------------------------
@functools.partial(jax.jit, static_argnames=("num_heads", "block_b"))
def encoder_layer(x, mask_bool, prep, *, num_heads, block_b=None):
    B, S, D = x.shape
    H = num_heads
    dk = D // H
    D4 = prep['w1'].shape[1]
    assert D % H == 0 and S % 8 == 0
    if block_b is None:
        block_b = _pick_block_b(B, S)
    assert B % block_b == 0
    nblk = B // block_b

    # Additive attention-mask bias (True => masked key).
    mbias = jnp.where(mask_bool.reshape(B, 1, S), MASK_BIAS, 0.0).astype(jnp.float32)

    const = lambda shape: pl.BlockSpec(shape, lambda i, _s=shape: (0,) * len(_s))

    out = pl.pallas_call(
        encoder_layer_kernel,
        out_shape=jax.ShapeDtypeStruct((B, S, D), jnp.float32),
        grid=(nblk,),
        in_specs=[
            pl.BlockSpec((block_b, S, D), lambda i: (i, 0, 0)),   # x
            pl.BlockSpec((block_b, 1, S), lambda i: (i, 0, 0)),   # mask bias
            const((1, D)), const((1, D)),                         # ln1 gamma, beta
            const((3, H, D, dk)), const((3, H, 1, dk)),           # Wqkv, bqkv (per head)
            const((H, dk, D)), const((1, D)),                     # Wo (per head), bo
            const((1, D)), const((1, D)),                         # ln2 gamma, beta
            const((D, D4)), const((1, D4)),                       # W1, b1
            const((D4, D)), const((1, D)),                        # W2, b2
        ],
        out_specs=pl.BlockSpec((block_b, S, D), lambda i: (i, 0, 0)),
        compiler_params=pltpu.CompilerParams(
            dimension_semantics=("parallel",),
            vmem_limit_bytes=32 * 1024 * 1024),
    )(x, mbias,
      prep['ln1_g'], prep['ln1_b'],
      prep['wqkv'], prep['bqkv'],
      prep['wo'], prep['bo'],
      prep['ln2_g'], prep['ln2_b'],
      prep['w1'], prep['b1'], prep['w2'], prep['b2'])
    return out


# ----------------------------------------------------------------------------
# Pure-JAX reference (f32, PyTorch semantics) for correctness check
# ----------------------------------------------------------------------------
def ref_encoder_layer(x, mask_bool, params, *, num_heads):
    B, S, D = x.shape
    H = num_heads
    dk = D // H

    def ln(t, g, b):
        mu = t.mean(-1, keepdims=True)
        var = ((t - mu) ** 2).mean(-1, keepdims=True)
        return (t - mu) / jnp.sqrt(var + EPS) * g + b

    xn = ln(x, params['ln1_g'], params['ln1_b'])
    q = xn @ params['wq'] + params['bq']
    k = xn @ params['wk'] + params['bk']
    v = xn @ params['wv'] + params['bv']
    split = lambda t: t.reshape(B, S, H, dk).transpose(0, 2, 1, 3)
    qh, kh, vh = split(q), split(k), split(v)
    scores = qh @ kh.transpose(0, 1, 3, 2) / math.sqrt(dk)
    scores = jnp.where(mask_bool, float('-inf'), scores)     # (B,1,1,S) broadcast
    w = jax.nn.softmax(scores, axis=-1)
    af = (w @ vh).transpose(0, 2, 1, 3).reshape(B, S, D)
    x1 = x + (af @ params['wo'] + params['bo'])
    xn2 = ln(x1, params['ln2_g'], params['ln2_b'])
    h = jax.nn.relu(xn2 @ params['w1'] + params['b1'])
    return x1 + (h @ params['w2'] + params['b2'])


# ----------------------------------------------------------------------------
# Deterministic parameter init + demo run
# ----------------------------------------------------------------------------
def init_params(key, d_model):
    D, D4 = d_model, 4 * d_model
    ks = jax.random.split(key, 6)
    xav = lambda k, shp: (jax.random.uniform(k, shp, jnp.float32, -1.0, 1.0)
                          * math.sqrt(6.0 / (shp[0] + shp[1])))
    zrand = lambda k, shp: 0.02 * jax.random.normal(k, shp, jnp.float32)
    return {
        'ln1_g': jnp.ones((1, D), jnp.float32),
        'ln1_b': jnp.zeros((1, D), jnp.float32),
        'wq': xav(ks[0], (D, D)), 'bq': zrand(ks[0], (1, D)),
        'wk': xav(ks[1], (D, D)), 'bk': zrand(ks[1], (1, D)),
        'wv': xav(ks[2], (D, D)), 'bv': zrand(ks[2], (1, D)),
        'wo': xav(ks[3], (D, D)), 'bo': zrand(ks[3], (1, D)),
        'ln2_g': jnp.ones((1, D), jnp.float32),
        'ln2_b': jnp.zeros((1, D), jnp.float32),
        'w1': xav(ks[4], (D, D4)), 'b1': jnp.zeros((1, D4), jnp.float32),
        'w2': xav(ks[5], (D4, D)), 'b2': jnp.zeros((1, D), jnp.float32),
    }


if __name__ == "__main__":
    # Small but lane-dense shapes: D = 128 (one full lane width), dk = 32.
    # B=4 so the auto row-blocking picks block_b=2 (32 rows/step) with a
    # 2-step parallel grid (both v7x TensorCores get work).
    B, S, D, H = 4, 16, 128, 4

    key = jax.random.PRNGKey(0)
    kx, kp = jax.random.split(key)
    x = jax.random.normal(kx, (B, S, D), jnp.float32)

    # key-padding mask: True = masked.
    lengths = jnp.array([S, S - 3, S, S - 7])
    mask_bool = (jnp.arange(S)[None, :] >= lengths[:, None]).reshape(B, 1, 1, S)

    params = init_params(kp, D)
    prep = prepare_params(params, num_heads=H)        # one-time weight prep

    out = jax.block_until_ready(encoder_layer(x, mask_bool, prep, num_heads=H))

    ref = ref_encoder_layer(x, mask_bool, params, num_heads=H)
    assert out.shape == (B, S, D)
    # Kernel matmuls use bf16 operands (f32 accumulate) per perf guidance, so
    # compare against the f32 reference with a bf16-sized tolerance.
    max_err = float(jnp.max(jnp.abs(out - ref)))
    assert jnp.allclose(out, ref, atol=5e-2, rtol=5e-2), \
        f"mismatch vs reference, max abs err={max_err}"

    print("KERNEL_OK")
</pallas_src>

<mosaic_0001>
module attributes {stable_mosaic.version = 11 : i64} {
  func.func @encoder_layer_kernel(%arg0: i32, %arg1: memref<2x16x128xf32, #tpu.memory_space<vmem>>, %arg2: memref<2x1x16xf32, #tpu.memory_space<vmem>>, %arg3: memref<1x128xf32, #tpu.memory_space<vmem>>, %arg4: memref<1x128xf32, #tpu.memory_space<vmem>>, %arg5: memref<3x4x128x32xbf16, #tpu.memory_space<vmem>>, %arg6: memref<3x4x1x32xf32, #tpu.memory_space<vmem>>, %arg7: memref<4x32x128xbf16, #tpu.memory_space<vmem>>, %arg8: memref<1x128xf32, #tpu.memory_space<vmem>>, %arg9: memref<1x128xf32, #tpu.memory_space<vmem>>, %arg10: memref<1x128xf32, #tpu.memory_space<vmem>>, %arg11: memref<128x512xbf16, #tpu.memory_space<vmem>>, %arg12: memref<1x512xf32, #tpu.memory_space<vmem>>, %arg13: memref<512x128xbf16, #tpu.memory_space<vmem>>, %arg14: memref<1x128xf32, #tpu.memory_space<vmem>>, %arg15: memref<2x16x128xf32, #tpu.memory_space<vmem>>) attributes {dimension_semantics = [#tpu.dimension_semantics<parallel>], iteration_bounds = array<i64: 2>, scalar_prefetch = 0 : i64, scratch_operands = 0 : i64, tpu.core_type = #tpu.core_type<tc>, window_params = [{transform_indices = @transform_0, window_bounds = array<i64: 2, 16, 128>}, {transform_indices = @transform_1, window_bounds = array<i64: 2, 1, 16>}, {pipeline_mode = #tpu.pipeline_mode<synchronous>, transform_indices = @transform_2, window_bounds = array<i64: 1, 128>}, {pipeline_mode = #tpu.pipeline_mode<synchronous>, transform_indices = @transform_3, window_bounds = array<i64: 1, 128>}, {pipeline_mode = #tpu.pipeline_mode<synchronous>, transform_indices = @transform_4, window_bounds = array<i64: 3, 4, 128, 32>}, {pipeline_mode = #tpu.pipeline_mode<synchronous>, transform_indices = @transform_5, window_bounds = array<i64: 3, 4, 1, 32>}, {pipeline_mode = #tpu.pipeline_mode<synchronous>, transform_indices = @transform_6, window_bounds = array<i64: 4, 32, 128>}, {pipeline_mode = #tpu.pipeline_mode<synchronous>, transform_indices = @transform_7, window_bounds = array<i64: 1, 128>}, {pipeline_mode = #tpu.pipeline_mode<synchronous>, transform_indices = @transform_8, window_bounds = array<i64: 1, 128>}, {pipeline_mode = #tpu.pipeline_mode<synchronous>, transform_indices = @transform_9, window_bounds = array<i64: 1, 128>}, {pipeline_mode = #tpu.pipeline_mode<synchronous>, transform_indices = @transform_10, window_bounds = array<i64: 128, 512>}, {pipeline_mode = #tpu.pipeline_mode<synchronous>, transform_indices = @transform_11, window_bounds = array<i64: 1, 512>}, {pipeline_mode = #tpu.pipeline_mode<synchronous>, transform_indices = @transform_12, window_bounds = array<i64: 512, 128>}, {pipeline_mode = #tpu.pipeline_mode<synchronous>, transform_indices = @transform_13, window_bounds = array<i64: 1, 128>}, {transform_indices = @transform_14, window_bounds = array<i64: 2, 16, 128>}]} {
    %c0 = arith.constant 0 : index
    %c0_0 = arith.constant 0 : index
    %c0_1 = arith.constant 0 : index
    %0 = vector.load %arg1[%c0, %c0_0, %c0_1] : memref<2x16x128xf32, #tpu.memory_space<vmem>>, vector<2x16x128xf32>
    %1 = vector.shape_cast %0 : vector<2x16x128xf32> to vector<32x128xf32>
    %cst = arith.constant dense<0.000000e+00> : vector<32xf32>
    %2 = vector.multi_reduction <add>, %1, %cst [1] : vector<32x128xf32> to vector<32xf32>
    %3 = vector.shape_cast %2 : vector<32xf32> to vector<32x1xf32>
    %cst_2 = arith.constant 1.280000e+02 : f32
    %4 = vector.broadcast %cst_2 : f32 to vector<32x1xf32>
    %5 = arith.divf %3, %4 : vector<32x1xf32>
    %6 = vector.broadcast %5 : vector<32x1xf32> to vector<32x128xf32>
    %7 = arith.subf %1, %6 : vector<32x128xf32>
    %8 = arith.mulf %7, %7 : vector<32x128xf32>
    %cst_3 = arith.constant dense<0.000000e+00> : vector<32xf32>
    %9 = vector.multi_reduction <add>, %8, %cst_3 [1] : vector<32x128xf32> to vector<32xf32>
    %10 = vector.shape_cast %9 : vector<32xf32> to vector<32x1xf32>
    %cst_4 = arith.constant 1.280000e+02 : f32
    %11 = vector.broadcast %cst_4 : f32 to vector<32x1xf32>
    %12 = arith.divf %10, %11 : vector<32x1xf32>
    %13 = vector.broadcast %5 : vector<32x1xf32> to vector<32x128xf32>
    %14 = arith.subf %1, %13 : vector<32x128xf32>
    %cst_5 = arith.constant 9.99999997E-7 : f32
    %15 = vector.broadcast %cst_5 : f32 to vector<32x1xf32>
    %16 = arith.addf %12, %15 : vector<32x1xf32>
    %17 = math.rsqrt %16 : vector<32x1xf32>
    %18 = vector.broadcast %17 : vector<32x1xf32> to vector<32x128xf32>
    %19 = arith.mulf %14, %18 : vector<32x128xf32>
    %c0_6 = arith.constant 0 : index
    %c0_7 = arith.constant 0 : index
    %20 = vector.load %arg3[%c0_6, %c0_7] : memref<1x128xf32, #tpu.memory_space<vmem>>, vector<1x128xf32>
    %21 = vector.broadcast %20 : vector<1x128xf32> to vector<32x128xf32>
    %22 = arith.mulf %19, %21 : vector<32x128xf32>
    %c0_8 = arith.constant 0 : index
    %c0_9 = arith.constant 0 : index
    %23 = vector.load %arg4[%c0_8, %c0_9] : memref<1x128xf32, #tpu.memory_space<vmem>>, vector<1x128xf32>
    %24 = vector.broadcast %23 : vector<1x128xf32> to vector<32x128xf32>
    %25 = arith.addf %22, %24 : vector<32x128xf32>
    %26 = arith.truncf %25 : vector<32x128xf32> to vector<32x128xbf16>
    %c0_10 = arith.constant 0 : index
    %c0_11 = arith.constant 0 : index
    %c0_12 = arith.constant 0 : index
    %c0_13 = arith.constant 0 : index
    %27 = vector.load %arg5[%c0_10, %c0_11, %c0_12, %c0_13] : memref<3x4x128x32xbf16, #tpu.memory_space<vmem>>, vector<1x1x128x32xbf16>
    %28 = vector.shape_cast %27 : vector<1x1x128x32xbf16> to vector<128x32xbf16>
    %cst_14 = arith.constant dense<0.000000e+00> : vector<32x32xf32>
    %29 = tpu.matmul %26, %28, %cst_14 {dimension_numbers = #tpu.dot_dimension_numbers<[1], [0], [0], [1], [0, 0, 1, 1], [], []>} : vector<32x128xbf16>, vector<128x32xbf16>, vector<32x32xf32> -> vector<32x32xf32>
    %c0_15 = arith.constant 0 : index
    %c0_16 = arith.constant 0 : index
    %c0_17 = arith.constant 0 : index
    %c0_18 = arith.constant 0 : index
    %30 = vector.load %arg6[%c0_15, %c0_16, %c0_17, %c0_18] : memref<3x4x1x32xf32, #tpu.memory_space<vmem>>, vector<1x1x1x32xf32>
    %31 = vector.shape_cast %30 : vector<1x1x1x32xf32> to vector<1x32xf32>
    %32 = vector.broadcast %31 : vector<1x32xf32> to vector<32x32xf32>
    %33 = arith.addf %29, %32 : vector<32x32xf32>
    %34 = arith.truncf %33 : vector<32x32xf32> to vector<32x32xbf16>
    %c1 = arith.constant 1 : index
    %c0_19 = arith.constant 0 : index
    %c0_20 = arith.constant 0 : index
    %c0_21 = arith.constant 0 : index
    %35 = vector.load %arg5[%c1, %c0_19, %c0_20, %c0_21] : memref<3x4x128x32xbf16, #tpu.memory_space<vmem>>, vector<1x1x128x32xbf16>
    %36 = vector.shape_cast %35 : vector<1x1x128x32xbf16> to vector<128x32xbf16>
    %cst_22 = arith.constant dense<0.000000e+00> : vector<32x32xf32>
    %37 = tpu.matmul %26, %36, %cst_22 {dimension_numbers = #tpu.dot_dimension_numbers<[1], [0], [0], [1], [0, 0, 1, 1], [], []>} : vector<32x128xbf16>, vector<128x32xbf16>, vector<32x32xf32> -> vector<32x32xf32>
    %c1_23 = arith.constant 1 : index
    %c0_24 = arith.constant 0 : index
    %c0_25 = arith.constant 0 : index
    %c0_26 = arith.constant 0 : index
    %38 = vector.load %arg6[%c1_23, %c0_24, %c0_25, %c0_26] : memref<3x4x1x32xf32, #tpu.memory_space<vmem>>, vector<1x1x1x32xf32>
    %39 = vector.shape_cast %38 : vector<1x1x1x32xf32> to vector<1x32xf32>
    %40 = vector.broadcast %39 : vector<1x32xf32> to vector<32x32xf32>
    %41 = arith.addf %37, %40 : vector<32x32xf32>
    %42 = arith.truncf %41 : vector<32x32xf32> to vector<32x32xbf16>
    %c2 = arith.constant 2 : index
    %c0_27 = arith.constant 0 : index
    %c0_28 = arith.constant 0 : index
    %c0_29 = arith.constant 0 : index
    %43 = vector.load %arg5[%c2, %c0_27, %c0_28, %c0_29] : memref<3x4x128x32xbf16, #tpu.memory_space<vmem>>, vector<1x1x128x32xbf16>
    %44 = vector.shape_cast %43 : vector<1x1x128x32xbf16> to vector<128x32xbf16>
    %cst_30 = arith.constant dense<0.000000e+00> : vector<32x32xf32>
    %45 = tpu.matmul %26, %44, %cst_30 {dimension_numbers = #tpu.dot_dimension_numbers<[1], [0], [0], [1], [0, 0, 1, 1], [], []>} : vector<32x128xbf16>, vector<128x32xbf16>, vector<32x32xf32> -> vector<32x32xf32>
    %c2_31 = arith.constant 2 : index
    %c0_32 = arith.constant 0 : index
    %c0_33 = arith.constant 0 : index
    %c0_34 = arith.constant 0 : index
    %46 = vector.load %arg6[%c2_31, %c0_32, %c0_33, %c0_34] : memref<3x4x1x32xf32, #tpu.memory_space<vmem>>, vector<1x1x1x32xf32>
    %47 = vector.shape_cast %46 : vector<1x1x1x32xf32> to vector<1x32xf32>
    %48 = vector.broadcast %47 : vector<1x32xf32> to vector<32x32xf32>
    %49 = arith.addf %45, %48 : vector<32x32xf32>
    %50 = arith.truncf %49 : vector<32x32xf32> to vector<32x32xbf16>
    %51 = vector.extract_strided_slice %34 {offsets = [0, 0], sizes = [16, 32], strides = [1, 1]} : vector<32x32xbf16> to vector<16x32xbf16>
    %52 = vector.extract_strided_slice %42 {offsets = [0, 0], sizes = [16, 32], strides = [1, 1]} : vector<32x32xbf16> to vector<16x32xbf16>
    %53 = vector.extract_strided_slice %50 {offsets = [0, 0], sizes = [16, 32], strides = [1, 1]} : vector<32x32xbf16> to vector<16x32xbf16>
    %cst_35 = arith.constant dense<0.000000e+00> : vector<16x16xf32>
    %54 = tpu.matmul %51, %52, %cst_35 {dimension_numbers = #tpu.dot_dimension_numbers<[1], [1], [0], [0], [0, 0, 1, 0], [], []>} : vector<16x32xbf16>, vector<16x32xbf16>, vector<16x16xf32> -> vector<16x16xf32>
    %c0_36 = arith.constant 0 : index
    %c0_37 = arith.constant 0 : index
    %c0_38 = arith.constant 0 : index
    %55 = vector.load %arg2[%c0_36, %c0_37, %c0_38] : memref<2x1x16xf32, #tpu.memory_space<vmem>>, vector<1x1x16xf32>
    %56 = vector.shape_cast %55 : vector<1x1x16xf32> to vector<1x16xf32>
    %57 = vector.broadcast %56 : vector<1x16xf32> to vector<16x16xf32>
    %58 = arith.addf %54, %57 : vector<16x16xf32>
    %cst_39 = arith.constant dense<0xFF800000> : vector<16xf32>
    %59 = vector.multi_reduction <maximumf>, %58, %cst_39 [1] : vector<16x16xf32> to vector<16xf32>
    %60 = vector.shape_cast %59 : vector<16xf32> to vector<16x1xf32>
    %61 = vector.broadcast %60 : vector<16x1xf32> to vector<16x16xf32>
    %62 = arith.subf %58, %61 : vector<16x16xf32>
    %63 = math.exp %62 : vector<16x16xf32>
    %64 = arith.truncf %63 : vector<16x16xf32> to vector<16x16xbf16>
    %cst_40 = arith.constant dense<0.000000e+00> : vector<16x32xf32>
    %65 = tpu.matmul %64, %53, %cst_40 {dimension_numbers = #tpu.dot_dimension_numbers<[1], [0], [0], [1], [0, 0, 1, 1], [], []>} : vector<16x16xbf16>, vector<16x32xbf16>, vector<16x32xf32> -> vector<16x32xf32>
    %cst_41 = arith.constant dense<0.000000e+00> : vector<16xf32>
    %66 = vector.multi_reduction <add>, %63, %cst_41 [1] : vector<16x16xf32> to vector<16xf32>
    %67 = vector.shape_cast %66 : vector<16xf32> to vector<16x1xf32>
    %68 = tpu.reciprocal %67 {approx = true} : vector<16x1xf32> -> vector<16x1xf32>
    %69 = vector.broadcast %68 : vector<16x1xf32> to vector<16x32xf32>
    %70 = arith.mulf %65, %69 : vector<16x32xf32>
    %71 = arith.truncf %70 : vector<16x32xf32> to vector<16x32xbf16>
    %c0_42 = arith.constant 0 : index
    %c0_43 = arith.constant 0 : index
    %c0_44 = arith.constant 0 : index
    %72 = vector.load %arg7[%c0_42, %c0_43, %c0_44] : memref<4x32x128xbf16, #tpu.memory_space<vmem>>, vector<1x32x128xbf16>
    %73 = vector.shape_cast %72 : vector<1x32x128xbf16> to vector<32x128xbf16>
    %cst_45 = arith.constant dense<0.000000e+00> : vector<16x128xf32>
    %74 = tpu.matmul %71, %73, %cst_45 {dimension_numbers = #tpu.dot_dimension_numbers<[1], [0], [0], [1], [0, 0, 1, 1], [], []>} : vector<16x32xbf16>, vector<32x128xbf16>, vector<16x128xf32> -> vector<16x128xf32>
    %75 = vector.extract_strided_slice %34 {offsets = [16, 0], sizes = [16, 32], strides = [1, 1]} : vector<32x32xbf16> to vector<16x32xbf16>
    %76 = vector.extract_strided_slice %42 {offsets = [16, 0], sizes = [16, 32], strides = [1, 1]} : vector<32x32xbf16> to vector<16x32xbf16>
    %77 = vector.extract_strided_slice %50 {offsets = [16, 0], sizes = [16, 32], strides = [1, 1]} : vector<32x32xbf16> to vector<16x32xbf16>
    %cst_46 = arith.constant dense<0.000000e+00> : vector<16x16xf32>
    %78 = tpu.matmul %75, %76, %cst_46 {dimension_numbers = #tpu.dot_dimension_numbers<[1], [1], [0], [0], [0, 0, 1, 0], [], []>} : vector<16x32xbf16>, vector<16x32xbf16>, vector<16x16xf32> -> vector<16x16xf32>
    %c1_47 = arith.constant 1 : index
    %c0_48 = arith.constant 0 : index
    %c0_49 = arith.constant 0 : index
    %79 = vector.load %arg2[%c1_47, %c0_48, %c0_49] : memref<2x1x16xf32, #tpu.memory_space<vmem>>, vector<1x1x16xf32>
    %80 = vector.shape_cast %79 : vector<1x1x16xf32> to vector<1x16xf32>
    %81 = vector.broadcast %80 : vector<1x16xf32> to vector<16x16xf32>
    %82 = arith.addf %78, %81 : vector<16x16xf32>
    %cst_50 = arith.constant dense<0xFF800000> : vector<16xf32>
    %83 = vector.multi_reduction <maximumf>, %82, %cst_50 [1] : vector<16x16xf32> to vector<16xf32>
    %84 = vector.shape_cast %83 : vector<16xf32> to vector<16x1xf32>
    %85 = vector.broadcast %84 : vector<16x1xf32> to vector<16x16xf32>
    %86 = arith.subf %82, %85 : vector<16x16xf32>
    %87 = math.exp %86 : vector<16x16xf32>
    %88 = arith.truncf %87 : vector<16x16xf32> to vector<16x16xbf16>
    %cst_51 = arith.constant dense<0.000000e+00> : vector<16x32xf32>
    %89 = tpu.matmul %88, %77, %cst_51 {dimension_numbers = #tpu.dot_dimension_numbers<[1], [0], [0], [1], [0, 0, 1, 1], [], []>} : vector<16x16xbf16>, vector<16x32xbf16>, vector<16x32xf32> -> vector<16x32xf32>
    %cst_52 = arith.constant dense<0.000000e+00> : vector<16xf32>
    %90 = vector.multi_reduction <add>, %87, %cst_52 [1] : vector<16x16xf32> to vector<16xf32>
    %91 = vector.shape_cast %90 : vector<16xf32> to vector<16x1xf32>
    %92 = tpu.reciprocal %91 {approx = true} : vector<16x1xf32> -> vector<16x1xf32>
    %93 = vector.broadcast %92 : vector<16x1xf32> to vector<16x32xf32>
    %94 = arith.mulf %89, %93 : vector<16x32xf32>
    %95 = arith.truncf %94 : vector<16x32xf32> to vector<16x32xbf16>
    %c0_53 = arith.constant 0 : index
    %c0_54 = arith.constant 0 : index
    %c0_55 = arith.constant 0 : index
    %96 = vector.load %arg7[%c0_53, %c0_54, %c0_55] : memref<4x32x128xbf16, #tpu.memory_space<vmem>>, vector<1x32x128xbf16>
    %97 = vector.shape_cast %96 : vector<1x32x128xbf16> to vector<32x128xbf16>
    %cst_56 = arith.constant dense<0.000000e+00> : vector<16x128xf32>
    %98 = tpu.matmul %95, %97, %cst_56 {dimension_numbers = #tpu.dot_dimension_numbers<[1], [0], [0], [1], [0, 0, 1, 1], [], []>} : vector<16x32xbf16>, vector<32x128xbf16>, vector<16x128xf32> -> vector<16x128xf32>
    %c0_57 = arith.constant 0 : index
    %c1_58 = arith.constant 1 : index
    %c0_59 = arith.constant 0 : index
    %c0_60 = arith.constant 0 : index
    %99 = vector.load %arg5[%c0_57, %c1_58, %c0_59, %c0_60] : memref<3x4x128x32xbf16, #tpu.memory_space<vmem>>, vector<1x1x128x32xbf16>
    %100 = vector.shape_cast %99 : vector<1x1x128x32xbf16> to vector<128x32xbf16>
    %cst_61 = arith.constant dense<0.000000e+00> : vector<32x32xf32>
    %101 = tpu.matmul %26, %100, %cst_61 {dimension_numbers = #tpu.dot_dimension_numbers<[1], [0], [0], [1], [0, 0, 1, 1], [], []>} : vector<32x128xbf16>, vector<128x32xbf16>, vector<32x32xf32> -> vector<32x32xf32>
    %c0_62 = arith.constant 0 : index
    %c1_63 = arith.constant 1 : index
    %c0_64 = arith.constant 0 : index
    %c0_65 = arith.constant 0 : index
    %102 = vector.load %arg6[%c0_62, %c1_63, %c0_64, %c0_65] : memref<3x4x1x32xf32, #tpu.memory_space<vmem>>, vector<1x1x1x32xf32>
    %103 = vector.shape_cast %102 : vector<1x1x1x32xf32> to vector<1x32xf32>
    %104 = vector.broadcast %103 : vector<1x32xf32> to vector<32x32xf32>
    %105 = arith.addf %101, %104 : vector<32x32xf32>
    %106 = arith.truncf %105 : vector<32x32xf32> to vector<32x32xbf16>
    %c1_66 = arith.constant 1 : index
    %c1_67 = arith.constant 1 : index
    %c0_68 = arith.constant 0 : index
    %c0_69 = arith.constant 0 : index
    %107 = vector.load %arg5[%c1_66, %c1_67, %c0_68, %c0_69] : memref<3x4x128x32xbf16, #tpu.memory_space<vmem>>, vector<1x1x128x32xbf16>
    %108 = vector.shape_cast %107 : vector<1x1x128x32xbf16> to vector<128x32xbf16>
    %cst_70 = arith.constant dense<0.000000e+00> : vector<32x32xf32>
    %109 = tpu.matmul %26, %108, %cst_70 {dimension_numbers = #tpu.dot_dimension_numbers<[1], [0], [0], [1], [0, 0, 1, 1], [], []>} : vector<32x128xbf16>, vector<128x32xbf16>, vector<32x32xf32> -> vector<32x32xf32>
    %c1_71 = arith.constant 1 : index
    %c1_72 = arith.constant 1 : index
    %c0_73 = arith.constant 0 : index
    %c0_74 = arith.constant 0 : index
    %110 = vector.load %arg6[%c1_71, %c1_72, %c0_73, %c0_74] : memref<3x4x1x32xf32, #tpu.memory_space<vmem>>, vector<1x1x1x32xf32>
    %111 = vector.shape_cast %110 : vector<1x1x1x32xf32> to vector<1x32xf32>
    %112 = vector.broadcast %111 : vector<1x32xf32> to vector<32x32xf32>
    %113 = arith.addf %109, %112 : vector<32x32xf32>
    %114 = arith.truncf %113 : vector<32x32xf32> to vector<32x32xbf16>
    %c2_75 = arith.constant 2 : index
    %c1_76 = arith.constant 1 : index
    %c0_77 = arith.constant 0 : index
    %c0_78 = arith.constant 0 : index
    %115 = vector.load %arg5[%c2_75, %c1_76, %c0_77, %c0_78] : memref<3x4x128x32xbf16, #tpu.memory_space<vmem>>, vector<1x1x128x32xbf16>
    %116 = vector.shape_cast %115 : vector<1x1x128x32xbf16> to vector<128x32xbf16>
    %cst_79 = arith.constant dense<0.000000e+00> : vector<32x32xf32>
    %117 = tpu.matmul %26, %116, %cst_79 {dimension_numbers = #tpu.dot_dimension_numbers<[1], [0], [0], [1], [0, 0, 1, 1], [], []>} : vector<32x128xbf16>, vector<128x32xbf16>, vector<32x32xf32> -> vector<32x32xf32>
    %c2_80 = arith.constant 2 : index
    %c1_81 = arith.constant 1 : index
    %c0_82 = arith.constant 0 : index
    %c0_83 = arith.constant 0 : index
    %118 = vector.load %arg6[%c2_80, %c1_81, %c0_82, %c0_83] : memref<3x4x1x32xf32, #tpu.memory_space<vmem>>, vector<1x1x1x32xf32>
    %119 = vector.shape_cast %118 : vector<1x1x1x32xf32> to vector<1x32xf32>
    %120 = vector.broadcast %119 : vector<1x32xf32> to vector<32x32xf32>
    %121 = arith.addf %117, %120 : vector<32x32xf32>
    %122 = arith.truncf %121 : vector<32x32xf32> to vector<32x32xbf16>
    %123 = vector.extract_strided_slice %106 {offsets = [0, 0], sizes = [16, 32], strides = [1, 1]} : vector<32x32xbf16> to vector<16x32xbf16>
    %124 = vector.extract_strided_slice %114 {offsets = [0, 0], sizes = [16, 32], strides = [1, 1]} : vector<32x32xbf16> to vector<16x32xbf16>
    %125 = vector.extract_strided_slice %122 {offsets = [0, 0], sizes = [16, 32], strides = [1, 1]} : vector<32x32xbf16> to vector<16x32xbf16>
    %cst_84 = arith.constant dense<0.000000e+00> : vector<16x16xf32>
    %126 = tpu.matmul %123, %124, %cst_84 {dimension_numbers = #tpu.dot_dimension_numbers<[1], [1], [0], [0], [0, 0, 1, 0], [], []>} : vector<16x32xbf16>, vector<16x32xbf16>, vector<16x16xf32> -> vector<16x16xf32>
    %c0_85 = arith.constant 0 : index
    %c0_86 = arith.constant 0 : index
    %c0_87 = arith.constant 0 : index
    %127 = vector.load %arg2[%c0_85, %c0_86, %c0_87] : memref<2x1x16xf32, #tpu.memory_space<vmem>>, vector<1x1x16xf32>
    %128 = vector.shape_cast %127 : vector<1x1x16xf32> to vector<1x16xf32>
    %129 = vector.broadcast %128 : vector<1x16xf32> to vector<16x16xf32>
    %130 = arith.addf %126, %129 : vector<16x16xf32>
    %cst_88 = arith.constant dense<0xFF800000> : vector<16xf32>
    %131 = vector.multi_reduction <maximumf>, %130, %cst_88 [1] : vector<16x16xf32> to vector<16xf32>
    %132 = vector.shape_cast %131 : vector<16xf32> to vector<16x1xf32>
    %133 = vector.broadcast %132 : vector<16x1xf32> to vector<16x16xf32>
    %134 = arith.subf %130, %133 : vector<16x16xf32>
    %135 = math.exp %134 : vector<16x16xf32>
    %136 = arith.truncf %135 : vector<16x16xf32> to vector<16x16xbf16>
    %cst_89 = arith.constant dense<0.000000e+00> : vector<16x32xf32>
    %137 = tpu.matmul %136, %125, %cst_89 {dimension_numbers = #tpu.dot_dimension_numbers<[1], [0], [0], [1], [0, 0, 1, 1], [], []>} : vector<16x16xbf16>, vector<16x32xbf16>, vector<16x32xf32> -> vector<16x32xf32>
    %cst_90 = arith.constant dense<0.000000e+00> : vector<16xf32>
    %138 = vector.multi_reduction <add>, %135, %cst_90 [1] : vector<16x16xf32> to vector<16xf32>
    %139 = vector.shape_cast %138 : vector<16xf32> to vector<16x1xf32>
    %140 = tpu.reciprocal %139 {approx = true} : vector<16x1xf32> -> vector<16x1xf32>
    %141 = vector.broadcast %140 : vector<16x1xf32> to vector<16x32xf32>
    %142 = arith.mulf %137, %141 : vector<16x32xf32>
    %143 = arith.truncf %142 : vector<16x32xf32> to vector<16x32xbf16>
    %c1_91 = arith.constant 1 : index
    %c0_92 = arith.constant 0 : index
    %c0_93 = arith.constant 0 : index
    %144 = vector.load %arg7[%c1_91, %c0_92, %c0_93] : memref<4x32x128xbf16, #tpu.memory_space<vmem>>, vector<1x32x128xbf16>
    %145 = vector.shape_cast %144 : vector<1x32x128xbf16> to vector<32x128xbf16>
    %cst_94 = arith.constant dense<0.000000e+00> : vector<16x128xf32>
    %146 = tpu.matmul %143, %145, %cst_94 {dimension_numbers = #tpu.dot_dimension_numbers<[1], [0], [0], [1], [0, 0, 1, 1], [], []>} : vector<16x32xbf16>, vector<32x128xbf16>, vector<16x128xf32> -> vector<16x128xf32>
    %147 = vector.extract_strided_slice %106 {offsets = [16, 0], sizes = [16, 32], strides = [1, 1]} : vector<32x32xbf16> to vector<16x32xbf16>
    %148 = vector.extract_strided_slice %114 {offsets = [16, 0], sizes = [16, 32], strides = [1, 1]} : vector<32x32xbf16> to vector<16x32xbf16>
    %149 = vector.extract_strided_slice %122 {offsets = [16, 0], sizes = [16, 32], strides = [1, 1]} : vector<32x32xbf16> to vector<16x32xbf16>
    %cst_95 = arith.constant dense<0.000000e+00> : vector<16x16xf32>
    %150 = tpu.matmul %147, %148, %cst_95 {dimension_numbers = #tpu.dot_dimension_numbers<[1], [1], [0], [0], [0, 0, 1, 0], [], []>} : vector<16x32xbf16>, vector<16x32xbf16>, vector<16x16xf32> -> vector<16x16xf32>
    %c1_96 = arith.constant 1 : index
    %c0_97 = arith.constant 0 : index
    %c0_98 = arith.constant 0 : index
    %151 = vector.load %arg2[%c1_96, %c0_97, %c0_98] : memref<2x1x16xf32, #tpu.memory_space<vmem>>, vector<1x1x16xf32>
    %152 = vector.shape_cast %151 : vector<1x1x16xf32> to vector<1x16xf32>
    %153 = vector.broadcast %152 : vector<1x16xf32> to vector<16x16xf32>
    %154 = arith.addf %150, %153 : vector<16x16xf32>
    %cst_99 = arith.constant dense<0xFF800000> : vector<16xf32>
    %155 = vector.multi_reduction <maximumf>, %154, %cst_99 [1] : vector<16x16xf32> to vector<16xf32>
    %156 = vector.shape_cast %155 : vector<16xf32> to vector<16x1xf32>
    %157 = vector.broadcast %156 : vector<16x1xf32> to vector<16x16xf32>
    %158 = arith.subf %154, %157 : vector<16x16xf32>
    %159 = math.exp %158 : vector<16x16xf32>
    %160 = arith.truncf %159 : vector<16x16xf32> to vector<16x16xbf16>
    %cst_100 = arith.constant dense<0.000000e+00> : vector<16x32xf32>
    %161 = tpu.matmul %160, %149, %cst_100 {dimension_numbers = #tpu.dot_dimension_numbers<[1], [0], [0], [1], [0, 0, 1, 1], [], []>} : vector<16x16xbf16>, vector<16x32xbf16>, vector<16x32xf32> -> vector<16x32xf32>
    %cst_101 = arith.constant dense<0.000000e+00> : vector<16xf32>
    %162 = vector.multi_reduction <add>, %159, %cst_101 [1] : vector<16x16xf32> to vector<16xf32>
    %163 = vector.shape_cast %162 : vector<16xf32> to vector<16x1xf32>
    %164 = tpu.reciprocal %163 {approx = true} : vector<16x1xf32> -> vector<16x1xf32>
    %165 = vector.broadcast %164 : vector<16x1xf32> to vector<16x32xf32>
    %166 = arith.mulf %161, %165 : vector<16x32xf32>
    %167 = arith.truncf %166 : vector<16x32xf32> to vector<16x32xbf16>
    %c1_102 = arith.constant 1 : index
    %c0_103 = arith.constant 0 : index
    %c0_104 = arith.constant 0 : index
    %168 = vector.load %arg7[%c1_102, %c0_103, %c0_104] : memref<4x32x128xbf16, #tpu.memory_space<vmem>>, vector<1x32x128xbf16>
    %169 = vector.shape_cast %168 : vector<1x32x128xbf16> to vector<32x128xbf16>
    %cst_105 = arith.constant dense<0.000000e+00> : vector<16x128xf32>
    %170 = tpu.matmul %167, %169, %cst_105 {dimension_numbers = #tpu.dot_dimension_numbers<[1], [0], [0], [1], [0, 0, 1, 1], [], []>} : vector<16x32xbf16>, vector<32x128xbf16>, vector<16x128xf32> -> vector<16x128xf32>
    %c0_106 = arith.constant 0 : index
    %c2_107 = arith.constant 2 : index
    %c0_108 = arith.constant 0 : index
    %c0_109 = arith.constant 0 : index
    %171 = vector.load %arg5[%c0_106, %c2_107, %c0_108, %c0_109] : memref<3x4x128x32xbf16, #tpu.memory_space<vmem>>, vector<1x1x128x32xbf16>
    %172 = vector.shape_cast %171 : vector<1x1x128x32xbf16> to vector<128x32xbf16>
    %cst_110 = arith.constant dense<0.000000e+00> : vector<32x32xf32>
    %173 = tpu.matmul %26, %172, %cst_110 {dimension_numbers = #tpu.dot_dimension_numbers<[1], [0], [0], [1], [0, 0, 1, 1], [], []>} : vector<32x128xbf16>, vector<128x32xbf16>, vector<32x32xf32> -> vector<32x32xf32>
    %c0_111 = arith.constant 0 : index
    %c2_112 = arith.constant 2 : index
    %c0_113 = arith.constant 0 : index
    %c0_114 = arith.constant 0 : index
    %174 = vector.load %arg6[%c0_111, %c2_112, %c0_113, %c0_114] : memref<3x4x1x32xf32, #tpu.memory_space<vmem>>, vector<1x1x1x32xf32>
    %175 = vector.shape_cast %174 : vector<1x1x1x32xf32> to vector<1x32xf32>
    %176 = vector.broadcast %175 : vector<1x32xf32> to vector<32x32xf32>
    %177 = arith.addf %173, %176 : vector<32x32xf32>
    %178 = arith.truncf %177 : vector<32x32xf32> to vector<32x32xbf16>
    %c1_115 = arith.constant 1 : index
    %c2_116 = arith.constant 2 : index
    %c0_117 = arith.constant 0 : index
    %c0_118 = arith.constant 0 : index
    %179 = vector.load %arg5[%c1_115, %c2_116, %c0_117, %c0_118] : memref<3x4x128x32xbf16, #tpu.memory_space<vmem>>, vector<1x1x128x32xbf16>
    %180 = vector.shape_cast %179 : vector<1x1x128x32xbf16> to vector<128x32xbf16>
    %cst_119 = arith.constant dense<0.000000e+00> : vector<32x32xf32>
    %181 = tpu.matmul %26, %180, %cst_119 {dimension_numbers = #tpu.dot_dimension_numbers<[1], [0], [0], [1], [0, 0, 1, 1], [], []>} : vector<32x128xbf16>, vector<128x32xbf16>, vector<32x32xf32> -> vector<32x32xf32>
    %c1_120 = arith.constant 1 : index
    %c2_121 = arith.constant 2 : index
    %c0_122 = arith.constant 0 : index
    %c0_123 = arith.constant 0 : index
    %182 = vector.load %arg6[%c1_120, %c2_121, %c0_122, %c0_123] : memref<3x4x1x32xf32, #tpu.memory_space<vmem>>, vector<1x1x1x32xf32>
    %183 = vector.shape_cast %182 : vector<1x1x1x32xf32> to vector<1x32xf32>
    %184 = vector.broadcast %183 : vector<1x32xf32> to vector<32x32xf32>
    %185 = arith.addf %181, %184 : vector<32x32xf32>
    %186 = arith.truncf %185 : vector<32x32xf32> to vector<32x32xbf16>
    %c2_124 = arith.constant 2 : index
    %c2_125 = arith.constant 2 : index
    %c0_126 = arith.constant 0 : index
    %c0_127 = arith.constant 0 : index
    %187 = vector.load %arg5[%c2_124, %c2_125, %c0_126, %c0_127] : memref<3x4x128x32xbf16, #tpu.memory_space<vmem>>, vector<1x1x128x32xbf16>
    %188 = vector.shape_cast %187 : vector<1x1x128x32xbf16> to vector<128x32xbf16>
    %cst_128 = arith.constant dense<0.000000e+00> : vector<32x32xf32>
    %189 = tpu.matmul %26, %188, %cst_128 {dimension_numbers = #tpu.dot_dimension_numbers<[1], [0], [0], [1], [0, 0, 1, 1], [], []>} : vector<32x128xbf16>, vector<128x32xbf16>, vector<32x32xf32> -> vector<32x32xf32>
    %c2_129 = arith.constant 2 : index
    %c2_130 = arith.constant 2 : index
    %c0_131 = arith.constant 0 : index
    %c0_132 = arith.constant 0 : index
    %190 = vector.load %arg6[%c2_129, %c2_130, %c0_131, %c0_132] : memref<3x4x1x32xf32, #tpu.memory_space<vmem>>, vector<1x1x1x32xf32>
    %191 = vector.shape_cast %190 : vector<1x1x1x32xf32> to vector<1x32xf32>
    %192 = vector.broadcast %191 : vector<1x32xf32> to vector<32x32xf32>
    %193 = arith.addf %189, %192 : vector<32x32xf32>
    %194 = arith.truncf %193 : vector<32x32xf32> to vector<32x32xbf16>
    %195 = vector.extract_strided_slice %178 {offsets = [0, 0], sizes = [16, 32], strides = [1, 1]} : vector<32x32xbf16> to vector<16x32xbf16>
    %196 = vector.extract_strided_slice %186 {offsets = [0, 0], sizes = [16, 32], strides = [1, 1]} : vector<32x32xbf16> to vector<16x32xbf16>
    %197 = vector.extract_strided_slice %194 {offsets = [0, 0], sizes = [16, 32], strides = [1, 1]} : vector<32x32xbf16> to vector<16x32xbf16>
    %cst_133 = arith.constant dense<0.000000e+00> : vector<16x16xf32>
    %198 = tpu.matmul %195, %196, %cst_133 {dimension_numbers = #tpu.dot_dimension_numbers<[1], [1], [0], [0], [0, 0, 1, 0], [], []>} : vector<16x32xbf16>, vector<16x32xbf16>, vector<16x16xf32> -> vector<16x16xf32>
    %c0_134 = arith.constant 0 : index
    %c0_135 = arith.constant 0 : index
    %c0_136 = arith.constant 0 : index
    %199 = vector.load %arg2[%c0_134, %c0_135, %c0_136] : memref<2x1x16xf32, #tpu.memory_space<vmem>>, vector<1x1x16xf32>
    %200 = vector.shape_cast %199 : vector<1x1x16xf32> to vector<1x16xf32>
    %201 = vector.broadcast %200 : vector<1x16xf32> to vector<16x16xf32>
    %202 = arith.addf %198, %201 : vector<16x16xf32>
    %cst_137 = arith.constant dense<0xFF800000> : vector<16xf32>
    %203 = vector.multi_reduction <maximumf>, %202, %cst_137 [1] : vector<16x16xf32> to vector<16xf32>
    %204 = vector.shape_cast %203 : vector<16xf32> to vector<16x1xf32>
    %205 = vector.broadcast %204 : vector<16x1xf32> to vector<16x16xf32>
    %206 = arith.subf %202, %205 : vector<16x16xf32>
    %207 = math.exp %206 : vector<16x16xf32>
    %208 = arith.truncf %207 : vector<16x16xf32> to vector<16x16xbf16>
    %cst_138 = arith.constant dense<0.000000e+00> : vector<16x32xf32>
    %209 = tpu.matmul %208, %197, %cst_138 {dimension_numbers = #tpu.dot_dimension_numbers<[1], [0], [0], [1], [0, 0, 1, 1], [], []>} : vector<16x16xbf16>, vector<16x32xbf16>, vector<16x32xf32> -> vector<16x32xf32>
    %cst_139 = arith.constant dense<0.000000e+00> : vector<16xf32>
    %210 = vector.multi_reduction <add>, %207, %cst_139 [1] : vector<16x16xf32> to vector<16xf32>
    %211 = vector.shape_cast %210 : vector<16xf32> to vector<16x1xf32>
    %212 = tpu.reciprocal %211 {approx = true} : vector<16x1xf32> -> vector<16x1xf32>
    %213 = vector.broadcast %212 : vector<16x1xf32> to vector<16x32xf32>
    %214 = arith.mulf %209, %213 : vector<16x32xf32>
    %215 = arith.truncf %214 : vector<16x32xf32> to vector<16x32xbf16>
    %c2_140 = arith.constant 2 : index
    %c0_141 = arith.constant 0 : index
    %c0_142 = arith.constant 0 : index
    %216 = vector.load %arg7[%c2_140, %c0_141, %c0_142] : memref<4x32x128xbf16, #tpu.memory_space<vmem>>, vector<1x32x128xbf16>
    %217 = vector.shape_cast %216 : vector<1x32x128xbf16> to vector<32x128xbf16>
    %cst_143 = arith.constant dense<0.000000e+00> : vector<16x128xf32>
    %218 = tpu.matmul %215, %217, %cst_143 {dimension_numbers = #tpu.dot_dimension_numbers<[1], [0], [0], [1], [0, 0, 1, 1], [], []>} : vector<16x32xbf16>, vector<32x128xbf16>, vector<16x128xf32> -> vector<16x128xf32>
    %219 = vector.extract_strided_slice %178 {offsets = [16, 0], sizes = [16, 32], strides = [1, 1]} : vector<32x32xbf16> to vector<16x32xbf16>
    %220 = vector.extract_strided_slice %186 {offsets = [16, 0], sizes = [16, 32], strides = [1, 1]} : vector<32x32xbf16> to vector<16x32xbf16>
    %221 = vector.extract_strided_slice %194 {offsets = [16, 0], sizes = [16, 32], strides = [1, 1]} : vector<32x32xbf16> to vector<16x32xbf16>
    %cst_144 = arith.constant dense<0.000000e+00> : vector<16x16xf32>
    %222 = tpu.matmul %219, %220, %cst_144 {dimension_numbers = #tpu.dot_dimension_numbers<[1], [1], [0], [0], [0, 0, 1, 0], [], []>} : vector<16x32xbf16>, vector<16x32xbf16>, vector<16x16xf32> -> vector<16x16xf32>
    %c1_145 = arith.constant 1 : index
    %c0_146 = arith.constant 0 : index
    %c0_147 = arith.constant 0 : index
    %223 = vector.load %arg2[%c1_145, %c0_146, %c0_147] : memref<2x1x16xf32, #tpu.memory_space<vmem>>, vector<1x1x16xf32>
    %224 = vector.shape_cast %223 : vector<1x1x16xf32> to vector<1x16xf32>
    %225 = vector.broadcast %224 : vector<1x16xf32> to vector<16x16xf32>
    %226 = arith.addf %222, %225 : vector<16x16xf32>
    %cst_148 = arith.constant dense<0xFF800000> : vector<16xf32>
    %227 = vector.multi_reduction <maximumf>, %226, %cst_148 [1] : vector<16x16xf32> to vector<16xf32>
    %228 = vector.shape_cast %227 : vector<16xf32> to vector<16x1xf32>
    %229 = vector.broadcast %228 : vector<16x1xf32> to vector<16x16xf32>
    %230 = arith.subf %226, %229 : vector<16x16xf32>
    %231 = math.exp %230 : vector<16x16xf32>
    %232 = arith.truncf %231 : vector<16x16xf32> to vector<16x16xbf16>
    %cst_149 = arith.constant dense<0.000000e+00> : vector<16x32xf32>
    %233 = tpu.matmul %232, %221, %cst_149 {dimension_numbers = #tpu.dot_dimension_numbers<[1], [0], [0], [1], [0, 0, 1, 1], [], []>} : vector<16x16xbf16>, vector<16x32xbf16>, vector<16x32xf32> -> vector<16x32xf32>
    %cst_150 = arith.constant dense<0.000000e+00> : vector<16xf32>
    %234 = vector.multi_reduction <add>, %231, %cst_150 [1] : vector<16x16xf32> to vector<16xf32>
    %235 = vector.shape_cast %234 : vector<16xf32> to vector<16x1xf32>
    %236 = tpu.reciprocal %235 {approx = true} : vector<16x1xf32> -> vector<16x1xf32>
    %237 = vector.broadcast %236 : vector<16x1xf32> to vector<16x32xf32>
    %238 = arith.mulf %233, %237 : vector<16x32xf32>
    %239 = arith.truncf %238 : vector<16x32xf32> to vector<16x32xbf16>
    %c2_151 = arith.constant 2 : index
    %c0_152 = arith.constant 0 : index
    %c0_153 = arith.constant 0 : index
    %240 = vector.load %arg7[%c2_151, %c0_152, %c0_153] : memref<4x32x128xbf16, #tpu.memory_space<vmem>>, vector<1x32x128xbf16>
    %241 = vector.shape_cast %240 : vector<1x32x128xbf16> to vector<32x128xbf16>
    %cst_154 = arith.constant dense<0.000000e+00> : vector<16x128xf32>
    %242 = tpu.matmul %239, %241, %cst_154 {dimension_numbers = #tpu.dot_dimension_numbers<[1], [0], [0], [1], [0, 0, 1, 1], [], []>} : vector<16x32xbf16>, vector<32x128xbf16>, vector<16x128xf32> -> vector<16x128xf32>
    %c0_155 = arith.constant 0 : index
    %c3 = arith.constant 3 : index
    %c0_156 = arith.constant 0 : index
    %c0_157 = arith.constant 0 : index
    %243 = vector.load %arg5[%c0_155, %c3, %c0_156, %c0_157] : memref<3x4x128x32xbf16, #tpu.memory_space<vmem>>, vector<1x1x128x32xbf16>
    %244 = vector.shape_cast %243 : vector<1x1x128x32xbf16> to vector<128x32xbf16>
    %cst_158 = arith.constant dense<0.000000e+00> : vector<32x32xf32>
    %245 = tpu.matmul %26, %244, %cst_158 {dimension_numbers = #tpu.dot_dimension_numbers<[1], [0], [0], [1], [0, 0, 1, 1], [], []>} : vector<32x128xbf16>, vector<128x32xbf16>, vector<32x32xf32> -> vector<32x32xf32>
    %c0_159 = arith.constant 0 : index
    %c3_160 = arith.constant 3 : index
    %c0_161 = arith.constant 0 : index
    %c0_162 = arith.constant 0 : index
    %246 = vector.load %arg6[%c0_159, %c3_160, %c0_161, %c0_162] : memref<3x4x1x32xf32, #tpu.memory_space<vmem>>, vector<1x1x1x32xf32>
    %247 = vector.shape_cast %246 : vector<1x1x1x32xf32> to vector<1x32xf32>
    %248 = vector.broadcast %247 : vector<1x32xf32> to vector<32x32xf32>
    %249 = arith.addf %245, %248 : vector<32x32xf32>
    %250 = arith.truncf %249 : vector<32x32xf32> to vector<32x32xbf16>
    %c1_163 = arith.constant 1 : index
    %c3_164 = arith.constant 3 : index
    %c0_165 = arith.constant 0 : index
    %c0_166 = arith.constant 0 : index
    %251 = vector.load %arg5[%c1_163, %c3_164, %c0_165, %c0_166] : memref<3x4x128x32xbf16, #tpu.memory_space<vmem>>, vector<1x1x128x32xbf16>
    %252 = vector.shape_cast %251 : vector<1x1x128x32xbf16> to vector<128x32xbf16>
    %cst_167 = arith.constant dense<0.000000e+00> : vector<32x32xf32>
    %253 = tpu.matmul %26, %252, %cst_167 {dimension_numbers = #tpu.dot_dimension_numbers<[1], [0], [0], [1], [0, 0, 1, 1], [], []>} : vector<32x128xbf16>, vector<128x32xbf16>, vector<32x32xf32> -> vector<32x32xf32>
    %c1_168 = arith.constant 1 : index
    %c3_169 = arith.constant 3 : index
    %c0_170 = arith.constant 0 : index
    %c0_171 = arith.constant 0 : index
    %254 = vector.load %arg6[%c1_168, %c3_169, %c0_170, %c0_171] : memref<3x4x1x32xf32, #tpu.memory_space<vmem>>, vector<1x1x1x32xf32>
    %255 = vector.shape_cast %254 : vector<1x1x1x32xf32> to vector<1x32xf32>
    %256 = vector.broadcast %255 : vector<1x32xf32> to vector<32x32xf32>
    %257 = arith.addf %253, %256 : vector<32x32xf32>
    %258 = arith.truncf %257 : vector<32x32xf32> to vector<32x32xbf16>
    %c2_172 = arith.constant 2 : index
    %c3_173 = arith.constant 3 : index
    %c0_174 = arith.constant 0 : index
    %c0_175 = arith.constant 0 : index
    %259 = vector.load %arg5[%c2_172, %c3_173, %c0_174, %c0_175] : memref<3x4x128x32xbf16, #tpu.memory_space<vmem>>, vector<1x1x128x32xbf16>
    %260 = vector.shape_cast %259 : vector<1x1x128x32xbf16> to vector<128x32xbf16>
    %cst_176 = arith.constant dense<0.000000e+00> : vector<32x32xf32>
    %261 = tpu.matmul %26, %260, %cst_176 {dimension_numbers = #tpu.dot_dimension_numbers<[1], [0], [0], [1], [0, 0, 1, 1], [], []>} : vector<32x128xbf16>, vector<128x32xbf16>, vector<32x32xf32> -> vector<32x32xf32>
    %c2_177 = arith.constant 2 : index
    %c3_178 = arith.constant 3 : index
    %c0_179 = arith.constant 0 : index
    %c0_180 = arith.constant 0 : index
    %262 = vector.load %arg6[%c2_177, %c3_178, %c0_179, %c0_180] : memref<3x4x1x32xf32, #tpu.memory_space<vmem>>, vector<1x1x1x32xf32>
    %263 = vector.shape_cast %262 : vector<1x1x1x32xf32> to vector<1x32xf32>
    %264 = vector.broadcast %263 : vector<1x32xf32> to vector<32x32xf32>
    %265 = arith.addf %261, %264 : vector<32x32xf32>
    %266 = arith.truncf %265 : vector<32x32xf32> to vector<32x32xbf16>
    %267 = vector.extract_strided_slice %250 {offsets = [0, 0], sizes = [16, 32], strides = [1, 1]} : vector<32x32xbf16> to vector<16x32xbf16>
    %268 = vector.extract_strided_slice %258 {offsets = [0, 0], sizes = [16, 32], strides = [1, 1]} : vector<32x32xbf16> to vector<16x32xbf16>
    %269 = vector.extract_strided_slice %266 {offsets = [0, 0], sizes = [16, 32], strides = [1, 1]} : vector<32x32xbf16> to vector<16x32xbf16>
    %cst_181 = arith.constant dense<0.000000e+00> : vector<16x16xf32>
    %270 = tpu.matmul %267, %268, %cst_181 {dimension_numbers = #tpu.dot_dimension_numbers<[1], [1], [0], [0], [0, 0, 1, 0], [], []>} : vector<16x32xbf16>, vector<16x32xbf16>, vector<16x16xf32> -> vector<16x16xf32>
    %c0_182 = arith.constant 0 : index
    %c0_183 = arith.constant 0 : index
    %c0_184 = arith.constant 0 : index
    %271 = vector.load %arg2[%c0_182, %c0_183, %c0_184] : memref<2x1x16xf32, #tpu.memory_space<vmem>>, vector<1x1x16xf32>
    %272 = vector.shape_cast %271 : vector<1x1x16xf32> to vector<1x16xf32>
    %273 = vector.broadcast %272 : vector<1x16xf32> to vector<16x16xf32>
    %274 = arith.addf %270, %273 : vector<16x16xf32>
    %cst_185 = arith.constant dense<0xFF800000> : vector<16xf32>
    %275 = vector.multi_reduction <maximumf>, %274, %cst_185 [1] : vector<16x16xf32> to vector<16xf32>
    %276 = vector.shape_cast %275 : vector<16xf32> to vector<16x1xf32>
    %277 = vector.broadcast %276 : vector<16x1xf32> to vector<16x16xf32>
    %278 = arith.subf %274, %277 : vector<16x16xf32>
    %279 = math.exp %278 : vector<16x16xf32>
    %280 = arith.truncf %279 : vector<16x16xf32> to vector<16x16xbf16>
    %cst_186 = arith.constant dense<0.000000e+00> : vector<16x32xf32>
    %281 = tpu.matmul %280, %269, %cst_186 {dimension_numbers = #tpu.dot_dimension_numbers<[1], [0], [0], [1], [0, 0, 1, 1], [], []>} : vector<16x16xbf16>, vector<16x32xbf16>, vector<16x32xf32> -> vector<16x32xf32>
    %cst_187 = arith.constant dense<0.000000e+00> : vector<16xf32>
    %282 = vector.multi_reduction <add>, %279, %cst_187 [1] : vector<16x16xf32> to vector<16xf32>
    %283 = vector.shape_cast %282 : vector<16xf32> to vector<16x1xf32>
    %284 = tpu.reciprocal %283 {approx = true} : vector<16x1xf32> -> vector<16x1xf32>
    %285 = vector.broadcast %284 : vector<16x1xf32> to vector<16x32xf32>
    %286 = arith.mulf %281, %285 : vector<16x32xf32>
    %287 = arith.truncf %286 : vector<16x32xf32> to vector<16x32xbf16>
    %c3_188 = arith.constant 3 : index
    %c0_189 = arith.constant 0 : index
    %c0_190 = arith.constant 0 : index
    %288 = vector.load %arg7[%c3_188, %c0_189, %c0_190] : memref<4x32x128xbf16, #tpu.memory_space<vmem>>, vector<1x32x128xbf16>
    %289 = vector.shape_cast %288 : vector<1x32x128xbf16> to vector<32x128xbf16>
    %cst_191 = arith.constant dense<0.000000e+00> : vector<16x128xf32>
    %290 = tpu.matmul %287, %289, %cst_191 {dimension_numbers = #tpu.dot_dimension_numbers<[1], [0], [0], [1], [0, 0, 1, 1], [], []>} : vector<16x32xbf16>, vector<32x128xbf16>, vector<16x128xf32> -> vector<16x128xf32>
    %291 = vector.extract_strided_slice %250 {offsets = [16, 0], sizes = [16, 32], strides = [1, 1]} : vector<32x32xbf16> to vector<16x32xbf16>
    %292 = vector.extract_strided_slice %258 {offsets = [16, 0], sizes = [16, 32], strides = [1, 1]} : vector<32x32xbf16> to vector<16x32xbf16>
    %293 = vector.extract_strided_slice %266 {offsets = [16, 0], sizes = [16, 32], strides = [1, 1]} : vector<32x32xbf16> to vector<16x32xbf16>
    %cst_192 = arith.constant dense<0.000000e+00> : vector<16x16xf32>
    %294 = tpu.matmul %291, %292, %cst_192 {dimension_numbers = #tpu.dot_dimension_numbers<[1], [1], [0], [0], [0, 0, 1, 0], [], []>} : vector<16x32xbf16>, vector<16x32xbf16>, vector<16x16xf32> -> vector<16x16xf32>
    %c1_193 = arith.constant 1 : index
    %c0_194 = arith.constant 0 : index
    %c0_195 = arith.constant 0 : index
    %295 = vector.load %arg2[%c1_193, %c0_194, %c0_195] : memref<2x1x16xf32, #tpu.memory_space<vmem>>, vector<1x1x16xf32>
    %296 = vector.shape_cast %295 : vector<1x1x16xf32> to vector<1x16xf32>
    %297 = vector.broadcast %296 : vector<1x16xf32> to vector<16x16xf32>
    %298 = arith.addf %294, %297 : vector<16x16xf32>
    %cst_196 = arith.constant dense<0xFF800000> : vector<16xf32>
    %299 = vector.multi_reduction <maximumf>, %298, %cst_196 [1] : vector<16x16xf32> to vector<16xf32>
    %300 = vector.shape_cast %299 : vector<16xf32> to vector<16x1xf32>
    %301 = vector.broadcast %300 : vector<16x1xf32> to vector<16x16xf32>
    %302 = arith.subf %298, %301 : vector<16x16xf32>
    %303 = math.exp %302 : vector<16x16xf32>
    %304 = arith.truncf %303 : vector<16x16xf32> to vector<16x16xbf16>
    %cst_197 = arith.constant dense<0.000000e+00> : vector<16x32xf32>
    %305 = tpu.matmul %304, %293, %cst_197 {dimension_numbers = #tpu.dot_dimension_numbers<[1], [0], [0], [1], [0, 0, 1, 1], [], []>} : vector<16x16xbf16>, vector<16x32xbf16>, vector<16x32xf32> -> vector<16x32xf32>
    %cst_198 = arith.constant dense<0.000000e+00> : vector<16xf32>
    %306 = vector.multi_reduction <add>, %303, %cst_198 [1] : vector<16x16xf32> to vector<16xf32>
    %307 = vector.shape_cast %306 : vector<16xf32> to vector<16x1xf32>
    %308 = tpu.reciprocal %307 {approx = true} : vector<16x1xf32> -> vector<16x1xf32>
    %309 = vector.broadcast %308 : vector<16x1xf32> to vector<16x32xf32>
    %310 = arith.mulf %305, %309 : vector<16x32xf32>
    %311 = arith.truncf %310 : vector<16x32xf32> to vector<16x32xbf16>
    %c3_199 = arith.constant 3 : index
    %c0_200 = arith.constant 0 : index
    %c0_201 = arith.constant 0 : index
    %312 = vector.load %arg7[%c3_199, %c0_200, %c0_201] : memref<4x32x128xbf16, #tpu.memory_space<vmem>>, vector<1x32x128xbf16>
    %313 = vector.shape_cast %312 : vector<1x32x128xbf16> to vector<32x128xbf16>
    %cst_202 = arith.constant dense<0.000000e+00> : vector<16x128xf32>
    %314 = tpu.matmul %311, %313, %cst_202 {dimension_numbers = #tpu.dot_dimension_numbers<[1], [0], [0], [1], [0, 0, 1, 1], [], []>} : vector<16x32xbf16>, vector<32x128xbf16>, vector<16x128xf32> -> vector<16x128xf32>
    %315 = arith.addf %74, %146 : vector<16x128xf32>
    %316 = arith.addf %218, %290 : vector<16x128xf32>
    %317 = arith.addf %315, %316 : vector<16x128xf32>
    %318 = arith.addf %98, %170 : vector<16x128xf32>
    %319 = arith.addf %242, %314 : vector<16x128xf32>
    %320 = arith.addf %318, %319 : vector<16x128xf32>
    %321 = tpu.concatenate %317, %320 in 0 : vector<16x128xf32>, vector<16x128xf32> -> vector<32x128xf32>
    %c0_203 = arith.constant 0 : index
    %c0_204 = arith.constant 0 : index
    %322 = vector.load %arg8[%c0_203, %c0_204] : memref<1x128xf32, #tpu.memory_space<vmem>>, vector<1x128xf32>
    %323 = vector.broadcast %322 : vector<1x128xf32> to vector<32x128xf32>
    %324 = arith.addf %1, %323 : vector<32x128xf32>
    %325 = arith.addf %324, %321 : vector<32x128xf32>
    %cst_205 = arith.constant dense<0.000000e+00> : vector<32xf32>
    %326 = vector.multi_reduction <add>, %325, %cst_205 [1] : vector<32x128xf32> to vector<32xf32>
    %327 = vector.shape_cast %326 : vector<32xf32> to vector<32x1xf32>
    %cst_206 = arith.constant 1.280000e+02 : f32
    %328 = vector.broadcast %cst_206 : f32 to vector<32x1xf32>
    %329 = arith.divf %327, %328 : vector<32x1xf32>
    %330 = vector.broadcast %329 : vector<32x1xf32> to vector<32x128xf32>
    %331 = arith.subf %325, %330 : vector<32x128xf32>
    %332 = arith.mulf %331, %331 : vector<32x128xf32>
    %cst_207 = arith.constant dense<0.000000e+00> : vector<32xf32>
    %333 = vector.multi_reduction <add>, %332, %cst_207 [1] : vector<32x128xf32> to vector<32xf32>
    %334 = vector.shape_cast %333 : vector<32xf32> to vector<32x1xf32>
    %cst_208 = arith.constant 1.280000e+02 : f32
    %335 = vector.broadcast %cst_208 : f32 to vector<32x1xf32>
    %336 = arith.divf %334, %335 : vector<32x1xf32>
    %337 = vector.broadcast %329 : vector<32x1xf32> to vector<32x128xf32>
    %338 = arith.subf %325, %337 : vector<32x128xf32>
    %cst_209 = arith.constant 9.99999997E-7 : f32
    %339 = vector.broadcast %cst_209 : f32 to vector<32x1xf32>
    %340 = arith.addf %336, %339 : vector<32x1xf32>
    %341 = math.rsqrt %340 : vector<32x1xf32>
    %342 = vector.broadcast %341 : vector<32x1xf32> to vector<32x128xf32>
    %343 = arith.mulf %338, %342 : vector<32x128xf32>
    %c0_210 = arith.constant 0 : index
    %c0_211 = arith.constant 0 : index
    %344 = vector.load %arg9[%c0_210, %c0_211] : memref<1x128xf32, #tpu.memory_space<vmem>>, vector<1x128xf32>
    %345 = vector.broadcast %344 : vector<1x128xf32> to vector<32x128xf32>
    %346 = arith.mulf %343, %345 : vector<32x128xf32>
    %c0_212 = arith.constant 0 : index
    %c0_213 = arith.constant 0 : index
    %347 = vector.load %arg10[%c0_212, %c0_213] : memref<1x128xf32, #tpu.memory_space<vmem>>, vector<1x128xf32>
    %348 = vector.broadcast %347 : vector<1x128xf32> to vector<32x128xf32>
    %349 = arith.addf %346, %348 : vector<32x128xf32>
    %350 = arith.truncf %349 : vector<32x128xf32> to vector<32x128xbf16>
    %c0_214 = arith.constant 0 : index
    %c0_215 = arith.constant 0 : index
    %351 = vector.load %arg11[%c0_214, %c0_215] : memref<128x512xbf16, #tpu.memory_space<vmem>>, vector<128x512xbf16>
    %cst_216 = arith.constant dense<0.000000e+00> : vector<32x512xf32>
    %352 = tpu.matmul %350, %351, %cst_216 {dimension_numbers = #tpu.dot_dimension_numbers<[1], [0], [0], [1], [0, 0, 1, 1], [], []>} : vector<32x128xbf16>, vector<128x512xbf16>, vector<32x512xf32> -> vector<32x512xf32>
    %c0_217 = arith.constant 0 : index
    %c0_218 = arith.constant 0 : index
    %353 = vector.load %arg12[%c0_217, %c0_218] : memref<1x512xf32, #tpu.memory_space<vmem>>, vector<1x512xf32>
    %354 = vector.broadcast %353 : vector<1x512xf32> to vector<32x512xf32>
    %355 = arith.addf %352, %354 : vector<32x512xf32>
    %cst_219 = arith.constant 0.000000e+00 : f32
    %356 = vector.broadcast %cst_219 : f32 to vector<32x512xf32>
    %357 = arith.maximumf %355, %356 : vector<32x512xf32>
    %358 = arith.truncf %357 : vector<32x512xf32> to vector<32x512xbf16>
    %c0_220 = arith.constant 0 : index
    %c0_221 = arith.constant 0 : index
    %359 = vector.load %arg13[%c0_220, %c0_221] : memref<512x128xbf16, #tpu.memory_space<vmem>>, vector<512x128xbf16>
    %cst_222 = arith.constant dense<0.000000e+00> : vector<32x128xf32>
    %360 = tpu.matmul %358, %359, %cst_222 {dimension_numbers = #tpu.dot_dimension_numbers<[1], [0], [0], [1], [0, 0, 1, 1], [], []>} : vector<32x512xbf16>, vector<512x128xbf16>, vector<32x128xf32> -> vector<32x128xf32>
    %c0_223 = arith.constant 0 : index
    %c0_224 = arith.constant 0 : index
    %361 = vector.load %arg14[%c0_223, %c0_224] : memref<1x128xf32, #tpu.memory_space<vmem>>, vector<1x128xf32>
    %362 = vector.broadcast %361 : vector<1x128xf32> to vector<32x128xf32>
    %363 = arith.addf %360, %362 : vector<32x128xf32>
    %364 = arith.addf %325, %363 : vector<32x128xf32>
    %365 = vector.shape_cast %364 : vector<32x128xf32> to vector<2x16x128xf32>
    %c0_225 = arith.constant 0 : index
    %c0_226 = arith.constant 0 : index
    %c0_227 = arith.constant 0 : index
    %366 = vector.load %arg15[%c0_225, %c0_226, %c0_227] : memref<2x16x128xf32, #tpu.memory_space<vmem>>, vector<2x16x128xf32>
    tpu.vector_store %arg15[%c0_225, %c0_226, %c0_227], %365 {strides = array<i32>} : memref<2x16x128xf32, #tpu.memory_space<vmem>>, vector<2x16x128xf32>,
    return
  }
  func.func @transform_0(%arg0: i32) -> (i32, i32, i32) {
    %c0_i32 = arith.constant 0 : i32
    %c0_i32_0 = arith.constant 0 : i32
    %c0_i32_1 = arith.constant 0 : i32
    return %arg0, %c0_i32, %c0_i32_0 : i32, i32, i32
  }
  func.func @transform_1(%arg0: i32) -> (i32, i32, i32) {
    %c0_i32 = arith.constant 0 : i32
    %c0_i32_0 = arith.constant 0 : i32
    %c0_i32_1 = arith.constant 0 : i32
    return %arg0, %c0_i32, %c0_i32_0 : i32, i32, i32
  }
  func.func @transform_2(%arg0: i32) -> (i32, i32) {
    %c0_i32 = arith.constant 0 : i32
    %c0_i32_0 = arith.constant 0 : i32
    %c0_i32_1 = arith.constant 0 : i32
    return %c0_i32, %c0_i32_0 : i32, i32
  }
  func.func @transform_3(%arg0: i32) -> (i32, i32) {
    %c0_i32 = arith.constant 0 : i32
    %c0_i32_0 = arith.constant 0 : i32
    %c0_i32_1 = arith.constant 0 : i32
    return %c0_i32, %c0_i32_0 : i32, i32
  }
  func.func @transform_4(%arg0: i32) -> (i32, i32, i32, i32) {
    %c0_i32 = arith.constant 0 : i32
    %c0_i32_0 = arith.constant 0 : i32
    %c0_i32_1 = arith.constant 0 : i32
    %c0_i32_2 = arith.constant 0 : i32
    %c0_i32_3 = arith.constant 0 : i32
    return %c0_i32, %c0_i32_0, %c0_i32_1, %c0_i32_2 : i32, i32, i32, i32
  }
  func.func @transform_5(%arg0: i32) -> (i32, i32, i32, i32) {
    %c0_i32 = arith.constant 0 : i32
    %c0_i32_0 = arith.constant 0 : i32
    %c0_i32_1 = arith.constant 0 : i32
    %c0_i32_2 = arith.constant 0 : i32
    %c0_i32_3 = arith.constant 0 : i32
    return %c0_i32, %c0_i32_0, %c0_i32_1, %c0_i32_2 : i32, i32, i32, i32
  }
  func.func @transform_6(%arg0: i32) -> (i32, i32, i32) {
    %c0_i32 = arith.constant 0 : i32
    %c0_i32_0 = arith.constant 0 : i32
    %c0_i32_1 = arith.constant 0 : i32
    %c0_i32_2 = arith.constant 0 : i32
    return %c0_i32, %c0_i32_0, %c0_i32_1 : i32, i32, i32
  }
  func.func @transform_7(%arg0: i32) -> (i32, i32) {
    %c0_i32 = arith.constant 0 : i32
    %c0_i32_0 = arith.constant 0 : i32
    %c0_i32_1 = arith.constant 0 : i32
    return %c0_i32, %c0_i32_0 : i32, i32
  }
  func.func @transform_8(%arg0: i32) -> (i32, i32) {
    %c0_i32 = arith.constant 0 : i32
    %c0_i32_0 = arith.constant 0 : i32
    %c0_i32_1 = arith.constant 0 : i32
    return %c0_i32, %c0_i32_0 : i32, i32
  }
  func.func @transform_9(%arg0: i32) -> (i32, i32) {
    %c0_i32 = arith.constant 0 : i32
    %c0_i32_0 = arith.constant 0 : i32
    %c0_i32_1 = arith.constant 0 : i32
    return %c0_i32, %c0_i32_0 : i32, i32
  }
  func.func @transform_10(%arg0: i32) -> (i32, i32) {
    %c0_i32 = arith.constant 0 : i32
    %c0_i32_0 = arith.constant 0 : i32
    %c0_i32_1 = arith.constant 0 : i32
    return %c0_i32, %c0_i32_0 : i32, i32
  }
  func.func @transform_11(%arg0: i32) -> (i32, i32) {
    %c0_i32 = arith.constant 0 : i32
    %c0_i32_0 = arith.constant 0 : i32
    %c0_i32_1 = arith.constant 0 : i32
    return %c0_i32, %c0_i32_0 : i32, i32
  }
  func.func @transform_12(%arg0: i32) -> (i32, i32) {
    %c0_i32 = arith.constant 0 : i32
    %c0_i32_0 = arith.constant 0 : i32
    %c0_i32_1 = arith.constant 0 : i32
    return %c0_i32, %c0_i32_0 : i32, i32
  }
  func.func @transform_13(%arg0: i32) -> (i32, i32) {
    %c0_i32 = arith.constant 0 : i32
    %c0_i32_0 = arith.constant 0 : i32
    %c0_i32_1 = arith.constant 0 : i32
    return %c0_i32, %c0_i32_0 : i32, i32
  }
  func.func @transform_14(%arg0: i32) -> (i32, i32, i32) {
    %c0_i32 = arith.constant 0 : i32
    %c0_i32_0 = arith.constant 0 : i32
    %c0_i32_1 = arith.constant 0 : i32
    return %arg0, %c0_i32, %c0_i32_0 : i32, i32, i32
  }
}

</mosaic_0001>

<bundles_post_ra>
// kernel: encoder_layer.1
= control target key start
LH: loop header
LB: loop body
LE: loop exit
PB: predicated region body
PF: predicated region fallthrough
CT: control target
= control target key end

     0   :  { %s6925_s0 = inlined_call_operand.vmem [shape: f32[4,16,128], index: 0, kind: input, shape index: {}]   ;;  %s6926_s1 = inlined_call_operand.vmem [shape: f32[4,1,16], index: 1, kind: input, shape index: {}]   ;;  %s6927_s2 = inlined_call_operand.vmem [shape: f32[1,128], index: 2, kind: input, shape index: {}]   ;;  %s6928_s3 = inlined_call_operand.vmem [shape: f32[1,128], index: 3, kind: input, shape index: {}]   ;;  %s6929_s4 = inlined_call_operand.vmem [shape: bf16[3,4,128,32], index: 4, kind: input, shape index: {}]   ;;  %s6930_s5 = inlined_call_operand.vmem [shape: f32[3,4,1,32], index: 5, kind: input, shape index: {}]   ;;  %s6931_s6 = inlined_call_operand.vmem [shape: bf16[4,32,128], index: 6, kind: input, shape index: {}]   ;;  %s6932_s7 = inlined_call_operand.vmem [shape: f32[1,128], index: 7, kind: input, shape index: {}]   ;;  %s6933_s8 = inlined_call_operand.vmem [shape: f32[1,128], index: 8, kind: input, shape index: {}]   ;;  %s6934_s9 = inlined_call_operand.vmem [shape: f32[1,128], index: 9, kind: input, shape index: {}]   ;;  %s6935_s10 = inlined_call_operand.vmem [shape: bf16[128,512], index: 10, kind: input, shape index: {}]   ;;  %s6936_s11 = inlined_call_operand.vmem [shape: f32[1,512], index: 11, kind: input, shape index: {}]   ;;  %s6937_s12 = inlined_call_operand.vmem [shape: bf16[512,128], index: 12, kind: input, shape index: {}]   ;;  %s6938_s13 = inlined_call_operand.vmem [shape: f32[1,128], index: 13, kind: input, shape index: {}]   ;;  %s6939_s14 = inlined_call_operand.hbm [shape: f32[4,16,128], index: 14, kind: output, shape index: {}]  }
   0x1   :  { %6941 = sst [smem:[#allocation7_spill]] %s6925_s0 }
   0x2   :  { %6942 = sst [smem:[#allocation8_spill]] %s6926_s1 }
   0x3   :  { %19 = vsyncpa [#allocation3], 0 }
   0x4   :  { %21 = vsyncpa [#allocation3 + $0x1], 0  ;;  %s5814_s29 = smov 0   ;;  %s5816_s30 = smov 0  }
   0x5   :  { %s5818_s15 = smov 0   ;;  %s5820_s16 = smov 0  }
   0x6 LB: > { %6943 = sst [smem:[#allocation5_spill]] %s5727_s15  ;;  %s5835_s17 = sadd.s32 4294967295, %s5731_s16   ;;  %s5731_s16 = sphi %s5820_s16, %s6953_s16   ;;  %s5727_s15 = sphi %s5818_s15, %s6950_s15   ;;  %s5723_s30 = sphi %s5816_s30, %s6952_s30   ;;  %s5719_s29 = sphi %s5814_s29, %s6951_s29  }
   0x7   : > { %s4293_s18 = sadd.s32 4294967294, %s5731_s16   ;;  %s5839_s19 = sadd.s32 1, %s5731_s16  }
   0x8   : > { %s338_s20 = sadd.s32 1, %s5727_s15  ;;  %s335_s21 = ssub.s32 %s5731_s16, %s5839_s19 }
   0x9   : > { %p348_p0 = scmp.ne.s32.totalorder %s5727_s15, %s5723_s30  ;;  %p336_p1 = scmp.eq.s32.totalorder %s335_s21, 0 }
   0xa   : > { %p349_p2 = scmp.eq.s32.totalorder %s5835_s17, 1  ;;  %p354_p3 = scmp.ne.s32.totalorder %s5723_s30, %s5719_s29 }
   0xb   : > { %p355_p4 = scmp.eq.s32.totalorder %s4293_s18, 1  ;;  %p4296_p7 = scmp.ge.s32.totalorder %s5731_s16, 1 }
   0xc   : > { %s5850_s22 = scalar_select %p336_p1, %s5727_s15, %s338_s20  }
   0xd   : > { %p5852_p5 = por %p349_p2, %p348_p0  ;;  %p5856_p6 = por %p355_p4, %p354_p3 }
   0xe   : > { %6944 = sst [smem:[#allocation6_spill]] %s5850_s22  ;;  %p427_p8 = scmp.lt.s32.totalorder %s5731_s16, 3 }
  0x10   : > { %p428_p9 = pnand %p4296_p7, %p427_p8 }
  0x11   : > { %s4298_s25 = sshll.u32 (!%p428_p9), %s5835_s17, 1  ;;  %s6947_s0 = sld [smem:[#allocation7_spill]] (!%p428_p9)  ;;  %v5399_v4 = vld [vmem:[%s6929_s4] sm:$0xff] (!%p428_p9)   ;;  %v5401_v22 = vld [vmem:[%s6929_s4 + $0x8] sm:$0xff] (!%p428_p9)   ;;  %v5403_v24 = vld [vmem:[%s6929_s4 + $0x10] sm:$0xff] (!%p428_p9)   ;;  %vm5734_vm0 = vmmov (!%p428_p9), 0  }
  0x12   : > { %431 = sbr.rel (%p428_p9) target bundleno = 6275 (0x1883), region = 76  ;;  %p479_p10 = scmp.lt.s32.totalorder (!%p428_p9), %s4298_s25, 3  ;;  %v5400_v5 = vld [vmem:[%s6929_s4 + $0x100] sm:$0xff] (!%p428_p9)   ;;  %4955 = vmatprep.subr.bf16.mxu0 (!%p428_p9), %v5399_v4  ;;  %v5402_v23 = vld [vmem:[%s6929_s4 + $0x108] sm:$0xff] (!%p428_p9)   ;;  %v5404_v25 = vld [vmem:[%s6929_s4 + $0x110] sm:$0xff] (!%p428_p9)   ;;  %vm942_vm1 = vcmask (!%p428_p9), 261120  }
  0x13   : > { %4975 = vmatprep.subr.bf16.mxu1 (!%p428_p9), %v5400_v5  ;;  %4956 = vmatpush3.bf16.msra.mxu0 (!%p428_p9), %v5399_v4  ;;  %v5405_v26 = vld [vmem:[%s6929_s4 + $0x18] sm:$0xff] (!%p428_p9)   ;;  %v5407_v28 = vld [vmem:[%s6929_s4 + $0x20] sm:$0xff] (!%p428_p9)   ;;  %v5409_v30 = vld [vmem:[%s6929_s4 + $0x28] sm:$0xff] (!%p428_p9)   ;;  %s6948_s1 = sld [smem:[#allocation8_spill]] (!%p428_p9)  ;;  %vm990_vm2 = vcmask (!%p428_p9), 130048   ;;  %s4722_s22 = sshll.u32 (!%p428_p9), %s5835_s17, 9 }
  0x14   : > { %4976 = vmatpush3.bf16.msra.mxu1 (!%p428_p9), %v5400_v5  ;;  %4957 = vmatprep.subr.bf16.mxu0 (!%p428_p9), %v5401_v22  ;;  %v5406_v27 = vld [vmem:[%s6929_s4 + $0x118] sm:$0xff] (!%p428_p9)   ;;  %v5408_v29 = vld [vmem:[%s6929_s4 + $0x120] sm:$0xff] (!%p428_p9)   ;;  %v5410_v31 = vld [vmem:[%s6929_s4 + $0x128] sm:$0xff] (!%p428_p9)   ;;  %s6880_s28 = scalar_lea.hbm (!%p428_p9), %s6939_s14, %s4722_s22 }
  0x15   : > { %4977 = vmatprep.subr.bf16.mxu1 (!%p428_p9), %v5402_v23  ;;  %v5411_v32 = vld [vmem:[%s6929_s4 + $0x30] sm:$0xff] (!%p428_p9)   ;;  %v5413_v34 = vld [vmem:[%s6929_s4 + $0x38] sm:$0xff] (!%p428_p9)   ;;  %v5415_v36 = vld [vmem:[%s6929_s4 + $0x200] sm:$0xff] (!%p428_p9)  }
  0x16   : > { %v5412_v33 = vld [vmem:[%s6929_s4 + $0x130] sm:$0xff] (!%p428_p9)   ;;  %v5414_v35 = vld [vmem:[%s6929_s4 + $0x138] sm:$0xff] (!%p428_p9)   ;;  %v4302_v51 = vld [vmem:[%s6927_s2] ss:$0 sm:$0xff] (!%p428_p9) }
  0x17   : > { %4958 = vmatpush3.bf16.msra.mxu0 (!%p428_p9), %v5401_v22  ;;  %v4303_v56 = vld [vmem:[%s6928_s3] ss:$0 sm:$0xff] (!%p428_p9)  ;;  %v5416_v5 = vld [vmem:[%s6929_s4 + $0x208] sm:$0xff] (!%p428_p9)   ;;  %v5433_v22 = vld [vmem:[%s6929_s4 + $0x250] sm:$0xff] (!%p428_p9)  }
  0x18   : > { %4978 = vmatpush3.bf16.msra.mxu1 (!%p428_p9), %v5402_v23  ;;  %4959 = vmatprep.subr.bf16.mxu0 (!%p428_p9), %v5403_v24  ;;  %v5434_v23 = vld [vmem:[%s6929_s4 + $0x258] sm:$0xff] (!%p428_p9)  }
  0x19   : > { %s6955_s25 = smov (!%p479_p10, %s4298_s25), 3  ;;  %4979 = vmatprep.subr.bf16.mxu1 %v5404_v25 }
  0x1a   : > { %s4720_s26 = sshll.u32 %s6955_s25, 4  ;;  %s6099_s21 = scalar_lea.vmem %s6948_s1, %s6955_s25 }
  0x1b   : > { %s5869_s18 = scalar_lea.vmem %s6947_s0, %s4720_s26  ;;  %4960 = vmatpush3.bf16.msra.mxu0 %v5403_v24  ;;  %v5435_v24 = vld [vmem:[%s6929_s4 + $0x260] sm:$0xff]   ;;  %s5736_s25 = smov [#allocation2]  }
  0x1c   : > { %v492_v0 = vld [vmem:[%s5869_s18] sm:$0xff]  ;;  %v494_v1 = vld [vmem:[%s5869_s18 + $0x10] sm:$0xff]  ;;  %v493_v2 = vld [vmem:[%s5869_s18 + $0x8] sm:$0xff]  ;;  %4980 = vmatpush3.bf16.msra.mxu1 %v5404_v25  ;;  %4961 = vmatprep.subr.bf16.mxu0 %v5405_v26  ;;  %s5673_s27 = sshll.u32 %s5736_s25, 4  ;;  %s5674_s27 = int_to_ptr.vmem [resolvable:$false] %s5673_s27 }
  0x1d   : > { %496 = vadd.xlane.f32.xlu0 %v492_v0  ;;  %500 = vadd.xlane.f32.xlu1 %v494_v1  ;;  %v495_v3 = vld [vmem:[%s5869_s18 + $0x18] sm:$0xff]  ;;  %v5436_v25 = vld [vmem:[%s6929_s4 + $0x268] sm:$0xff]  }
  0x1e   : > { %4981 = vmatprep.subr.bf16.mxu1 %v5406_v27 }
  0x1f   : > { %4962 = vmatpush3.bf16.msra.mxu0 %v5405_v26  ;;  %v5437_v26 = vld [vmem:[%s6929_s4 + $0x270] sm:$0xff]  }
  0x20   : > { %4982 = vmatpush3.bf16.msra.mxu1 %v5406_v27  ;;  %4963 = vmatprep.subr.bf16.mxu0 %v5407_v28  ;;  %v5438_v27 = vld [vmem:[%s6929_s4 + $0x278] sm:$0xff]  }
  0x21   : > { %498 = vadd.xlane.f32.xlu0 %v493_v2  ;;  %502 = vadd.xlane.f32.xlu1 %v495_v3 }
  0x22   : > { %4983 = vmatprep.subr.bf16.mxu1 %v5408_v29 }
  0x23   : > { %4964 = vmatpush3.bf16.msra.mxu0 %v5407_v28  ;;  %v5733_v28 = vmov 0.0  }
  0x24   : > { %4984 = vmatpush3.bf16.msra.mxu1 %v5408_v29  ;;  %4965 = vmatprep.subr.bf16.mxu0 %v5409_v30  ;;  %v4304_v29 = vld [vmem:[%s6930_s5] ss:$0 sm:$0xff] }
  0x25   : > { %4985 = vmatprep.subr.bf16.mxu1 %v5410_v31 }
  0x27   : > { %4966 = vmatpush3.bf16.msra.mxu0 %v5409_v30  ;;  %v4330_v30 = vld [vmem:[%s6930_s5 + $0x4] ss:$0 sm:$0xff] }
  0x28   : > { %4986 = vmatpush3.bf16.msra.mxu1 %v5410_v31  ;;  %4967 = vmatprep.subr.bf16.mxu0 %v5411_v32 }
  0x29   : > { %4987 = vmatprep.subr.bf16.mxu1 %v5412_v33 }
  0x2b   : > { %4968 = vmatpush3.bf16.msra.mxu0 %v5411_v32 }
  0x2c   : > { %4988 = vmatpush3.bf16.msra.mxu1 %v5412_v33  ;;  %4969 = vmatprep.subr.bf16.mxu0 %v5413_v34 }
  0x2d   : > { %4989 = vmatprep.subr.bf16.mxu1 %v5414_v35 }
  0x2f   : > { %4970 = vmatpush3.bf16.msra.mxu0 %v5413_v34 }
  0x30   : > { %4990 = vmatpush3.bf16.msra.mxu1 %v5414_v35  ;;  %4995 = vmatprep.subr.bf16.mxu0 %v5415_v36 }
  0x31   : > { %5015 = vmatprep.subr.bf16.mxu1 %v5733_v28 }
  0xaa   : > { %v497_v6 = vpop.xlane.xlu0 %496  ;;  %v501_v7 = vpop.xlane.xlu1 %500 }
  0xab   : > { %v505_v8 = vmul.f32 0.0078125, %v497_v6  ;;  %v507_v9 = vmul.f32 0.0078125, %v501_v7  ;;  %v5417_v6 = vld [vmem:[%s6929_s4 + $0x210] sm:$0xff]   ;;  %v5418_v7 = vld [vmem:[%s6929_s4 + $0x218] sm:$0xff]  }
  0xad   : > { %v5881_v10 = vsub.f32 %v492_v0, %v505_v8  ;;  %v5883_v11 = vsub.f32 %v494_v1, %v507_v9  ;;  %v5419_v8 = vld [vmem:[%s6929_s4 + $0x220] sm:$0xff]   ;;  %v5420_v9 = vld [vmem:[%s6929_s4 + $0x228] sm:$0xff]  }
  0xae   : > { %v499_v12 = vpop.xlane.xlu0 %498  ;;  %v503_v13 = vpop.xlane.xlu1 %502 }
  0xaf   : > { %v506_v14 = vmul.f32 0.0078125, %v499_v12  ;;  %v513_v15 = vmul.f32 %v5881_v10, %v5881_v10  ;;  %v508_v16 = vmul.f32 0.0078125, %v503_v13  ;;  %v515_v19 = vmul.f32 %v5883_v11, %v5883_v11  ;;  %v5423_v12 = vld [vmem:[%s6929_s4 + $0x40] sm:$0xff]   ;;  %v5424_v13 = vld [vmem:[%s6929_s4 + $0x48] sm:$0xff]  }
  0xb1   : > { %v5887_v17 = vsub.f32 %v493_v2, %v506_v14  ;;  %517 = vadd.xlane.f32.xlu0 %v513_v15  ;;  %v5889_v18 = vsub.f32 %v495_v3, %v508_v16  ;;  %v5425_v14 = vld [vmem:[%s6929_s4 + $0x50] sm:$0xff]   ;;  %v5426_v15 = vld [vmem:[%s6929_s4 + $0x58] sm:$0xff]   ;;  %v5427_v16 = vld [vmem:[%s6929_s4 + $0x60] sm:$0xff]  }
  0xb3   : > { %v514_v20 = vmul.f32 %v5887_v17, %v5887_v17  ;;  %v516_v21 = vmul.f32 %v5889_v18, %v5889_v18 }
  0xb5   : > { %521 = vadd.xlane.f32.xlu0 %v515_v19  ;;  %519 = vadd.xlane.f32.xlu1 %v514_v20  ;;  %v5430_v19 = vld [vmem:[%s6929_s4 + $0x78] sm:$0xff]   ;;  %v5431_v20 = vld [vmem:[%s6929_s4 + $0x240] sm:$0xff]  }
  0xb9   : > { %523 = vadd.xlane.f32.xlu1 %v516_v21  ;;  %v5432_v21 = vld [vmem:[%s6929_s4 + $0x248] sm:$0xff]  }
 0x13e   : > { %v518_v37 = vpop.xlane.xlu0 %517 }
 0x13f   : > { %v525_v38 = vmul.f32 0.0078125, %v518_v37 }
 0x141   : > { %v529_v39 = vadd.f32 1e-06, %v525_v38 }
 0x142   : > { %v520_v40 = vpop.xlane.xlu1 %519  ;;  %v522_v41 = vpop.xlane.xlu0 %521 }
 0x143   : > { %5583 = vrsqrt.f32 %v529_v39  ;;  %v526_v42 = vmul.f32 0.0078125, %v520_v40  ;;  %v527_v43 = vmul.f32 0.0078125, %v522_v41 }
 0x145   : > { %v530_v44 = vadd.f32 1e-06, %v526_v42  ;;  %v531_v45 = vadd.f32 1e-06, %v527_v43 }
 0x146   : > { %v524_v46 = vpop.xlane.xlu1 %523 }
 0x147   : > { %5585 = vrsqrt.f32 %v530_v44  ;;  %v528_v47 = vmul.f32 0.0078125, %v524_v46 }
 0x148   : > { %5587 = vrsqrt.f32 %v531_v45 }
 0x149   : > { %v532_v48 = vadd.f32 1e-06, %v528_v47 }
 0x14b   : > { %5589 = vrsqrt.f32 %v532_v48 }
 0x14d   : > { %v5584_v49 = vpop.eup %5583 }
 0x14e   : > { %v537_v50 = vmul.f32 %v5584_v49, %v5881_v10  ;;  %v5421_v10 = vld [vmem:[%s6929_s4 + $0x230] sm:$0xff]  }
 0x150   : > { %v548_v54 = vmul.f32 %v4302_v51, %v537_v50 }
 0x151   : > { %v5586_v52 = vpop.eup %5585 }
 0x152   : > { %v5588_v53 = vpop.eup %5587  ;;  %v538_v55 = vmul.f32 %v5586_v52, %v5887_v17  ;;  %v559_v60 = vadd.f32 %v4303_v56, %v548_v54  ;;  %v5428_v17 = vld [vmem:[%s6929_s4 + $0x68] sm:$0xff]  }
 0x153   : > { %v539_v57 = vmul.f32 %v5588_v53, %v5883_v11  ;;  %v5422_v11 = vld [vmem:[%s6929_s4 + $0x238] sm:$0xff]   ;;  %v4356_v52 = vld [vmem:[%s6930_s5 + $0x8] ss:$0 sm:$0xff] }
 0x154   : > { %v549_v58 = vmul.f32 %v4302_v51, %v538_v55 }
 0x155   : > { %v5590_v59 = vpop.eup %5589  ;;  %v550_v62 = vmul.f32 %v4302_v51, %v539_v57 }
 0x156   : > { %v560_v61 = vadd.f32 %v4303_v56, %v549_v58  ;;  %v540_v63 = vmul.f32 %v5590_v59, %v5889_v18  ;;  %v5429_v18 = vld [vmem:[%s6929_s4 + $0x70] sm:$0xff]  }
 0x157   : > { %v561_v2 = vadd.f32 %v4303_v56, %v550_v62 }
 0x158   : > { %v5952_v0 = vpack.c.bf16 %v560_v61, %v559_v60  ;;  %v551_v1 = vmul.f32 %v4302_v51, %v540_v63  ;;  %v4389_v63 = vld [vmem:[%s6930_s5 + $0x1] ss:$0 sm:$0xff] }
 0x15a   : > { %v562_v3 = vadd.f32 %v4303_v56, %v551_v1  ;;  %4971 = vmatprep.mubr.bf16.mxu0 %v5952_v0  ;;  %4991 = vmatprep.mubr.bf16.mxu1 %v5952_v0 }
 0x15c   : > { %v5956_v4 = vpack.c.bf16 %v562_v3, %v561_v2 }
 0x15e   : > { %4972 = vmatmul.mubr.bf16.vlgmr.msra.gmra.mrb[0].mxu0 %v5956_v4  ;;  %4992 = vmatmul.mubr.bf16.vlgmr.msra.gmra.mrb[0].mxu1 %v5956_v4 }
 0x15f   : > { %4996 = vmatpush3.bf16.msra.mxu0 %v5415_v36  ;;  %5011 = vmatprep.mubr.bf16.mxu0 %v5952_v0 }
 0x160   : > { %4997 = vmatprep.subr.bf16.mxu0 %v5416_v5  ;;  %5017 = vmatprep.mubr.msk.bf16.mxu1 %vm5734_vm0, %v5733_v28 }
 0x163   : > { %4998 = vmatpush3.bf16.msra.mxu0 %v5416_v5 }
 0x164   : > { %4999 = vmatprep.subr.bf16.mxu0 %v5417_v6 }
 0x167   : > { %5000 = vmatpush3.bf16.msra.mxu0 %v5417_v6 }
 0x168   : > { %5001 = vmatprep.subr.bf16.mxu0 %v5418_v7 }
 0x16b   : > { %5002 = vmatpush3.bf16.msra.mxu0 %v5418_v7 }
 0x16c   : > { %5003 = vmatprep.subr.bf16.mxu0 %v5419_v8 }
 0x16f   : > { %5004 = vmatpush3.bf16.msra.mxu0 %v5419_v8 }
 0x170   : > { %5005 = vmatprep.subr.bf16.mxu0 %v5420_v9 }
 0x173   : > { %5006 = vmatpush3.bf16.msra.mxu0 %v5420_v9 }
 0x174   : > { %5007 = vmatprep.subr.bf16.mxu0 %v5421_v10 }
 0x177   : > { %5008 = vmatpush3.bf16.msra.mxu0 %v5421_v10 }
 0x178   : > { %5009 = vmatprep.subr.bf16.mxu0 %v5422_v11 }
 0x17b   : > { %5010 = vmatpush3.bf16.msra.mxu0 %v5422_v11 }
 0x17c   : > { %5039 = vmatprep.subr.bf16.mxu0 %v5423_v12 }
 0x17e   : > { %5012 = vmatmul.mubr.bf16.vlgmr.msra.gmra.mrb[4].mxu0 %v5956_v4 }
 0x17f   : > { %5040 = vmatpush3.bf16.msra.mxu0 %v5423_v12  ;;  %5055 = vmatprep.mubr.bf16.mxu0 %v5952_v0  ;;  %v4441_v12 = vld [vmem:[%s6930_s5 + $0x9] ss:$0 sm:$0xff] }
 0x180   : > { %5041 = vmatprep.subr.bf16.mxu0 %v5424_v13 }
 0x183   : > { %5042 = vmatpush3.bf16.msra.mxu0 %v5424_v13 }
 0x184   : > { %5043 = vmatprep.subr.bf16.mxu0 %v5425_v14 }
 0x187   : > { %5044 = vmatpush3.bf16.msra.mxu0 %v5425_v14 }
 0x188   : > { %5045 = vmatprep.subr.bf16.mxu0 %v5426_v15 }
 0x18b   : > { %5046 = vmatpush3.bf16.msra.mxu0 %v5426_v15 }
 0x18c   : > { %5047 = vmatprep.subr.bf16.mxu0 %v5427_v16 }
 0x18f   : > { %5048 = vmatpush3.bf16.msra.mxu0 %v5427_v16 }
 0x190   : > { %5049 = vmatprep.subr.bf16.mxu0 %v5428_v17 }
 0x193   : > { %5050 = vmatpush3.bf16.msra.mxu0 %v5428_v17 }
 0x194   : > { %5051 = vmatprep.subr.bf16.mxu0 %v5429_v18 }
 0x197   : > { %5052 = vmatpush3.bf16.msra.mxu0 %v5429_v18 }
 0x198   : > { %5053 = vmatprep.subr.bf16.mxu0 %v5430_v19 }
 0x19b   : > { %5054 = vmatpush3.bf16.msra.mxu0 %v5430_v19 }
 0x19c   : > { %5079 = vmatprep.subr.bf16.mxu0 %v5431_v20 }
 0x19e   : > { %5056 = vmatmul.mubr.bf16.vlgmr.msra.gmra.mrb[8].mxu0 %v5956_v4 }
 0x19f   : > { %5080 = vmatpush3.bf16.msra.mxu0 %v5431_v20  ;;  %5095 = vmatprep.mubr.bf16.mxu0 %v5952_v0 }
 0x1a0   : > { %5081 = vmatprep.subr.bf16.mxu0 %v5432_v21 }
 0x1a3   : > { %5082 = vmatpush3.bf16.msra.mxu0 %v5432_v21 }
 0x1a4   : > { %5083 = vmatprep.subr.bf16.mxu0 %v5433_v22 }
 0x1a7   : > { %5084 = vmatpush3.bf16.msra.mxu0 %v5433_v22 }
 0x1a8   : > { %5085 = vmatprep.subr.bf16.mxu0 %v5434_v23 }
 0x1ab   : > { %5086 = vmatpush3.bf16.msra.mxu0 %v5434_v23  ;;  %v6102_v23 = vld [vmem:[%s6099_s21] ss:$0 sm:$0xff] }
 0x1ac   : > { %5087 = vmatprep.subr.bf16.mxu0 %v5435_v24 }
 0x1af   : > { %5088 = vmatpush3.bf16.msra.mxu0 %v5435_v24 }
 0x1b0   : > { %5089 = vmatprep.subr.bf16.mxu0 %v5436_v25 }
 0x1b3   : > { %5090 = vmatpush3.bf16.msra.mxu0 %v5436_v25 }
 0x1b4   : > { %5091 = vmatprep.subr.bf16.mxu0 %v5437_v26 }
 0x1b7   : > { %5092 = vmatpush3.bf16.msra.mxu0 %v5437_v26 }
 0x1b8   : > { %5093 = vmatprep.subr.bf16.mxu0 %v5438_v27 }
 0x1bb   : > { %5094 = vmatpush3.bf16.msra.mxu0 %v5438_v27 }
 0x1bc   : > { %5125 = vmatprep.subr.bf16.mxu0 %v5733_v28 }
 0x1be   : > { %5096 = vmatmul.mubr.bf16.vlgmr.msra.gmra.mrb[12].mxu0 %v5956_v4 }
 0x1bf   : > { %5127 = vmatprep.mubr.msk.bf16.mxu0 %vm5734_vm0, %v5733_v28 }
 0x231   : > { %v4973_v31 = vpop.f32.mrb[0].mxu0  ;;  %v4993_v32 = vpop.f32.mrb[0].mxu1 }
 0x232   : > { %v6047_v33 = vadd.f32 %v4973_v31, %v4304_v29  ;;  %v6049_v34 = vadd.f32 %v4993_v32, %v4330_v30  ;;  %v670_v35 = vpop.f32.mrb[1].mxu0  ;;  %v794_v36 = vpop.f32.mrb[1].mxu1 }
 0x233   : > { %v4974_v37 = vpop.f32.mrb[2].mxu0  ;;  %v4994_v38 = vpop.f32.mrb[2].mxu1  ;;  %v671_v43 = vadd.f32 %v4304_v29, %v670_v35  ;;  %v795_v44 = vadd.f32 %v4330_v30, %v794_v36 }
 0x234   : > { %v6051_v39 = vadd.f32 %v4974_v37, %v4304_v29  ;;  %v6053_v40 = vadd.f32 %v4994_v38, %v4330_v30  ;;  %v673_v41 = vpop.f32.mrb[3].mxu0  ;;  %v797_v42 = vpop.f32.mrb[3].mxu1 }
 0x235   : > { %v674_v45 = vadd.f32 %v4304_v29, %v673_v41  ;;  %v798_v46 = vadd.f32 %v4330_v30, %v797_v42 }
 0x236   : > { %v686_v47 = vpack.c.bf16 %v6051_v39, %v6047_v33  ;;  %v810_v48 = vpack.c.bf16 %v6053_v40, %v6049_v34 }
 0x237   : > { %v685_v49 = vpack.c.bf16 %v674_v45, %v671_v43  ;;  %v809_v50 = vpack.c.bf16 %v798_v46, %v795_v44 }
 0x238   : > { %v1075_v46 = vsel %vm942_vm1, %v810_v48, 0 }
 0x239   : > { %v947_v51 = vsel %vm942_vm1, %v809_v50, 0  ;;  %v6133_v50 = vld [vmem:[%s6099_s21 + $0x1] ss:$0 sm:$0xff] }
 0x23a   : > { %5016 = vmatpush3.bf16.xpose.msra.mxu1 %v947_v51 }
 0x23b   : > { %5021 = vmatprep.subr.bf16.mxu1 %v5733_v28 }
 0x241   : > { %5018 = vmatmul.mubr.msk.bf16.vlgmr.msra.gmra.mrb[4].mxu1 %vm942_vm1, %v685_v49 }
 0x242   : > { %5023 = vmatprep.mubr.msk.bf16.mxu1 %vm5734_vm0, %v5733_v28 }
 0x251   : > { %v5013_v53 = vpop.f32.mrb[4].mxu0 }
 0x252   : > { %v6067_v54 = vadd.f32 %v5013_v53, %v4356_v52  ;;  %v918_v55 = vpop.f32.mrb[5].mxu0 }
 0x253   : > { %v5014_v56 = vpop.f32.mrb[6].mxu0  ;;  %v919_v59 = vadd.f32 %v4356_v52, %v918_v55 }
 0x254   : > { %v930_v57 = vadd.f32 %v5014_v56, %v4356_v52  ;;  %v921_v58 = vpop.f32.mrb[7].mxu0  ;;  %v5439_v56 = vld [vmem:[%s6929_s4 + $0x140] sm:$0xff]  }
 0x255   : > { %v922_v60 = vadd.f32 %v4356_v52, %v921_v58 }
 0x256   : > { %v934_v61 = vpack.c.bf16 %v930_v57, %v6067_v54 }
 0x257   : > { %v933_v62 = vpack.c.bf16 %v922_v60, %v919_v59 }
 0x259   : > { %5022 = vmatpush3.bf16.msra.mxu1 %v933_v62 }
 0x25a   : > { %5027 = vmatprep.subr.bf16.mxu1 %v5733_v28 }
 0x271   : > { %v5057_v1 = vpop.f32.mrb[8].mxu0 }
 0x272   : > { %v6074_v2 = vadd.f32 %v5057_v1, %v4389_v63  ;;  %v1293_v3 = vpop.f32.mrb[9].mxu0 }
 0x273   : > { %v5058_v5 = vpop.f32.mrb[10].mxu0  ;;  %v6078_v8 = vadd.f32 %v4389_v63, %v1293_v3 }
 0x274   : > { %v6076_v6 = vadd.f32 %v5058_v5, %v4389_v63  ;;  %v1296_v7 = vpop.f32.mrb[11].mxu0  ;;  %v5440_v5 = vld [vmem:[%s6929_s4 + $0x148] sm:$0xff]  }
 0x275   : > { %v6080_v9 = vadd.f32 %v4389_v63, %v1296_v7  ;;  %v5441_v7 = vld [vmem:[%s6929_s4 + $0x150] sm:$0xff]  }
 0x276   : > { %v1309_v10 = vpack.c.bf16 %v6076_v6, %v6074_v2 }
 0x277   : > { %v1308_v11 = vpack.c.bf16 %v6080_v9, %v6078_v8 }
 0x291   : > { %v5097_v13 = vpop.f32.mrb[12].mxu0 }
 0x292   : > { %v1541_v14 = vpop.f32.mrb[13].mxu0  ;;  %v1550_v17 = vadd.f32 %v5097_v13, %v4441_v12  ;;  %v5443_v13 = vld [vmem:[%s6929_s4 + $0x160] sm:$0xff]  }
 0x293   : > { %v6089_v15 = vadd.f32 %v4441_v12, %v1541_v14  ;;  %v5098_v16 = vpop.f32.mrb[14].mxu0  ;;  %v5444_v14 = vld [vmem:[%s6929_s4 + $0x168] sm:$0xff]  }
 0x294   : > { %v1553_v18 = vadd.f32 %v5098_v16, %v4441_v12  ;;  %v1544_v19 = vpop.f32.mrb[15].mxu0  ;;  %v5445_v16 = vld [vmem:[%s6929_s4 + $0x170] sm:$0xff]  }
 0x295   : > { %v6091_v20 = vadd.f32 %v4441_v12, %v1544_v19  ;;  %v5442_v12 = vld [vmem:[%s6929_s4 + $0x158] sm:$0xff]  }
 0x296   : > { %v1557_v21 = vpack.c.bf16 %v1553_v18, %v1550_v17  ;;  %v5446_v17 = vld [vmem:[%s6929_s4 + $0x178] sm:$0xff]  }
 0x297   : > { %v1556_v22 = vpack.c.bf16 %v6091_v20, %v6089_v15 }
 0x298   : > { %5126 = vmatpush3.bf16.msra.mxu0 %v1557_v21 }
 0x314   : > { %v983_v24 = vpop.f32.mrb[4].mxu1 }
 0x315   : > { %v984_v25 = vadd.f32 %v6102_v23, %v983_v24  ;;  %v5019_v26 = vpop.f32.mrb[5].mxu1 }
 0x316   : > { %v986_v27 = vpop.f32.mrb[6].mxu1 }
 0x317   : > { %v987_v29 = vadd.f32 %v6102_v23, %v986_v27  ;;  %v5020_v30 = vpop.f32.mrb[7].mxu1  ;;  %v991_v31 = vsel %vm990_vm2, %v984_v25, -inf }
 0x318   : > { %992 = vmax.xlane.f32.xlu0 %v991_v31 }
 0x319   : > { %v994_v32 = vsel %vm990_vm2, %v987_v29, -inf }
 0x31a   : > { %995 = vmax.xlane.f32.xlu1 %v994_v32 }
 0x3a5   : > { %v993_v35 = vpop.xlane.xlu0 %992 }
 0x3a6   : > { %v997_v36 = vsub.f32 %v984_v25, %v993_v35  ;;  %v4415_v25 = vld [vmem:[%s6930_s5 + $0x5] ss:$0 sm:$0xff] }
 0x3a7   : > { %v996_v37 = vpop.xlane.xlu1 %995 }
 0x3a8   : > { %v999_v38 = vmul.f32 1.442695, %v997_v36  ;;  %v998_v41 = vsub.f32 %v987_v29, %v996_v37 }
 0x3aa   : > { %v1001_v42 = vmul.f32 1.442695, %v998_v41  ;;  %5591 = vpow2.f32 %v999_v38 }
 0x3ac   : > { %5593 = vpow2.f32 %v1001_v42 }
 0x3b4   : > { %v6108_v43 = vpop.eup %5591 }
 0x3b6   : > { %v6110_v44 = vpop.eup %5593 }
 0x3b7   : > { %v1003_v45 = vpack.c.bf16 %v6110_v44, %v6108_v43 }
 0x3b9   : > { %5024 = vmatmul.mubr.msk.bf16.vlgmr.msra.gmra.mrb[8].mxu1 %vm990_vm2, %v1003_v45 }
 0x3ba   : > { %5028 = vmatpush3.bf16.xpose.msra.mxu1 %v1075_v46  ;;  %5029 = vmatprep.mubr.msk.bf16.mxu1 %vm5734_vm0, %v5733_v28 }
 0x3bb   : > { %5033 = vmatprep.subr.bf16.mxu1 %v5733_v28 }
 0x3c1   : > { %5030 = vmatmul.mubr.msk.bf16.vlgmr.msra.gmra.mrb[12].mxu1 %vm942_vm1, %v686_v47 }
 0x3c2   : > { %5034 = vmatpush3.bf16.msra.mxu1 %v934_v61  ;;  %5035 = vmatprep.mubr.msk.bf16.mxu1 %vm5734_vm0, %v5733_v28 }
 0x3c3   : > { %5059 = vmatprep.subr.bf16.mxu1 %v5439_v56 }
 0x48c   : > { %v6128_v49 = vpop.f32.mrb[8].mxu1 }
 0x48d   : > { %v5025_v34 = vpop.f32.mrb[9].mxu1 }
 0x48e   : > { %v6130_v40 = vpop.f32.mrb[10].mxu1 }
 0x48f   : > { %v5026_v48 = vpop.f32.mrb[11].mxu1 }
 0x494   : > { %v1111_v51 = vpop.f32.mrb[12].mxu1 }
 0x495   : > { %v1112_v52 = vadd.f32 %v6133_v50, %v1111_v51  ;;  %v5031_v53 = vpop.f32.mrb[13].mxu1 }
 0x496   : > { %v1114_v54 = vpop.f32.mrb[14].mxu1 }
 0x497   : > { %v1115_v33 = vadd.f32 %v6133_v50, %v1114_v54  ;;  %v5032_v39 = vpop.f32.mrb[15].mxu1  ;;  %v1118_v47 = vsel %vm990_vm2, %v1112_v52, -inf }
 0x498   : > { %1119 = vmax.xlane.f32.xlu0 %v1118_v47 }
 0x499   : > { %v1121_v55 = vsel %vm990_vm2, %v1115_v33, -inf }
 0x49a   : > { %1122 = vmax.xlane.f32.xlu1 %v1121_v55 }
 0x525   : > { %v1120_v57 = vpop.xlane.xlu0 %1119 }
 0x526   : > { %v1124_v58 = vsub.f32 %v1112_v52, %v1120_v57  ;;  %v5448_v57 = vld [vmem:[%s6931_s6 + $0x18] sm:$0xff]  }
 0x527   : > { %v1123_v59 = vpop.xlane.xlu1 %1122 }
 0x528   : > { %v1126_v60 = vmul.f32 1.442695, %v1124_v58  ;;  %v1125_v61 = vsub.f32 %v1115_v33, %v1123_v59 }
 0x52a   : > { %v1128_v62 = vmul.f32 1.442695, %v1125_v61  ;;  %5595 = vpow2.f32 %v1126_v60 }
 0x52c   : > { %5597 = vpow2.f32 %v1128_v62 }
 0x534   : > { %v6142_v63 = vpop.eup %5595 }
 0x536   : > { %v6144_v1 = vpop.eup %5597 }
 0x537   : > { %v1130_v3 = vpack.c.bf16 %v6144_v1, %v6142_v63 }
 0x539   : > { %5036 = vmatmul.mubr.msk.bf16.vlgmr.msra.gmra.mrb[16].mxu1 %vm990_vm2, %v1130_v3 }
 0x53a   : > { %5060 = vmatpush3.bf16.msra.mxu1 %v5439_v56  ;;  %5075 = vmatprep.mubr.bf16.mxu1 %v5952_v0  ;;  %v5447_v56 = vld [vmem:[%s6931_s6 + $0x10] sm:$0xff]  }
 0x53b   : > { %5061 = vmatprep.subr.bf16.mxu1 %v5440_v5 }
 0x53e   : > { %5062 = vmatpush3.bf16.msra.mxu1 %v5440_v5 }
 0x53f   : > { %5063 = vmatprep.subr.bf16.mxu1 %v5441_v7 }
 0x542   : > { %5064 = vmatpush3.bf16.msra.mxu1 %v5441_v7 }
 0x543   : > { %5065 = vmatprep.subr.bf16.mxu1 %v5442_v12 }
 0x546   : > { %5066 = vmatpush3.bf16.msra.mxu1 %v5442_v12 }
 0x547   : > { %5067 = vmatprep.subr.bf16.mxu1 %v5443_v13 }
 0x54a   : > { %5068 = vmatpush3.bf16.msra.mxu1 %v5443_v13 }
 0x54b   : > { %5069 = vmatprep.subr.bf16.mxu1 %v5444_v14 }
 0x54e   : > { %5070 = vmatpush3.bf16.msra.mxu1 %v5444_v14 }
 0x54f   : > { %5071 = vmatprep.subr.bf16.mxu1 %v5445_v16 }
 0x552   : > { %5072 = vmatpush3.bf16.msra.mxu1 %v5445_v16 }
 0x553   : > { %5073 = vmatprep.subr.bf16.mxu1 %v5446_v17 }
 0x556   : > { %5074 = vmatpush3.bf16.msra.mxu1 %v5446_v17 }
 0x557   : > { %5099 = vmatprep.subr.bf16.mxu1 %v5733_v28 }
 0x559   : > { %5076 = vmatmul.mubr.bf16.vlgmr.msra.gmra.mrb[20].mxu1 %v5956_v4 }
 0x55a   : > { %5101 = vmatprep.mubr.msk.bf16.mxu1 %vm5734_vm0, %v5733_v28 }
 0x60c   : > { %v6175_v18 = vpop.f32.mrb[16].mxu1 }
 0x60d   : > { %v5037_v19 = vpop.f32.mrb[17].mxu1 }
 0x60e   : > { %v6177_v21 = vpop.f32.mrb[18].mxu1 }
 0x60f   : > { %v5038_v24 = vpop.f32.mrb[19].mxu1 }
 0x62c   : > { %v5077_v26 = vpop.f32.mrb[20].mxu1 }
 0x62d   : > { %v6182_v27 = vadd.f32 %v5077_v26, %v4415_v25  ;;  %v1417_v29 = vpop.f32.mrb[21].mxu1 }
 0x62e   : > { %v5078_v30 = vpop.f32.mrb[22].mxu1  ;;  %v1418_v35 = vadd.f32 %v4415_v25, %v1417_v29 }
 0x62f   : > { %v1429_v31 = vadd.f32 %v5078_v30, %v4415_v25  ;;  %v1420_v32 = vpop.f32.mrb[23].mxu1 }
 0x630   : > { %v1421_v36 = vadd.f32 %v4415_v25, %v1420_v32  ;;  %v5449_v32 = vld [vmem:[%s6929_s4 + $0x80] sm:$0xff]  }
 0x631   : > { %v1433_v37 = vpack.c.bf16 %v1429_v31, %v6182_v27  ;;  %5139 = vmatprep.subr.bf16.mxu0 %v5449_v32 }
 0x632   : > { %v1432_v38 = vpack.c.bf16 %v1421_v36, %v1418_v35 }
 0x633   : > { %v1738_v16 = vsel %vm942_vm1, %v1433_v37, 0 }
 0x634   : > { %v1562_v41 = vsel %vm942_vm1, %v1432_v38, 0 }
 0x635   : > { %5100 = vmatpush3.bf16.xpose.msra.mxu1 %v1562_v41 }
 0x636   : > { %5105 = vmatprep.subr.bf16.mxu1 %v5733_v28 }
 0x63c   : > { %5102 = vmatmul.mubr.msk.bf16.vlgmr.msra.gmra.mrb[24].mxu1 %vm942_vm1, %v1308_v11 }
 0x63d   : > { %5106 = vmatpush3.bf16.msra.mxu1 %v1556_v22  ;;  %5107 = vmatprep.mubr.msk.bf16.mxu1 %vm5734_vm0, %v5733_v28 }
 0x63e   : > { %5111 = vmatprep.subr.bf16.mxu1 %v5733_v28 }
 0x70f   : > { %v1598_v42 = vpop.f32.mrb[24].mxu1 }
 0x710   : > { %v1599_v45 = vadd.f32 %v6102_v23, %v1598_v42  ;;  %v5103_v46 = vpop.f32.mrb[25].mxu1 }
 0x711   : > { %v1601_v34 = vpop.f32.mrb[26].mxu1 }
 0x712   : > { %v1602_v48 = vadd.f32 %v6102_v23, %v1601_v34  ;;  %v5104_v51 = vpop.f32.mrb[27].mxu1  ;;  %v1605_v8 = vsel %vm990_vm2, %v1599_v45, -inf }
 0x713   : > { %1606 = vmax.xlane.f32.xlu0 %v1605_v8  ;;  %v5450_v8 = vld [vmem:[%s6929_s4 + $0x88] sm:$0xff]  }
 0x714   : > { %v1608_v9 = vsel %vm990_vm2, %v1602_v48, -inf }
 0x715   : > { %1609 = vmax.xlane.f32.xlu1 %v1608_v9  ;;  %v5451_v9 = vld [vmem:[%s6929_s4 + $0x90] sm:$0xff]  }
 0x7a0   : > { %v1607_v11 = vpop.xlane.xlu0 %1606 }
 0x7a1   : > { %v1611_v15 = vsub.f32 %v1599_v45, %v1607_v11  ;;  %v5452_v11 = vld [vmem:[%s6929_s4 + $0x98] sm:$0xff]  }
 0x7a2   : > { %v1610_v20 = vpop.xlane.xlu1 %1609 }
 0x7a3   : > { %v1613_v22 = vmul.f32 1.442695, %v1611_v15  ;;  %v1612_v52 = vsub.f32 %v1602_v48, %v1610_v20  ;;  %v5453_v15 = vld [vmem:[%s6929_s4 + $0xa0] sm:$0xff]   ;;  %v5454_v20 = vld [vmem:[%s6929_s4 + $0xa8] sm:$0xff]  }
 0x7a5   : > { %5599 = vpow2.f32 %v1613_v22  ;;  %v1615_v53 = vmul.f32 1.442695, %v1612_v52  ;;  %v5455_v22 = vld [vmem:[%s6929_s4 + $0xb0] sm:$0xff]   ;;  %v5456_v52 = vld [vmem:[%s6929_s4 + $0xb8] sm:$0xff]  }
 0x7a7   : > { %5601 = vpow2.f32 %v1615_v53  ;;  %v5457_v53 = vld [vmem:[%s6929_s4 + $0x280] sm:$0xff]  }
 0x7af   : > { %v5600_v54 = vpop.eup %5599 }
 0x7b0   : > { %v1662_v33 = vsel %vm990_vm2, %v5600_v54, 0.0 }
 0x7b1   : > { %v5602_v39 = vpop.eup %5601  ;;  %1663 = vadd.xlane.f32.xlu0 %v1662_v33  ;;  %v5459_v33 = vld [vmem:[%s6929_s4 + $0x290] sm:$0xff]  }
 0x7b2   : > { %v1665_v47 = vsel %vm990_vm2, %v5602_v39, 0.0  ;;  %v1617_v55 = vpack.c.bf16 %v5602_v39, %v5600_v54  ;;  %v5458_v54 = vld [vmem:[%s6929_s4 + $0x288] sm:$0xff]   ;;  %v5460_v39 = vld [vmem:[%s6929_s4 + $0x298] sm:$0xff]  }
 0x7b3   : > { %1666 = vadd.xlane.f32.xlu1 %v1665_v47  ;;  %v5461_v47 = vld [vmem:[%s6929_s4 + $0x2a0] sm:$0xff]  }
 0x7b4   : > { %5108 = vmatmul.mubr.msk.bf16.vlgmr.msra.gmra.mrb[28].mxu1 %vm990_vm2, %v1617_v55  ;;  %v5462_v55 = vld [vmem:[%s6929_s4 + $0x2a8] sm:$0xff]  }
 0x7b5   : > { %5115 = vmatprep.mubr.msk.bf16.mxu1 %vm5734_vm0, %v5733_v28  ;;  %5112 = vmatpush3.bf16.msra.mxu1 %v5447_v56 }
 0x7b6   : > { %5113 = vmatprep.subr.bf16.mxu1 %v5733_v28 }
 0x7b9   : > { %5114 = vmatpush3.bf16.msra.mxu1 %v5448_v57 }
 0x7ba   : > { %5119 = vmatprep.subr.bf16.mxu1 %v5733_v28 }
 0x83e   : > { %v1664_v58 = vpop.xlane.xlu0 %1663 }
 0x83f   : > { %5603 = vrcp.f32 %v1664_v58  ;;  %v5465_v58 = vld [vmem:[%s6929_s4 + $0xc0] sm:$0xff]  }
 0x840   : > { %v1667_v59 = vpop.xlane.xlu1 %1666 }
 0x841   : > { %5605 = vrcp.f32 %v1667_v59  ;;  %v5466_v59 = vld [vmem:[%s6929_s4 + $0xc8] sm:$0xff]  }
 0x849   : > { %v5604_v61 = vpop.eup %5603 }
 0x84b   : > { %v5606_v3 = vpop.eup %5605 }
 0x887   : > { %v1655_v60 = vpop.f32.mrb[28].mxu1 }
 0x888   : > { %v5109_v62 = vpop.f32.mrb[29].mxu1  ;;  %v1670_v7 = vmul.f32 %v5604_v61, %v1655_v60  ;;  %v5467_v60 = vld [vmem:[%s6929_s4 + $0xd0] sm:$0xff]   ;;  %v5468_v61 = vld [vmem:[%s6929_s4 + $0xd8] sm:$0xff]  }
 0x889   : > { %v1658_v5 = vpop.f32.mrb[30].mxu1  ;;  %v5469_v62 = vld [vmem:[%s6929_s4 + $0xe0] sm:$0xff]  }
 0x88a   : > { %v1671_v12 = vmul.f32 %v5606_v3, %v1658_v5  ;;  %v5110_v13 = vpop.f32.mrb[31].mxu1  ;;  %v5470_v3 = vld [vmem:[%s6929_s4 + $0xe8] sm:$0xff]   ;;  %v5471_v5 = vld [vmem:[%s6929_s4 + $0xf0] sm:$0xff]  }
 0x88b   : > { %v5473_v13 = vld [vmem:[%s6929_s4 + $0x2c0] sm:$0xff]  }
 0x88c   : > { %v1672_v14 = vpack.c.bf16 %v1671_v12, %v1670_v7  ;;  %v5472_v7 = vld [vmem:[%s6929_s4 + $0xf8] sm:$0xff]   ;;  %v5481_v12 = vld [vmem:[%s6929_s4 + $0x180] sm:$0xff]  }
 0x88e   : > { %5116 = vmatmul.mubr.msk.bf16.vlgmr.msra.gmra.mrb[32].mxu1 %vm942_vm1, %v1672_v14  ;;  %v5474_v14 = vld [vmem:[%s6929_s4 + $0x2c8] sm:$0xff]  }
 0x88f   : > { %5120 = vmatpush3.bf16.xpose.msra.mxu1 %v1738_v16  ;;  %5121 = vmatprep.mubr.msk.bf16.mxu1 %vm5734_vm0, %v5733_v28  ;;  %v5475_v16 = vld [vmem:[%s6929_s4 + $0x2d0] sm:$0xff]  }
 0x890   : > { %5131 = vmatprep.subr.bf16.mxu1 %v5733_v28 }
 0x896   : > { %5122 = vmatmul.mubr.msk.bf16.vlgmr.msra.gmra.mrb[36].mxu1 %vm942_vm1, %v1309_v10 }
 0x897   : > { %5132 = vmatpush3.bf16.msra.mxu1 %v5447_v56  ;;  %5135 = vmatprep.mubr.msk.bf16.mxu1 %vm5734_vm0, %v5733_v28  ;;  %v5463_v56 = vld [vmem:[%s6929_s4 + $0x2b0] sm:$0xff]  }
 0x898   : > { %5133 = vmatprep.subr.bf16.mxu1 %v5733_v28 }
 0x89b   : > { %5134 = vmatpush3.bf16.msra.mxu1 %v5448_v57  ;;  %v5464_v57 = vld [vmem:[%s6929_s4 + $0x2b8] sm:$0xff]  }
 0x89c   : > { %5159 = vmatprep.subr.bf16.mxu1 %v5481_v12 }
 0x961   : > { %v6226_v17 = vpop.f32.mrb[32].mxu1 }
 0x962   : > { %v5117_v19 = vpop.f32.mrb[33].mxu1 }
 0x963   : > { %v6228_v24 = vpop.f32.mrb[34].mxu1  ;;  %v5476_v19 = vld [vmem:[%s6929_s4 + $0x2d8] sm:$0xff]  }
 0x964   : > { %v5118_v25 = vpop.f32.mrb[35].mxu1 }
 0x965   : > { %v5477_v25 = vld [vmem:[%s6929_s4 + $0x2e0] sm:$0xff]  }
 0x969   : > { %v1774_v26 = vpop.f32.mrb[36].mxu1 }
 0x96a   : > { %v1775_v27 = vadd.f32 %v6133_v50, %v1774_v26  ;;  %v5123_v29 = vpop.f32.mrb[37].mxu1  ;;  %v5478_v26 = vld [vmem:[%s6929_s4 + $0x2e8] sm:$0xff]  }
 0x96b   : > { %v1777_v2 = vpop.f32.mrb[38].mxu1  ;;  %v5480_v29 = vld [vmem:[%s6929_s4 + $0x2f8] sm:$0xff]  }
 0x96c   : > { %v1778_v6 = vadd.f32 %v6133_v50, %v1777_v2  ;;  %v5124_v10 = vpop.f32.mrb[39].mxu1  ;;  %v1781_v30 = vsel %vm990_vm2, %v1775_v27, -inf }
 0x96d   : > { %1782 = vmax.xlane.f32.xlu0 %v1781_v30 }
 0x96e   : > { %v1784_v31 = vsel %vm990_vm2, %v1778_v6, -inf }
 0x96f   : > { %1785 = vmax.xlane.f32.xlu1 %v1784_v31 }
 0x9fa   : > { %v1783_v35 = vpop.xlane.xlu0 %1782 }
 0x9fb   : > { %v1787_v36 = vsub.f32 %v1775_v27, %v1783_v35  ;;  %v5479_v27 = vld [vmem:[%s6929_s4 + $0x2f0] sm:$0xff]  }
 0x9fc   : > { %v1786_v37 = vpop.xlane.xlu1 %1785 }
 0x9fd   : > { %v1789_v38 = vmul.f32 1.442695, %v1787_v36  ;;  %v1788_v41 = vsub.f32 %v1778_v6, %v1786_v37 }
 0x9ff   : > { %5607 = vpow2.f32 %v1789_v38  ;;  %v1791_v42 = vmul.f32 1.442695, %v1788_v41 }
 0xa01   : > { %5609 = vpow2.f32 %v1791_v42  ;;  %v5482_v42 = vld [vmem:[%s6929_s4 + $0x188] sm:$0xff]  }
 0xa09   : > { %v5608_v45 = vpop.eup %5607 }
 0xa0a   : > { %v1838_v46 = vsel %vm990_vm2, %v5608_v45, 0.0 }
 0xa0b   : > { %v5610_v34 = vpop.eup %5609  ;;  %1839 = vadd.xlane.f32.xlu0 %v1838_v46  ;;  %v5484_v46 = vld [vmem:[%s6929_s4 + $0x198] sm:$0xff]  }
 0xa0c   : > { %v1841_v48 = vsel %vm990_vm2, %v5610_v34, 0.0  ;;  %v1793_v51 = vpack.c.bf16 %v5610_v34, %v5608_v45  ;;  %v5483_v45 = vld [vmem:[%s6929_s4 + $0x190] sm:$0xff]   ;;  %v5485_v34 = vld [vmem:[%s6929_s4 + $0x1a0] sm:$0xff]  }
 0xa0d   : > { %1842 = vadd.xlane.f32.xlu1 %v1841_v48  ;;  %v5486_v48 = vld [vmem:[%s6929_s4 + $0x1a8] sm:$0xff]  }
 0xa0e   : > { %5128 = vmatmul.mubr.msk.bf16.vlgmr.msra.gmra.mrb[16].mxu0 %vm990_vm2, %v1793_v51  ;;  %v5487_v51 = vld [vmem:[%s6929_s4 + $0x1b0] sm:$0xff]  }
 0xa0f   : > { %5140 = vmatpush3.bf16.msra.mxu0 %v5449_v32  ;;  %5155 = vmatprep.mubr.bf16.mxu0 %v5952_v0 }
 0xa10   : > { %5141 = vmatprep.subr.bf16.mxu0 %v5450_v8 }
 0xa13   : > { %5142 = vmatpush3.bf16.msra.mxu0 %v5450_v8  ;;  %v5488_v8 = vld [vmem:[%s6929_s4 + $0x1b8] sm:$0xff]  }
 0xa14   : > { %5143 = vmatprep.subr.bf16.mxu0 %v5451_v9 }
 0xa17   : > { %5144 = vmatpush3.bf16.msra.mxu0 %v5451_v9  ;;  %v4479_v9 = vld [vmem:[%s6930_s5 + $0x2] ss:$0 sm:$0xff] }
 0xa18   : > { %5145 = vmatprep.subr.bf16.mxu0 %v5452_v11 }
 0xa1b   : > { %5146 = vmatpush3.bf16.msra.mxu0 %v5452_v11 }
 0xa1c   : > { %5147 = vmatprep.subr.bf16.mxu0 %v5453_v15 }
 0xa1f   : > { %5148 = vmatpush3.bf16.msra.mxu0 %v5453_v15 }
 0xa20   : > { %5149 = vmatprep.subr.bf16.mxu0 %v5454_v20 }
 0xa23   : > { %5150 = vmatpush3.bf16.msra.mxu0 %v5454_v20 }
 0xa24   : > { %5151 = vmatprep.subr.bf16.mxu0 %v5455_v22 }
 0xa27   : > { %5152 = vmatpush3.bf16.msra.mxu0 %v5455_v22 }
 0xa28   : > { %5153 = vmatprep.subr.bf16.mxu0 %v5456_v52 }
 0xa2b   : > { %5154 = vmatpush3.bf16.msra.mxu0 %v5456_v52 }
 0xa2c   : > { %5179 = vmatprep.subr.bf16.mxu0 %v5457_v53 }
 0xa2e   : > { %5156 = vmatmul.mubr.bf16.vlgmr.msra.gmra.mrb[20].mxu0 %v5956_v4 }
 0xa2f   : > { %5180 = vmatpush3.bf16.msra.mxu0 %v5457_v53  ;;  %5195 = vmatprep.mubr.bf16.mxu0 %v5952_v0 }
 0xa30   : > { %5181 = vmatprep.subr.bf16.mxu0 %v5458_v54 }
 0xa33   : > { %5182 = vmatpush3.bf16.msra.mxu0 %v5458_v54 }
 0xa34   : > { %5183 = vmatprep.subr.bf16.mxu0 %v5459_v33 }
 0xa37   : > { %5184 = vmatpush3.bf16.msra.mxu0 %v5459_v33 }
 0xa38   : > { %5185 = vmatprep.subr.bf16.mxu0 %v5460_v39 }
 0xa3b   : > { %5186 = vmatpush3.bf16.msra.mxu0 %v5460_v39 }
 0xa3c   : > { %5187 = vmatprep.subr.bf16.mxu0 %v5461_v47 }
 0xa3f   : > { %5188 = vmatpush3.bf16.msra.mxu0 %v5461_v47 }
 0xa40   : > { %5189 = vmatprep.subr.bf16.mxu0 %v5462_v55 }
 0xa43   : > { %5190 = vmatpush3.bf16.msra.mxu0 %v5462_v55  ;;  %v4531_v55 = vld [vmem:[%s6930_s5 + $0xa] ss:$0 sm:$0xff] }
 0xa44   : > { %5191 = vmatprep.subr.bf16.mxu0 %v5463_v56 }
 0xa47   : > { %5192 = vmatpush3.bf16.msra.mxu0 %v5463_v56 }
 0xa48   : > { %5193 = vmatprep.subr.bf16.mxu0 %v5464_v57 }
 0xa4b   : > { %5194 = vmatpush3.bf16.msra.mxu0 %v5464_v57 }
 0xa4c   : > { %5223 = vmatprep.subr.bf16.mxu0 %v5465_v58 }
 0xa4e   : > { %5196 = vmatmul.mubr.bf16.vlgmr.msra.gmra.mrb[24].mxu0 %v5956_v4 }
 0xa4f   : > { %5224 = vmatpush3.bf16.msra.mxu0 %v5465_v58  ;;  %5239 = vmatprep.mubr.bf16.mxu0 %v5952_v0 }
 0xa50   : > { %5225 = vmatprep.subr.bf16.mxu0 %v5466_v59 }
 0xa53   : > { %5226 = vmatpush3.bf16.msra.mxu0 %v5466_v59 }
 0xa54   : > { %5227 = vmatprep.subr.bf16.mxu0 %v5467_v60 }
 0xa57   : > { %5228 = vmatpush3.bf16.msra.mxu0 %v5467_v60 }
 0xa58   : > { %5229 = vmatprep.subr.bf16.mxu0 %v5468_v61 }
 0xa5b   : > { %5230 = vmatpush3.bf16.msra.mxu0 %v5468_v61 }
 0xa5c   : > { %5231 = vmatprep.subr.bf16.mxu0 %v5469_v62 }
 0xa5f   : > { %5232 = vmatpush3.bf16.msra.mxu0 %v5469_v62 }
 0xa60   : > { %5233 = vmatprep.subr.bf16.mxu0 %v5470_v3 }
 0xa63   : > { %5234 = vmatpush3.bf16.msra.mxu0 %v5470_v3 }
 0xa64   : > { %5235 = vmatprep.subr.bf16.mxu0 %v5471_v5 }
 0xa67   : > { %5236 = vmatpush3.bf16.msra.mxu0 %v5471_v5 }
 0xa68   : > { %5237 = vmatprep.subr.bf16.mxu0 %v5472_v7 }
 0xa6b   : > { %5238 = vmatpush3.bf16.msra.mxu0 %v5472_v7 }
 0xa6c   : > { %5263 = vmatprep.subr.bf16.mxu0 %v5473_v13 }
 0xa6e   : > { %5240 = vmatmul.mubr.bf16.vlgmr.msra.gmra.mrb[28].mxu0 %v5956_v4 }
 0xa6f   : > { %5264 = vmatpush3.bf16.msra.mxu0 %v5473_v13  ;;  %5279 = vmatprep.mubr.bf16.mxu0 %v5952_v0 }
 0xa70   : > { %5265 = vmatprep.subr.bf16.mxu0 %v5474_v14 }
 0xa73   : > { %5266 = vmatpush3.bf16.msra.mxu0 %v5474_v14 }
 0xa74   : > { %5267 = vmatprep.subr.bf16.mxu0 %v5475_v16 }
 0xa77   : > { %5268 = vmatpush3.bf16.msra.mxu0 %v5475_v16 }
 0xa78   : > { %5269 = vmatprep.subr.bf16.mxu0 %v5476_v19 }
 0xa7b   : > { %5270 = vmatpush3.bf16.msra.mxu0 %v5476_v19 }
 0xa7c   : > { %5271 = vmatprep.subr.bf16.mxu0 %v5477_v25 }
 0xa7f   : > { %5272 = vmatpush3.bf16.msra.mxu0 %v5477_v25 }
 0xa80   : > { %5273 = vmatprep.subr.bf16.mxu0 %v5478_v26 }
 0xa83   : > { %5274 = vmatpush3.bf16.msra.mxu0 %v5478_v26 }
 0xa84   : > { %5275 = vmatprep.subr.bf16.mxu0 %v5479_v27 }
 0xa87   : > { %5276 = vmatpush3.bf16.msra.mxu0 %v5479_v27 }
 0xa88   : > { %5277 = vmatprep.subr.bf16.mxu0 %v5480_v29 }
 0xa8b   : > { %5278 = vmatpush3.bf16.msra.mxu0 %v5480_v29 }
 0xa8c   : > { %5309 = vmatprep.subr.bf16.mxu0 %v5733_v28 }
 0xa8e   : > { %5280 = vmatmul.mubr.bf16.vlgmr.msra.gmra.mrb[32].mxu0 %v5956_v4 }
 0xa8f   : > { %5311 = vmatprep.mubr.msk.bf16.mxu0 %vm5734_vm0, %v5733_v28 }
 0xa98   : > { %v1840_v2 = vpop.xlane.xlu0 %1839 }
 0xa99   : > { %5611 = vrcp.f32 %v1840_v2 }
 0xa9a   : > { %v1843_v6 = vpop.xlane.xlu1 %1842 }
 0xa9b   : > { %5613 = vrcp.f32 %v1843_v6 }
 0xaa3   : > { %v5612_v30 = vpop.eup %5611 }
 0xaa5   : > { %v5614_v32 = vpop.eup %5613 }
 0xae1   : > { %v1831_v10 = vpop.f32.mrb[16].mxu0 }
 0xae2   : > { %v5129_v31 = vpop.f32.mrb[17].mxu0  ;;  %v1846_v36 = vmul.f32 %v5612_v30, %v1831_v10  ;;  %v4617_v10 = vld [vmem:[%s6930_s5 + $0xb] ss:$0 sm:$0xff] }
 0xae3   : > { %v1834_v35 = vpop.f32.mrb[18].mxu0 }
 0xae4   : > { %v1847_v37 = vmul.f32 %v5614_v32, %v1834_v35  ;;  %v5130_v38 = vpop.f32.mrb[19].mxu0 }
 0xae6   : > { %v1848_v41 = vpack.c.bf16 %v1847_v37, %v1846_v36 }
 0xae8   : > { %5136 = vmatmul.mubr.msk.bf16.vlgmr.msra.gmra.mrb[40].mxu1 %vm942_vm1, %v1848_v41 }
 0xae9   : > { %5160 = vmatpush3.bf16.msra.mxu1 %v5481_v12  ;;  %5175 = vmatprep.mubr.bf16.mxu1 %v5952_v0  ;;  %v4565_v12 = vld [vmem:[%s6930_s5 + $0x3] ss:$0 sm:$0xff] }
 0xaea   : > { %5161 = vmatprep.subr.bf16.mxu1 %v5482_v42 }
 0xaed   : > { %5162 = vmatpush3.bf16.msra.mxu1 %v5482_v42 }
 0xaee   : > { %5163 = vmatprep.subr.bf16.mxu1 %v5483_v45 }
 0xaf1   : > { %5164 = vmatpush3.bf16.msra.mxu1 %v5483_v45 }
 0xaf2   : > { %5165 = vmatprep.subr.bf16.mxu1 %v5484_v46 }
 0xaf5   : > { %5166 = vmatpush3.bf16.msra.mxu1 %v5484_v46 }
 0xaf6   : > { %5167 = vmatprep.subr.bf16.mxu1 %v5485_v34 }
 0xaf9   : > { %5168 = vmatpush3.bf16.msra.mxu1 %v5485_v34 }
 0xafa   : > { %5169 = vmatprep.subr.bf16.mxu1 %v5486_v48 }
 0xafd   : > { %5170 = vmatpush3.bf16.msra.mxu1 %v5486_v48 }
 0xafe   : > { %5171 = vmatprep.subr.bf16.mxu1 %v5487_v51 }
 0xb01   : > { %v5157_v11 = vpop.f32.mrb[20].mxu0  ;;  %5172 = vmatpush3.bf16.msra.mxu1 %v5487_v51 }
 0xb02   : > { %v6373_v15 = vadd.f32 %v5157_v11, %v4479_v9  ;;  %v2000_v20 = vpop.f32.mrb[21].mxu0  ;;  %5173 = vmatprep.subr.bf16.mxu1 %v5488_v8 }
 0xb03   : > { %v5158_v22 = vpop.f32.mrb[22].mxu0  ;;  %v2001_v54 = vadd.f32 %v4479_v9, %v2000_v20 }
 0xb04   : > { %v6375_v52 = vadd.f32 %v5158_v22, %v4479_v9  ;;  %v2003_v53 = vpop.f32.mrb[23].mxu0 }
 0xb05   : > { %v2004_v33 = vadd.f32 %v4479_v9, %v2003_v53  ;;  %5174 = vmatpush3.bf16.msra.mxu1 %v5488_v8  ;;  %v4505_v8 = vld [vmem:[%s6930_s5 + $0x6] ss:$0 sm:$0xff] }
 0xb06   : > { %v2016_v39 = vpack.c.bf16 %v6375_v52, %v6373_v15  ;;  %5199 = vmatprep.subr.bf16.mxu1 %v5733_v28 }
 0xb07   : > { %v2015_v47 = vpack.c.bf16 %v2004_v33, %v2001_v54 }
 0xb08   : > { %5176 = vmatmul.mubr.bf16.vlgmr.msra.gmra.mrb[44].mxu1 %v5956_v4 }
 0xb09   : > { %5201 = vmatprep.mubr.msk.bf16.mxu1 %vm5734_vm0, %v5733_v28 }
 0xb21   : > { %v5197_v56 = vpop.f32.mrb[24].mxu0 }
 0xb22   : > { %v6386_v57 = vadd.f32 %v5197_v56, %v4531_v55  ;;  %v2248_v58 = vpop.f32.mrb[25].mxu0 }
 0xb23   : > { %v5198_v59 = vpop.f32.mrb[26].mxu0  ;;  %v2249_v62 = vadd.f32 %v4531_v55, %v2248_v58 }
 0xb24   : > { %v6388_v60 = vadd.f32 %v5198_v59, %v4531_v55  ;;  %v2251_v61 = vpop.f32.mrb[27].mxu0 }
 0xb25   : > { %v2252_v3 = vadd.f32 %v4531_v55, %v2251_v61 }
 0xb26   : > { %v2264_v5 = vpack.c.bf16 %v6388_v60, %v6386_v57 }
 0xb27   : > { %v2263_v7 = vpack.c.bf16 %v2252_v3, %v2249_v62 }
 0xb41   : > { %v5241_v13 = vpop.f32.mrb[28].mxu0 }
 0xb42   : > { %v6395_v14 = vadd.f32 %v5241_v13, %v4565_v12  ;;  %v2607_v16 = vpop.f32.mrb[29].mxu0 }
 0xb43   : > { %v5242_v19 = vpop.f32.mrb[30].mxu0  ;;  %v6399_v27 = vadd.f32 %v4565_v12, %v2607_v16 }
 0xb44   : > { %v6397_v25 = vadd.f32 %v5242_v19, %v4565_v12  ;;  %v2610_v26 = vpop.f32.mrb[31].mxu0 }
 0xb45   : > { %v6401_v29 = vadd.f32 %v4565_v12, %v2610_v26 }
 0xb46   : > { %v2623_v2 = vpack.c.bf16 %v6397_v25, %v6395_v14 }
 0xb47   : > { %v2622_v6 = vpack.c.bf16 %v6401_v29, %v6399_v27 }
 0xb61   : > { %v5281_v30 = vpop.f32.mrb[32].mxu0 }
 0xb62   : > { %v2855_v31 = vpop.f32.mrb[33].mxu0  ;;  %v2864_v36 = vadd.f32 %v5281_v30, %v4617_v10 }
 0xb63   : > { %v6410_v32 = vadd.f32 %v4617_v10, %v2855_v31  ;;  %v5282_v35 = vpop.f32.mrb[34].mxu0 }
 0xb64   : > { %v2867_v37 = vadd.f32 %v5282_v35, %v4617_v10  ;;  %v2858_v38 = vpop.f32.mrb[35].mxu0 }
 0xb65   : > { %v6412_v41 = vadd.f32 %v4617_v10, %v2858_v38 }
 0xb66   : > { %v2871_v42 = vpack.c.bf16 %v2867_v37, %v2864_v36 }
 0xb67   : > { %v2870_v45 = vpack.c.bf16 %v6412_v41, %v6410_v32 }
 0xb68   : > { %5310 = vmatpush3.bf16.msra.mxu0 %v2871_v42 }
 0xb69   : > { %5323 = vmatprep.subr.bf16.mxu0 %v5733_v28 }
 0xbbb   : > { %v6417_v46 = vpop.f32.mrb[40].mxu1 }
 0xbbc   : > { %v5137_v34 = vpop.f32.mrb[41].mxu1 }
 0xbbd   : > { %v6419_v48 = vpop.f32.mrb[42].mxu1 }
 0xbbe   : > { %v5138_v51 = vpop.f32.mrb[43].mxu1 }
 0xbdb   : > { %v5177_v9 = vpop.f32.mrb[44].mxu1 }
 0xbdc   : > { %v2133_v11 = vadd.f32 %v5177_v9, %v4505_v8  ;;  %v2124_v20 = vpop.f32.mrb[45].mxu1 }
 0xbdd   : > { %v5178_v22 = vpop.f32.mrb[46].mxu1  ;;  %v2125_v33 = vadd.f32 %v4505_v8, %v2124_v20 }
 0xbde   : > { %v2136_v53 = vadd.f32 %v5178_v22, %v4505_v8  ;;  %v2127_v54 = vpop.f32.mrb[47].mxu1 }
 0xbdf   : > { %v2128_v55 = vadd.f32 %v4505_v8, %v2127_v54 }
 0xbe0   : > { %v2140_v56 = vpack.c.bf16 %v2136_v53, %v2133_v11 }
 0xbe1   : > { %v2139_v58 = vpack.c.bf16 %v2128_v55, %v2125_v33 }
 0xbe2   : > { %v2389_v38 = vsel %vm942_vm1, %v2140_v56, 0 }
 0xbe3   : > { %v2269_v59 = vsel %vm942_vm1, %v2139_v58, 0 }
 0xbe4   : > { %5200 = vmatpush3.bf16.xpose.msra.mxu1 %v2269_v59 }
 0xbe5   : > { %5205 = vmatprep.subr.bf16.mxu1 %v5733_v28 }
 0xbeb   : > { %5202 = vmatmul.mubr.msk.bf16.vlgmr.msra.gmra.mrb[48].mxu1 %vm942_vm1, %v2015_v47 }
 0xbec   : > { %5206 = vmatpush3.bf16.msra.mxu1 %v2263_v7  ;;  %5207 = vmatprep.mubr.msk.bf16.mxu1 %vm5734_vm0, %v5733_v28 }
 0xbed   : > { %5211 = vmatprep.subr.bf16.mxu1 %v5733_v28 }
 0xcbe   : > { %v2305_v61 = vpop.f32.mrb[48].mxu1 }
 0xcbf   : > { %v2306_v62 = vadd.f32 %v6102_v23, %v2305_v61  ;;  %v5203_v3 = vpop.f32.mrb[49].mxu1  ;;  %v5490_v61 = vld [vmem:[%s6929_s4 + $0x1c8] sm:$0xff]  }
 0xcc0   : > { %v2308_v12 = vpop.f32.mrb[50].mxu1  ;;  %v5492_v3 = vld [vmem:[%s6929_s4 + $0x1d8] sm:$0xff]  }
 0xcc1   : > { %v2309_v13 = vadd.f32 %v6102_v23, %v2308_v12  ;;  %v5204_v16 = vpop.f32.mrb[51].mxu1  ;;  %v2312_v19 = vsel %vm990_vm2, %v2306_v62, -inf  ;;  %v5493_v12 = vld [vmem:[%s6929_s4 + $0x1e0] sm:$0xff]  }
 0xcc2   : > { %2313 = vmax.xlane.f32.xlu0 %v2312_v19  ;;  %v5496_v16 = vld [vmem:[%s6929_s4 + $0x1f8] sm:$0xff]  }
 0xcc3   : > { %v2315_v26 = vsel %vm990_vm2, %v2309_v13, -inf }
 0xcc4   : > { %2316 = vmax.xlane.f32.xlu1 %v2315_v26 }
 0xd4f   : > { %v2314_v47 = vpop.xlane.xlu0 %2313 }
 0xd50   : > { %v2318_v7 = vsub.f32 %v2306_v62, %v2314_v47  ;;  %v5491_v62 = vld [vmem:[%s6929_s4 + $0x1d0] sm:$0xff]  }
 0xd51   : > { %v2317_v10 = vpop.xlane.xlu1 %2316 }
 0xd52   : > { %v2320_v30 = vmul.f32 1.442695, %v2318_v7  ;;  %v2319_v31 = vsub.f32 %v2309_v13, %v2317_v10  ;;  %v5495_v13 = vld [vmem:[%s6929_s4 + $0x1f0] sm:$0xff]   ;;  %v4591_v10 = vld [vmem:[%s6930_s5 + $0x7] ss:$0 sm:$0xff] }
 0xd54   : > { %v2322_v35 = vmul.f32 1.442695, %v2319_v31  ;;  %5615 = vpow2.f32 %v2320_v30 }
 0xd56   : > { %5617 = vpow2.f32 %v2322_v35 }
 0xd5e   : > { %v6434_v36 = vpop.eup %5615 }
 0xd60   : > { %v6436_v37 = vpop.eup %5617 }
 0xd61   : > { %v2324_v23 = vpack.c.bf16 %v6436_v37, %v6434_v36 }
 0xd63   : > { %5208 = vmatmul.mubr.msk.bf16.vlgmr.msra.gmra.mrb[52].mxu1 %vm990_vm2, %v2324_v23 }
 0xd64   : > { %5212 = vmatpush3.bf16.xpose.msra.mxu1 %v2389_v38  ;;  %5213 = vmatprep.mubr.msk.bf16.mxu1 %vm5734_vm0, %v5733_v28 }
 0xd65   : > { %5217 = vmatprep.subr.bf16.mxu1 %v5733_v28 }
 0xd6b   : > { %5214 = vmatmul.mubr.msk.bf16.vlgmr.msra.gmra.mrb[56].mxu1 %vm942_vm1, %v2016_v39 }
 0xd6c   : > { %5218 = vmatpush3.bf16.msra.mxu1 %v2264_v5  ;;  %5219 = vmatprep.mubr.msk.bf16.mxu1 %vm5734_vm0, %v5733_v28  ;;  %v5489_v5 = vld [vmem:[%s6929_s4 + $0x1c0] sm:$0xff]  }
 0xd6d   : > { %5243 = vmatprep.subr.bf16.mxu1 %v5489_v5 }
 0xe36   : > { %v6454_v42 = vpop.f32.mrb[52].mxu1 }
 0xe37   : > { %v5209_v34 = vpop.f32.mrb[53].mxu1 }
 0xe38   : > { %v6456_v51 = vpop.f32.mrb[54].mxu1 }
 0xe39   : > { %v5210_v8 = vpop.f32.mrb[55].mxu1 }
 0xe3e   : > { %v2425_v9 = vpop.f32.mrb[56].mxu1 }
 0xe3f   : > { %v2426_v11 = vadd.f32 %v6133_v50, %v2425_v9  ;;  %v5215_v20 = vpop.f32.mrb[57].mxu1 }
 0xe40   : > { %v2428_v15 = vpop.f32.mrb[58].mxu1 }
 0xe41   : > { %v2429_v52 = vadd.f32 %v6133_v50, %v2428_v15  ;;  %v5216_v39 = vpop.f32.mrb[59].mxu1  ;;  %v2432_v57 = vsel %vm990_vm2, %v2426_v11, -inf }
 0xe42   : > { %2433 = vmax.xlane.f32.xlu0 %v2432_v57 }
 0xe43   : > { %v2435_v60 = vsel %vm990_vm2, %v2429_v52, -inf }
 0xe44   : > { %2436 = vmax.xlane.f32.xlu1 %v2435_v60 }
 0xecf   : > { %v2434_v22 = vpop.xlane.xlu0 %2433 }
 0xed0   : > { %v2438_v53 = vsub.f32 %v2426_v11, %v2434_v22 }
 0xed1   : > { %v2437_v54 = vpop.xlane.xlu1 %2436 }
 0xed2   : > { %v2440_v33 = vmul.f32 1.442695, %v2438_v53  ;;  %v2439_v55 = vsub.f32 %v2429_v52, %v2437_v54  ;;  %v5663_v52 = vld [vmem:[%s6099_s21] ss:$0 sm:$0xff] }
 0xed4   : > { %v2442_v56 = vmul.f32 1.442695, %v2439_v55  ;;  %5619 = vpow2.f32 %v2440_v33 }
 0xed6   : > { %5621 = vpow2.f32 %v2442_v56 }
 0xede   : > { %v6465_v50 = vpop.eup %5619 }
 0xee0   : > { %v6467_v58 = vpop.eup %5621 }
 0xee1   : > { %v2444_v59 = vpack.c.bf16 %v6467_v58, %v6465_v50 }
 0xee3   : > { %5220 = vmatmul.mubr.msk.bf16.vlgmr.msra.gmra.mrb[60].mxu1 %vm990_vm2, %v2444_v59 }
 0xee4   : > { %5244 = vmatpush3.bf16.msra.mxu1 %v5489_v5  ;;  %5259 = vmatprep.mubr.bf16.mxu1 %v5952_v0  ;;  %v5494_v0 = vld [vmem:[%s6929_s4 + $0x1e8] sm:$0xff]  }
 0xee5   : > { %5245 = vmatprep.subr.bf16.mxu1 %v5490_v61 }
 0xee8   : > { %5246 = vmatpush3.bf16.msra.mxu1 %v5490_v61 }
 0xee9   : > { %5247 = vmatprep.subr.bf16.mxu1 %v5491_v62 }
 0xeec   : > { %5248 = vmatpush3.bf16.msra.mxu1 %v5491_v62  ;;  %v5497_v62 = vld [vmem:[%s6931_s6 + $0x30] sm:$0xff]  }
 0xeed   : > { %5249 = vmatprep.subr.bf16.mxu1 %v5492_v3 }
 0xef0   : > { %5250 = vmatpush3.bf16.msra.mxu1 %v5492_v3  ;;  %v5498_v3 = vld [vmem:[%s6931_s6 + $0x38] sm:$0xff]  }
 0xef1   : > { %5251 = vmatprep.subr.bf16.mxu1 %v5493_v12 }
 0xef4   : > { %5252 = vmatpush3.bf16.msra.mxu1 %v5493_v12 }
 0xef5   : > { %5253 = vmatprep.subr.bf16.mxu1 %v5494_v0 }
 0xef8   : > { %5254 = vmatpush3.bf16.msra.mxu1 %v5494_v0 }
 0xef9   : > { %5255 = vmatprep.subr.bf16.mxu1 %v5495_v13 }
 0xefc   : > { %5256 = vmatpush3.bf16.msra.mxu1 %v5495_v13 }
 0xefd   : > { %5257 = vmatprep.subr.bf16.mxu1 %v5496_v16 }
 0xf00   : > { %5258 = vmatpush3.bf16.msra.mxu1 %v5496_v16 }
 0xf01   : > { %5283 = vmatprep.subr.bf16.mxu1 %v5733_v28 }
 0xf03   : > { %5260 = vmatmul.mubr.bf16.vlgmr.msra.gmra.mrb[64].mxu1 %v5956_v4 }
 0xf04   : > { %5285 = vmatprep.mubr.msk.bf16.mxu1 %vm5734_vm0, %v5733_v28 }
 0xfb6   : > { %v6498_v19 = vpop.f32.mrb[60].mxu1 }
 0xfb7   : > { %v5221_v26 = vpop.f32.mrb[61].mxu1 }
 0xfb8   : > { %v6500_v47 = vpop.f32.mrb[62].mxu1 }
 0xfb9   : > { %v5222_v7 = vpop.f32.mrb[63].mxu1 }
 0xfd6   : > { %v5261_v30 = vpop.f32.mrb[64].mxu1 }
 0xfd7   : > { %v6505_v31 = vadd.f32 %v5261_v30, %v4591_v10  ;;  %v2731_v35 = vpop.f32.mrb[65].mxu1 }
 0xfd8   : > { %v5262_v23 = vpop.f32.mrb[66].mxu1  ;;  %v2732_v34 = vadd.f32 %v4591_v10, %v2731_v35 }
 0xfd9   : > { %v2743_v4 = vadd.f32 %v5262_v23, %v4591_v10  ;;  %v2734_v38 = vpop.f32.mrb[67].mxu1 }
 0xfda   : > { %v2735_v8 = vadd.f32 %v4591_v10, %v2734_v38 }
 0xfdb   : > { %v2747_v9 = vpack.c.bf16 %v2743_v4, %v6505_v31 }
 0xfdc   : > { %v2746_v11 = vpack.c.bf16 %v2735_v8, %v2732_v34 }
 0xfdd   : > { %v3052_v4 = vsel %vm942_vm1, %v2747_v9, 0 }
 0xfde   : > { %v2876_v20 = vsel %vm942_vm1, %v2746_v11, 0 }
 0xfdf   : > { %5284 = vmatpush3.bf16.xpose.msra.mxu1 %v2876_v20  ;;  %v5664_v20 = vld [vmem:[%s6099_s21 + $0x1] ss:$0 sm:$0xff] }
 0xfe0   : > { %5289 = vmatprep.subr.bf16.mxu1 %v5733_v28 }
 0xfe6   : > { %5286 = vmatmul.mubr.msk.bf16.vlgmr.msra.gmra.mrb[68].mxu1 %vm942_vm1, %v2622_v6 }
 0xfe7   : > { %5290 = vmatpush3.bf16.msra.mxu1 %v2870_v45  ;;  %5291 = vmatprep.mubr.msk.bf16.mxu1 %vm5734_vm0, %v5733_v28 }
 0xfe8   : > { %5295 = vmatprep.subr.bf16.mxu1 %v5733_v28 }
0x10b9   : > { %v2912_v15 = vpop.f32.mrb[68].mxu1 }
0x10ba   : > { %v2913_v39 = vadd.f32 %v5663_v52, %v2912_v15  ;;  %v5287_v57 = vpop.f32.mrb[69].mxu1 }
0x10bb   : > { %v2915_v60 = vpop.f32.mrb[70].mxu1 }
0x10bc   : > { %v2916_v5 = vadd.f32 %v5663_v52, %v2915_v60  ;;  %v5288_v22 = vpop.f32.mrb[71].mxu1  ;;  %v2919_v27 = vsel %vm990_vm2, %v2913_v39, -inf }
0x10bd   : > { %2920 = vmax.xlane.f32.xlu0 %v2919_v27 }
0x10be   : > { %v2922_v29 = vsel %vm990_vm2, %v2916_v5, -inf }
0x10bf   : > { %2923 = vmax.xlane.f32.xlu1 %v2922_v29 }
0x114a   : > { %v2921_v6 = vpop.xlane.xlu0 %2920 }
0x114b   : > { %v2925_v32 = vsub.f32 %v2913_v39, %v2921_v6 }
0x114c   : > { %v2924_v41 = vpop.xlane.xlu1 %2923 }
0x114d   : > { %v2927_v45 = vmul.f32 1.442695, %v2925_v32  ;;  %v2926_v53 = vsub.f32 %v2916_v5, %v2924_v41 }
0x114f   : > { %5623 = vpow2.f32 %v2927_v45  ;;  %v2929_v54 = vmul.f32 1.442695, %v2926_v53 }
0x1151   : > { %5625 = vpow2.f32 %v2929_v54 }
0x1159   : > { %v5624_v33 = vpop.eup %5623 }
0x115a   : > { %v2976_v55 = vsel %vm990_vm2, %v5624_v33, 0.0 }
0x115b   : > { %v5626_v56 = vpop.eup %5625  ;;  %2977 = vadd.xlane.f32.xlu0 %v2976_v55  ;;  %v1051_v55 = vsel %vm990_vm2, %v6110_v44, 0.0  ;;  %v2489_v44 = vsel %vm990_vm2, %v6465_v50, 0.0 }
0x115c   : > { %v2979_v59 = vsel %vm990_vm2, %v5626_v56, 0.0  ;;  %v2931_v61 = vpack.c.bf16 %v5626_v56, %v5624_v33  ;;  %v1048_v33 = vsel %vm990_vm2, %v6108_v43, 0.0  ;;  %v2369_v56 = vsel %vm990_vm2, %v6434_v36, 0.0 }
0x115d   : > { %2980 = vadd.xlane.f32.xlu1 %v2979_v59  ;;  %v2372_v59 = vsel %vm990_vm2, %v6436_v37, 0.0  ;;  %v1178_v43 = vsel %vm990_vm2, %v6144_v1, 0.0  ;;  %v2492_v36 = vsel %vm990_vm2, %v6467_v58, 0.0  ;;  %v5499_v37 = vld [vmem:[%s6931_s6] sm:$0xff]  }
0x115e   : > { %5292 = vmatmul.mubr.msk.bf16.vlgmr.msra.gmra.mrb[72].mxu1 %vm990_vm2, %v2931_v61  ;;  %v1175_v61 = vsel %vm990_vm2, %v6142_v63, 0.0  ;;  %v5500_v63 = vld [vmem:[%s6931_s6 + $0x8] sm:$0xff]  }
0x115f   : > { %5299 = vmatprep.mubr.msk.bf16.mxu1 %vm5734_vm0, %v5733_v28  ;;  %5296 = vmatpush3.bf16.msra.mxu1 %v5497_v62 }
0x1160   : > { %5297 = vmatprep.subr.bf16.mxu1 %v5733_v28 }
0x1163   : > { %5298 = vmatpush3.bf16.msra.mxu1 %v5498_v3 }
0x1164   : > { %5303 = vmatprep.subr.bf16.mxu1 %v5733_v28 }
0x11e8   : > { %v2978_v12 = vpop.xlane.xlu0 %2977 }
0x11e9   : > { %5627 = vrcp.f32 %v2978_v12 }
0x11ea   : > { %v2981_v0 = vpop.xlane.xlu1 %2980 }
0x11eb   : > { %5629 = vrcp.f32 %v2981_v0 }
0x11f3   : > { %v5628_v16 = vpop.eup %5627 }
0x11f5   : > { %v5630_v7 = vpop.eup %5629 }
0x1231   : > { %v2969_v13 = vpop.f32.mrb[72].mxu1 }
0x1232   : > { %v5293_v26 = vpop.f32.mrb[73].mxu1  ;;  %v2984_v30 = vmul.f32 %v5628_v16, %v2969_v13 }
0x1233   : > { %v2972_v10 = vpop.f32.mrb[74].mxu1 }
0x1234   : > { %v2985_v31 = vmul.f32 %v5630_v7, %v2972_v10  ;;  %v5294_v35 = vpop.f32.mrb[75].mxu1 }
0x1236   : > { %v2986_v23 = vpack.c.bf16 %v2985_v31, %v2984_v30 }
0x1238   : > { %5300 = vmatmul.mubr.msk.bf16.vlgmr.msra.gmra.mrb[76].mxu1 %vm942_vm1, %v2986_v23 }
0x1239   : > { %5304 = vmatpush3.bf16.xpose.msra.mxu1 %v3052_v4  ;;  %5305 = vmatprep.mubr.msk.bf16.mxu1 %vm5734_vm0, %v5733_v28 }
0x123a   : > { %5315 = vmatprep.subr.bf16.mxu1 %v5733_v28 }
0x1240   : > { %5306 = vmatmul.mubr.msk.bf16.vlgmr.msra.gmra.mrb[80].mxu1 %vm942_vm1, %v2623_v2 }
0x1241   : > { %5316 = vmatpush3.bf16.msra.mxu1 %v5497_v62  ;;  %5319 = vmatprep.mubr.msk.bf16.mxu1 %vm5734_vm0, %v5733_v28 }
0x1242   : > { %5317 = vmatprep.subr.bf16.mxu1 %v5733_v28 }
0x1245   : > { %5318 = vmatpush3.bf16.msra.mxu1 %v5498_v3 }
0x1246   : > { %5331 = vmatprep.subr.bf16.mxu1 %v5733_v28 }
0x130b   : > { %v6549_v38 = vpop.f32.mrb[76].mxu1 }
0x130c   : > { %v5301_v34 = vpop.f32.mrb[77].mxu1 }
0x130d   : > { %v6551_v8 = vpop.f32.mrb[78].mxu1 }
0x130e   : > { %v5302_v9 = vpop.f32.mrb[79].mxu1 }
0x1313   : > { %v3088_v11 = vpop.f32.mrb[80].mxu1 }
0x1314   : > { %v3089_v14 = vadd.f32 %v5664_v20, %v3088_v11  ;;  %v5307_v25 = vpop.f32.mrb[81].mxu1 }
0x1315   : > { %v3091_v2 = vpop.f32.mrb[82].mxu1 }
0x1316   : > { %v3092_v15 = vadd.f32 %v5664_v20, %v3091_v2  ;;  %v5308_v52 = vpop.f32.mrb[83].mxu1  ;;  %v3095_v39 = vsel %vm990_vm2, %v3089_v14, -inf }
0x1317   : > { %3096 = vmax.xlane.f32.xlu0 %v3095_v39 }
0x1318   : > { %v3098_v57 = vsel %vm990_vm2, %v3092_v15, -inf }
0x1319   : > { %3099 = vmax.xlane.f32.xlu1 %v3098_v57 }
0x13a4   : > { %v3097_v60 = vpop.xlane.xlu0 %3096 }
0x13a5   : > { %v3101_v5 = vsub.f32 %v3089_v14, %v3097_v60 }
0x13a6   : > { %v3100_v22 = vpop.xlane.xlu1 %3099 }
0x13a7   : > { %v3103_v27 = vmul.f32 1.442695, %v3101_v5  ;;  %v3102_v29 = vsub.f32 %v3092_v15, %v3100_v22 }
0x13a9   : > { %5631 = vpow2.f32 %v3103_v27  ;;  %v3105_v6 = vmul.f32 1.442695, %v3102_v29  ;;  %v5501_v29 = vld [vmem:[%s6931_s6 + $0x20] sm:$0xff]  }
0x13ab   : > { %5633 = vpow2.f32 %v3105_v6 }
0x13b3   : > { %v5632_v32 = vpop.eup %5631 }
0x13b4   : > { %v3152_v41 = vsel %vm990_vm2, %v5632_v32, 0.0 }
0x13b5   : > { %v5634_v45 = vpop.eup %5633  ;;  %3153 = vadd.xlane.f32.xlu0 %v3152_v41 }
0x13b6   : > { %v3155_v53 = vsel %vm990_vm2, %v5634_v45, 0.0  ;;  %v3107_v54 = vpack.c.bf16 %v5634_v45, %v5632_v32 }
0x13b7   : > { %3156 = vadd.xlane.f32.xlu1 %v3155_v53 }
0x13b8   : > { %5312 = vmatmul.mubr.msk.bf16.vlgmr.msra.gmra.mrb[36].mxu0 %vm990_vm2, %v3107_v54 }
0x13b9   : > { %1049 = vadd.xlane.f32.xlu0 %v1048_v33  ;;  %5327 = vmatprep.mubr.msk.bf16.mxu0 %vm5734_vm0, %v5733_v28 }
0x13ba   : > { %5324 = vmatpush3.bf16.msra.mxu0 %v5499_v37 }
0x13bb   : > { %1052 = vadd.xlane.f32.xlu1 %v1051_v55  ;;  %5325 = vmatprep.subr.bf16.mxu0 %v5733_v28 }
0x13bd   : > { %2370 = vadd.xlane.f32.xlu0 %v2369_v56 }
0x13be   : > { %5326 = vmatpush3.bf16.msra.mxu0 %v5500_v63 }
0x13bf   : > { %2373 = vadd.xlane.f32.xlu1 %v2372_v59  ;;  %5339 = vmatprep.subr.bf16.mxu0 %v5733_v28 }
0x13c1   : > { %1176 = vadd.xlane.f32.xlu0 %v1175_v61 }
0x13c3   : > { %1179 = vadd.xlane.f32.xlu1 %v1178_v43 }
0x13c5   : > { %2490 = vadd.xlane.f32.xlu0 %v2489_v44 }
0x13c7   : > { %2493 = vadd.xlane.f32.xlu1 %v2492_v36 }
0x1442   : > { %v3154_v1 = vpop.xlane.xlu0 %3153 }
0x1444   : > { %v3157_v50 = vpop.xlane.xlu1 %3156 }
0x1446   : > { %v1050_v62 = vpop.xlane.xlu0 %1049 }
0x1447   : > { %5635 = vrcp.f32 %v1050_v62 }
0x1448   : > { %v1053_v58 = vpop.xlane.xlu1 %1052 }
0x1449   : > { %5637 = vrcp.f32 %v1053_v58  ;;  %v5666_v58 = vld [vmem:[%s5869_s18 + $0x8] sm:$0xff] }
0x144a   : > { %v2371_v3 = vpop.xlane.xlu0 %2370 }
0x144b   : > { %5639 = vrcp.f32 %v2371_v3 }
0x144c   : > { %v2374_v12 = vpop.xlane.xlu1 %2373 }
0x144d   : > { %5641 = vrcp.f32 %v2374_v12 }
0x144e   : > { %v1177_v0 = vpop.xlane.xlu0 %1176 }
0x144f   : > { %5643 = vrcp.f32 %v1177_v0 }
0x1450   : > { %v1180_v13 = vpop.xlane.xlu1 %1179 }
0x1451   : > { %v5636_v16 = vpop.eup %5635  ;;  %5645 = vrcp.f32 %v1180_v13 }
0x1452   : > { %v2491_v26 = vpop.xlane.xlu0 %2490  ;;  %v1056_v10 = vmul.f32 %v5636_v16, %v6128_v49 }
0x1453   : > { %v5638_v7 = vpop.eup %5637  ;;  %5647 = vrcp.f32 %v2491_v26 }
0x1454   : > { %v1057_v30 = vmul.f32 %v5638_v7, %v6130_v40  ;;  %v2494_v31 = vpop.xlane.xlu1 %2493 }
0x1455   : > { %v5640_v35 = vpop.eup %5639  ;;  %5649 = vrcp.f32 %v2494_v31 }
0x1456   : > { %v1058_v23 = vpack.c.bf16 %v1057_v30, %v1056_v10  ;;  %v2377_v34 = vmul.f32 %v5640_v35, %v6454_v42  ;;  %5651 = vrcp.f32 %v3154_v1  ;;  %v5667_v10 = vld [vmem:[%s5869_s18 + $0x10] sm:$0xff] }
0x1457   : > { %v5642_v4 = vpop.eup %5641  ;;  %5653 = vrcp.f32 %v3157_v50 }
0x1458   : > { %v2378_v9 = vmul.f32 %v5642_v4, %v6456_v51  ;;  %5328 = vmatmul.mubr.msk.bf16.vlgmr.msra.gmra.mrb[40].mxu0 %vm942_vm1, %v1058_v23  ;;  %v5668_v23 = vld [vmem:[%s5869_s18 + $0x18] sm:$0xff] }
0x1459   : > { %v5644_v11 = vpop.eup %5643  ;;  %5340 = vmatpush3.bf16.msra.mxu0 %v5499_v37  ;;  %5343 = vmatprep.mubr.msk.bf16.mxu0 %vm5734_vm0, %v5733_v28 }
0x145a   : > { %5341 = vmatprep.subr.bf16.mxu0 %v5733_v28  ;;  %v2379_v49 = vpack.c.bf16 %v2378_v9, %v2377_v34  ;;  %v1183_v20 = vmul.f32 %v5644_v11, %v6175_v18 }
0x145b   : > { %v5646_v40 = vpop.eup %5645 }
0x145c   : > { %v1184_v14 = vmul.f32 %v5646_v40, %v6177_v21 }
0x145d   : > { %v5648_v25 = vpop.eup %5647  ;;  %5342 = vmatpush3.bf16.msra.mxu0 %v5500_v63 }
0x145e   : > { %v1185_v42 = vpack.c.bf16 %v1184_v14, %v1183_v20  ;;  %v2497_v51 = vmul.f32 %v5648_v25, %v6498_v19  ;;  %v5503_v20 = vld [vmem:[%s6935_s10] ss:$16 sps:$4 sm:$0xff]   ;;  %v5505_v14 = vld [vmem:[%s6935_s10 + $0x4] ss:$16 sps:$4 sm:$0xff]   ;;  %v5506_v25 = vld [vmem:[%s6935_s10 + $0x8] ss:$16 sps:$4 sm:$0xff]  }
0x145f   : > { %v5650_v2 = vpop.eup %5649  ;;  %3708 = vmatprep.subr.bf16.mxu0 %v5505_v14 }
0x1460   : > { %v2498_v15 = vmul.f32 %v5650_v2, %v6500_v47  ;;  %5344 = vmatmul.mubr.msk.bf16.vlgmr.msra.gmra.mrb[44].mxu0 %vm942_vm1, %v1185_v42  ;;  %v5652_v57 = vpop.eup %5651  ;;  %v5502_v47 = vld [vmem:[%s6931_s6 + $0x28] sm:$0xff]   ;;  %v5511_v2 = vld [vmem:[%s6935_s10 + $0x24] ss:$16 sps:$4 sm:$0xff]  }
0x1461   : > { %v5654_v5 = vpop.eup %5653  ;;  %v5508_v42 = vld [vmem:[%s6935_s10 + $0xc] ss:$16 sps:$4 sm:$0xff]   ;;  %3709 = vmatpush1.bf16.msra.mxu0 %v5503_v20 }
0x1462   : > { %v2499_v52 = vpack.c.bf16 %v2498_v15, %v2497_v51  ;;  %v5514_v51 = vld [vmem:[%s6935_s10 + $0x2c] ss:$16 sps:$4 sm:$0xff]   ;;  %v5509_v15 = vld [vmem:[%s6935_s10 + $0x20] ss:$16 sps:$4 sm:$0xff]   ;;  %3710 = vmatprep.subr.bf16.mxu0 %v5511_v2 }
0x1463   : > { %v4647_v2 = vld [vmem:[%s6933_s8] ss:$0 sm:$0xff] }
0x1465   : > { %3711 = vmatpush1.bf16.msra.mxu0 %v5509_v15 }
0x148b   : > { %v3145_v39 = vpop.f32.mrb[36].mxu0 }
0x148c   : > { %v5313_v60 = vpop.f32.mrb[37].mxu0  ;;  %v3160_v22 = vmul.f32 %v5652_v57, %v3145_v39 }
0x148d   : > { %v3148_v18 = vpop.f32.mrb[38].mxu0 }
0x148e   : > { %v3161_v21 = vmul.f32 %v5654_v5, %v3148_v18  ;;  %v5314_v27 = vpop.f32.mrb[39].mxu0 }
0x1490   : > { %v3162_v19 = vpack.c.bf16 %v3161_v21, %v3160_v22 }
0x1492   : > { %5320 = vmatmul.mubr.msk.bf16.vlgmr.msra.gmra.mrb[84].mxu1 %vm942_vm1, %v3162_v19 }
0x1493   : > { %5332 = vmatpush3.bf16.msra.mxu1 %v5501_v29  ;;  %5335 = vmatprep.mubr.msk.bf16.mxu1 %vm5734_vm0, %v5733_v28 }
0x1494   : > { %5333 = vmatprep.subr.bf16.mxu1 %v5733_v28 }
0x1497   : > { %5334 = vmatpush3.bf16.msra.mxu1 %v5502_v47 }
0x1498   : > { %5347 = vmatprep.subr.bf16.mxu1 %v5733_v28 }
0x149a   : > { %5336 = vmatmul.mubr.msk.bf16.vlgmr.msra.gmra.mrb[88].mxu1 %vm942_vm1, %v2379_v49 }
0x149b   : > { %5348 = vmatpush3.bf16.msra.mxu1 %v5501_v29  ;;  %5351 = vmatprep.mubr.msk.bf16.mxu1 %vm5734_vm0, %v5733_v28 }
0x149c   : > { %5349 = vmatprep.subr.bf16.mxu1 %v5733_v28 }
0x149f   : > { %5350 = vmatpush3.bf16.msra.mxu1 %v5502_v47 }
0x14a0   : > { %3761 = vmatprep.subr.bf16.mxu1 %v5508_v42 }
0x14a2   : > { %5352 = vmatmul.mubr.msk.bf16.vlgmr.msra.gmra.mrb[92].mxu1 %vm942_vm1, %v2499_v52  ;;  %v5512_v52 = vld [vmem:[%s6935_s10 + $0x28] ss:$16 sps:$4 sm:$0xff]  }
0x14a3   : > { %3762 = vmatpush1.bf16.msra.mxu1 %v5506_v25 }
0x14a4   : > { %3763 = vmatprep.subr.bf16.mxu1 %v5514_v51 }
0x14a7   : > { %3764 = vmatpush1.bf16.msra.mxu1 %v5512_v52 }
0x152b   : > { %v3256_v6 = vpop.f32.mrb[40].mxu0 }
0x152c   : > { %v3257_v32 = vadd.f32 %v3256_v6, %v6226_v17  ;;  %v5329_v41 = vpop.f32.mrb[41].mxu0  ;;  %v4646_v17 = vld [vmem:[%s6932_s7] ss:$0 sm:$0xff] }
0x152d   : > { %v3259_v45 = vpop.f32.mrb[42].mxu0  ;;  %v3420_v30 = vadd.f32 %v5667_v10, %v4646_v17  ;;  %v3421_v4 = vadd.f32 %v5668_v23, %v4646_v17  ;;  %v5551_v10 = vld [vmem:[%s6937_s12 + $0x40] sm:$0xff]  }
0x152e   : > { %v3260_v53 = vadd.f32 %v3259_v45, %v6228_v24  ;;  %v5330_v54 = vpop.f32.mrb[43].mxu0  ;;  %v5665_v24 = vld [vmem:[%s5869_s18] sm:$0xff]  ;;  %s475_s18 = sand.u32 1, %s5723_s30  }
0x152f   : > { %v3418_v1 = vadd.f32 %v5665_v24, %v4646_v17  ;;  %v5517_v54 = vld [vmem:[%s6935_s10 + $0x44] ss:$16 sps:$4 sm:$0xff]   ;;  %v5538_v24 = vld [vmem:[%s6935_s10 + $0xac] ss:$16 sps:$4 sm:$0xff]   ;;  %s4297_s1 = sshll.u32 %s475_s18, 5  ;;  %s6884_s20 = scalar_lea.sflag [#allocation3], %s475_s18 }
0x1530   : > { %3712 = vmatprep.subr.bf16.mxu0 %v5517_v54  ;;  %s477_s0 = scalar_lea.vmem [#allocation2], %s4297_s1  ;;  %s5675_s1 = scalar_lea.vmem %s5674_s27, 1024 }
0x1531   : > { %s4222_s15 = sshll.u32 %s477_s0, 4  ;;  %s6874_s15 = int_to_ptr.vmem [resolvable:$true] %s4222_s15 }
0x1532   : > { %s5669_s17 = scalar_lea.vmem %s6874_s15, 512  ;;  %p5676_p0 = scmp.lt.s32.totalorder %s6874_s15, %s5674_s27 }
0x1533   : > { %v3358_v33 = vpop.f32.mrb[44].mxu0  ;;  %p5670_p11 = scmp.ne.s32.totalorder %s6874_s15, %s5669_s17  ;;  %p5677_p1 = scmp.lt.s32.totalorder %s5675_s1, %s5669_s17 }
0x1534   : > { %v3359_v55 = vadd.f32 %v3358_v33, %v6417_v46  ;;  %v5345_v56 = vpop.f32.mrb[45].mxu0  ;;  %v5520_v33 = vld [vmem:[%s6935_s10 + $0x4c] ss:$16 sps:$4 sm:$0xff]  }
0x1535   : > { %v3361_v59 = vpop.f32.mrb[46].mxu0  ;;  %v5518_v56 = vld [vmem:[%s6935_s10 + $0x48] ss:$16 sps:$4 sm:$0xff]   ;;  %3765 = vmatprep.subr.bf16.mxu1 %v5520_v33  ;;  %p5671_p12 = pnand %p5670_p11, %p5852_p5  ;;  %p5678_p2 = por %p5677_p1, %p5676_p0 }
0x1536   : > { %v3362_v28 = vadd.f32 %v3361_v59, %v6419_v48  ;;  %v5346_v61 = vpop.f32.mrb[47].mxu0  ;;  %v3419_v48 = vadd.f32 %v5666_v58, %v4646_v17  ;;  %3766 = vmatpush1.bf16.msra.mxu1 %v5518_v56  ;;  %v5523_v59 = vld [vmem:[%s6935_s10 + $0x64] ss:$16 sps:$4 sm:$0xff]   ;;  %v5530_v17 = vld [vmem:[%s6935_s10 + $0x88] ss:$16 sps:$4 sm:$0xff]  }
0x1537   : > { %v5521_v61 = vld [vmem:[%s6935_s10 + $0x60] ss:$16 sps:$4 sm:$0xff]   ;;  %v5557_v33 = vld [vmem:[%s6937_s12 + $0x8] sm:$0xff]   ;;  %p5672_p13 = pneg %p5671_p12 }
0x1538   : > { %v5539_v58 = vld [vmem:[%s6935_s10 + $0xc0] ss:$16 sps:$4 sm:$0xff]  }
0x1539   : > { %v5560_v56 = vld [vmem:[%s6937_s12 + $0xd0] sm:$0xff]   ;;  %p5679_p3 = pnand %p5678_p2, %p5672_p13 }
0x1565   : > { %v3200_v43 = vpop.f32.mrb[84].mxu1 }
0x1566   : > { %v5321_v44 = vpop.f32.mrb[85].mxu1 }
0x1567   : > { %v3203_v36 = vpop.f32.mrb[86].mxu1  ;;  %v5529_v44 = vld [vmem:[%s6935_s10 + $0x84] ss:$16 sps:$4 sm:$0xff]  }
0x1568   : > { %v5322_v37 = vpop.f32.mrb[87].mxu1 }
0x1569   : > { %v5527_v37 = vld [vmem:[%s6935_s10 + $0x80] ss:$16 sps:$4 sm:$0xff]  }
0x156d   : > { %v3312_v63 = vpop.f32.mrb[88].mxu1 }
0x156e   : > { %v3313_v46 = vadd.f32 %v3312_v63, %v6549_v38  ;;  %v5337_v50 = vpop.f32.mrb[89].mxu1  ;;  %v5535_v63 = vld [vmem:[%s6935_s10 + $0xa4] ss:$16 sps:$4 sm:$0xff]  }
0x156f   : > { %v3315_v62 = vpop.f32.mrb[90].mxu1  ;;  %v5541_v50 = vld [vmem:[%s6935_s10 + $0xc4] ss:$16 sps:$4 sm:$0xff]  }
0x1570   : > { %v3319_v3 = vadd.f32 %v3313_v46, %v3257_v32  ;;  %v3316_v12 = vadd.f32 %v3315_v62, %v6551_v8  ;;  %v5338_v0 = vpop.f32.mrb[91].mxu1  ;;  %v5536_v46 = vld [vmem:[%s6935_s10 + $0xa8] ss:$16 sps:$4 sm:$0xff]   ;;  %v5544_v62 = vld [vmem:[%s6935_s10 + $0xcc] ss:$16 sps:$4 sm:$0xff]  }
0x1571   : > { %v5545_v0 = vld [vmem:[%s6935_s10 + $0xe0] ss:$16 sps:$4 sm:$0xff]  }
0x1572   : > { %v3320_v13 = vadd.f32 %v3316_v12, %v3260_v53  ;;  %v6625_v16 = vadd.f32 %v3418_v1, %v3319_v3  ;;  %v5533_v1 = vld [vmem:[%s6935_s10 + $0xa0] ss:$16 sps:$4 sm:$0xff]   ;;  %v5547_v3 = vld [vmem:[%s6935_s10 + $0xe4] ss:$16 sps:$4 sm:$0xff]   ;;  %v5550_v12 = vld [vmem:[%s6935_s10 + $0xec] ss:$16 sps:$4 sm:$0xff]  }
0x1574   : > { %3426 = vadd.xlane.f32.xlu0 %v6625_v16  ;;  %v6628_v26 = vadd.f32 %v3419_v48, %v3320_v13  ;;  %v5542_v48 = vld [vmem:[%s6935_s10 + $0xc8] ss:$16 sps:$4 sm:$0xff]  }
0x1575   : > { %v3402_v7 = vpop.f32.mrb[92].mxu1  ;;  %v5548_v13 = vld [vmem:[%s6935_s10 + $0xe8] ss:$16 sps:$4 sm:$0xff]  }
0x1576   : > { %v3403_v38 = vadd.f32 %v3402_v7, %v3200_v43  ;;  %3428 = vadd.xlane.f32.xlu1 %v6628_v26  ;;  %v5353_v31 = vpop.f32.mrb[93].mxu1  ;;  %v5524_v43 = vld [vmem:[%s6935_s10 + $0x68] ss:$16 sps:$4 sm:$0xff]   ;;  %v5735_v7 = vmov 0  }
0x1577   : > { %v3405_v35 = vpop.f32.mrb[94].mxu1  ;;  %3740 = vmatprep.mubr.bf16.mxu0 %v5735_v7  ;;  %3793 = vmatprep.mubr.bf16.mxu1 %v5735_v7 }
0x1578   : > { %v3409_v34 = vadd.f32 %v3403_v38, %v3359_v55  ;;  %v3406_v8 = vadd.f32 %v3405_v35, %v3203_v36  ;;  %v5354_v9 = vpop.f32.mrb[95].mxu1  ;;  %v5515_v55 = vld [vmem:[%s6935_s10 + $0x40] ss:$16 sps:$4 sm:$0xff]   ;;  %v5532_v36 = vld [vmem:[%s6935_s10 + $0x8c] ss:$16 sps:$4 sm:$0xff]  }
0x1579   : > { %3713 = vmatpush1.bf16.msra.mxu0 %v5515_v55  ;;  %v5558_v55 = vld [vmem:[%s6937_s12 + $0x88] sm:$0xff]  }
0x157a   : > { %v3410_v11 = vadd.f32 %v3406_v8, %v3362_v28  ;;  %v6633_v49 = vadd.f32 %v3420_v30, %v3409_v34  ;;  %v5526_v28 = vld [vmem:[%s6935_s10 + $0x6c] ss:$16 sps:$4 sm:$0xff]   ;;  %3714 = vmatprep.subr.bf16.mxu0 %v5523_v59  ;;  %v5552_v30 = vld [vmem:[%s6937_s12 + $0xc0] sm:$0xff]  }
0x157b   : > { %3767 = vmatprep.subr.bf16.mxu1 %v5526_v28 }
0x157c   : > { %3430 = vadd.xlane.f32.xlu0 %v6633_v49  ;;  %v6636_v40 = vadd.f32 %v3421_v4, %v3410_v11  ;;  %3768 = vmatpush1.bf16.msra.mxu1 %v5524_v43  ;;  %v5561_v43 = vld [vmem:[%s6937_s12 + $0x10] sm:$0xff]  }
0x157d   : > { %3715 = vmatpush1.bf16.msra.mxu0 %v5521_v61  ;;  %3769 = vmatprep.subr.bf16.mxu1 %v5532_v36  ;;  %v5563_v36 = vld [vmem:[%s6937_s12 + $0x58] sm:$0xff]  }
0x157e   : > { %3432 = vadd.xlane.f32.xlu1 %v6636_v40  ;;  %3716 = vmatprep.subr.bf16.mxu0 %v5529_v44  ;;  %v5562_v44 = vld [vmem:[%s6937_s12 + $0x90] sm:$0xff]  }
0x1580   : > { %3770 = vmatpush1.bf16.msra.mxu1 %v5530_v17  ;;  %v5565_v17 = vld [vmem:[%s6937_s12 + $0x18] sm:$0xff]  }
0x1581   : > { %3717 = vmatpush1.bf16.msra.mxu0 %v5527_v37  ;;  %3771 = vmatprep.subr.bf16.mxu1 %v5538_v24  ;;  %v5564_v37 = vld [vmem:[%s6937_s12 + $0xd8] sm:$0xff]   ;;  %v5567_v24 = vld [vmem:[%s6937_s12 + $0x60] sm:$0xff]  }
0x1582   : > { %3718 = vmatprep.subr.bf16.mxu0 %v5535_v63  ;;  %v5566_v63 = vld [vmem:[%s6937_s12 + $0x98] sm:$0xff]  }
0x1584   : > { %3772 = vmatpush1.bf16.msra.mxu1 %v5536_v46  ;;  %v5569_v46 = vld [vmem:[%s6937_s12 + $0x20] sm:$0xff]  }
0x1585   : > { %3719 = vmatpush1.bf16.msra.mxu0 %v5533_v1  ;;  %3773 = vmatprep.subr.bf16.mxu1 %v5544_v62  ;;  %v5568_v1 = vld [vmem:[%s6937_s12 + $0xe0] sm:$0xff]   ;;  %v5571_v62 = vld [vmem:[%s6937_s12 + $0x68] sm:$0xff]  }
0x1586   : > { %3720 = vmatprep.subr.bf16.mxu0 %v5541_v50  ;;  %v5570_v50 = vld [vmem:[%s6937_s12 + $0xa0] sm:$0xff]  }
0x1588   : > { %3774 = vmatpush1.bf16.msra.mxu1 %v5542_v48  ;;  %v5573_v48 = vld [vmem:[%s6937_s12 + $0x28] sm:$0xff]  }
0x1589   : > { %3721 = vmatpush1.bf16.msra.mxu0 %v5539_v58  ;;  %3775 = vmatprep.subr.bf16.mxu1 %v5550_v12  ;;  %v5572_v58 = vld [vmem:[%s6937_s12 + $0xe8] sm:$0xff]   ;;  %v5575_v12 = vld [vmem:[%s6937_s12 + $0x70] sm:$0xff]  }
0x158a   : > { %3722 = vmatprep.subr.bf16.mxu0 %v5547_v3  ;;  %v5574_v3 = vld [vmem:[%s6937_s12 + $0xa8] sm:$0xff]  }
0x158c   : > { %3776 = vmatpush1.bf16.msra.mxu1 %v5548_v13  ;;  %v5577_v13 = vld [vmem:[%s6937_s12 + $0x30] sm:$0xff]  }
0x158d   : > { %3723 = vmatpush1.bf16.msra.mxu0 %v5545_v0  ;;  %4927 = vmatprep.subr.bf16.mxu1 %v5552_v30  ;;  %v5576_v0 = vld [vmem:[%s6937_s12 + $0xf0] sm:$0xff]   ;;  %v5580_v30 = vld [vmem:[%s6937_s12 + $0xf8] sm:$0xff]  }
0x158e   : > { %4899 = vmatprep.subr.bf16.mxu0 %v5551_v10  ;;  %v5579_v10 = vld [vmem:[%s6937_s12 + $0x78] sm:$0xff]  }
0x1601   : > { %v3427_v39 = vpop.xlane.xlu0 %3426 }
0x1602   : > { %v3434_v57 = vmul.f32 0.0078125, %v3427_v39 }
0x1603   : > { %v3429_v60 = vpop.xlane.xlu1 %3428 }
0x1604   : > { %v6664_v5 = vsub.f32 %v6625_v16, %v3434_v57  ;;  %v3435_v18 = vmul.f32 0.0078125, %v3429_v60  ;;  %v4648_v57 = vld [vmem:[%s6934_s9] ss:$0 sm:$0xff] }
0x1606   : > { %v6667_v22 = vsub.f32 %v6628_v26, %v3435_v18  ;;  %v3442_v21 = vmul.f32 %v6664_v5, %v6664_v5 }
0x1608   : > { %3446 = vadd.xlane.f32.xlu0 %v3442_v21  ;;  %v3443_v27 = vmul.f32 %v6667_v22, %v6667_v22 }
0x1609   : > { %v3431_v29 = vpop.xlane.xlu0 %3430 }
0x160a   : > { %v3436_v19 = vmul.f32 0.0078125, %v3431_v29  ;;  %3448 = vadd.xlane.f32.xlu1 %v3443_v27 }
0x160b   : > { %v3433_v47 = vpop.xlane.xlu1 %3432 }
0x160c   : > { %v6674_v6 = vsub.f32 %v6633_v49, %v3436_v19  ;;  %v3437_v32 = vmul.f32 0.0078125, %v3433_v47  ;;  %v5553_v47 = vld [vmem:[%s6937_s12] sm:$0xff]  }
0x160e   : > { %v6677_v41 = vsub.f32 %v6636_v40, %v3437_v32  ;;  %v3444_v45 = vmul.f32 %v6674_v6, %v6674_v6  ;;  %v5555_v32 = vld [vmem:[%s6937_s12 + $0x48] sm:$0xff]  }
0x1610   : > { %3450 = vadd.xlane.f32.xlu0 %v3444_v45  ;;  %v3445_v53 = vmul.f32 %v6677_v41, %v6677_v41  ;;  %v5556_v45 = vld [vmem:[%s6937_s12 + $0xc8] sm:$0xff]  }
0x1612   : > { %3452 = vadd.xlane.f32.xlu1 %v3445_v53 }
0x1695   : > { %v3447_v38 = vpop.xlane.xlu0 %3446 }
0x1696   : > { %v3454_v31 = vmul.f32 0.0078125, %v3447_v38  ;;  %v5581_v38 = vld [vmem:[%s6937_s12 + $0x38] sm:$0xff]  }
0x1697   : > { %v3449_v35 = vpop.xlane.xlu1 %3448 }
0x1698   : > { %v3458_v23 = vadd.f32 1e-06, %v3454_v31  ;;  %v3455_v4 = vmul.f32 0.0078125, %v3449_v35  ;;  %v5582_v31 = vld [vmem:[%s6937_s12 + $0xb8] sm:$0xff]   ;;  %v3528_v35 = vlaneseq }
0x169a   : > { %5655 = vrsqrt.f32 %v3458_v23  ;;  %v3459_v34 = vadd.f32 1e-06, %v3455_v4  ;;  %v3529_v23 = vshrl.u32 %v3528_v35, 7 }
0x169c   : > { %5657 = vrsqrt.f32 %v3459_v34  ;;  %v3530_v4 = vsub.s32 0, %v3529_v23  ;;  %v3538_v34 = vsub.s32 2, %v3529_v23 }
0x169d   : > { %v3451_v8 = vpop.xlane.xlu0 %3450 }
0x169e   : > { %v3456_v9 = vmul.f32 0.0078125, %v3451_v8  ;;  %v3526_v8 = vld [vmem:[%s6936_s11] sm:$0xf] }
0x169f   : > { %v3453_v11 = vpop.xlane.xlu1 %3452 }
0x16a0   : > { %v3460_v20 = vadd.f32 1e-06, %v3456_v9  ;;  %v3457_v14 = vmul.f32 0.0078125, %v3453_v11  ;;  %v3534_v9 = vsub.s32 1, %v3529_v23  ;;  %v3542_v11 = vsub.s32 3, %v3529_v23 }
0x16a2   : > { %5659 = vrsqrt.f32 %v3460_v20  ;;  %v3461_v25 = vadd.f32 1e-06, %v3457_v14  ;;  %v3531_v20 = vrot.slane %v3526_v8, %v3530_v4  ;;  %v3539_v14 = vrot.slane %v3526_v8, %v3538_v34 }
0x16a4   : > { %v5656_v42 = vpop.eup %5655  ;;  %5661 = vrsqrt.f32 %v3461_v25  ;;  %v3535_v25 = vrot.slane %v3526_v8, %v3534_v9 }
0x16a5   : > { %v3466_v51 = vmul.f32 %v5656_v42, %v6664_v5  ;;  %v5554_v5 = vld [vmem:[%s6937_s12 + $0x80] sm:$0xff]   ;;  %v3543_v42 = vrot.slane %v3526_v8, %v3542_v11 }
0x16a6   : > { %v5658_v15 = vpop.eup %5657 }
0x16a7   : > { %v3467_v52 = vmul.f32 %v5658_v15, %v6667_v22  ;;  %v3477_v39 = vmul.f32 %v4647_v2, %v3466_v51 }
0x16a9   : > { %v3478_v60 = vmul.f32 %v4647_v2, %v3467_v52  ;;  %v3488_v18 = vadd.f32 %v4648_v57, %v3477_v39 }
0x16ab   : > { %v3489_v21 = vadd.f32 %v4648_v57, %v3478_v60 }
0x16ac   : > { %v5660_v27 = vpop.eup %5659 }
0x16ad   : > { %v3492_v29 = vpack.c.bf16 %v3489_v21, %v3488_v18  ;;  %v3468_v19 = vmul.f32 %v5660_v27, %v6674_v6 }
0x16ae   : > { %v5662_v22 = vpop.eup %5661 }
0x16af   : > { %3741 = vmatmul.mubr.bf16.vlgmr.msra.gmra.mrb[48].mxu0 %v3492_v29  ;;  %3794 = vmatmul.mubr.bf16.vlgmr.msra.gmra.mrb[96].mxu1 %v3492_v29  ;;  %v3469_v6 = vmul.f32 %v5662_v22, %v6677_v41  ;;  %v3479_v53 = vmul.f32 %v4647_v2, %v3468_v19  ;;  %v5559_v41 = vld [vmem:[%s6937_s12 + $0x50] sm:$0xff]  }
0x16b0   : > { %3750 = vmatprep.mubr.bf16.mxu0 %v5735_v7  ;;  %3803 = vmatprep.mubr.bf16.mxu1 %v5735_v7  ;;  %v5578_v7 = vld [vmem:[%s6937_s12 + $0xb0] sm:$0xff]  }
0x16b1   : > { %v3480_v54 = vmul.f32 %v4647_v2, %v3469_v6  ;;  %4900 = vmatpush3.bf16.msra.mxu0 %v5553_v47  ;;  %4928 = vmatpush3.bf16.msra.mxu1 %v5554_v5  ;;  %v3490_v59 = vadd.f32 %v4648_v57, %v3479_v53 }
0x16b2   : > { %4901 = vmatprep.subr.bf16.mxu0 %v5555_v32  ;;  %4929 = vmatprep.subr.bf16.mxu1 %v5556_v45 }
0x16b3   : > { %v3491_v28 = vadd.f32 %v4648_v57, %v3480_v54 }
0x16b5   : > { %v3493_v61 = vpack.c.bf16 %v3491_v28, %v3490_v59  ;;  %4902 = vmatpush3.bf16.msra.mxu0 %v5557_v33  ;;  %4930 = vmatpush3.bf16.msra.mxu1 %v5558_v55 }
0x16b6   : > { %4903 = vmatprep.subr.bf16.mxu0 %v5559_v41  ;;  %4931 = vmatprep.subr.bf16.mxu1 %v5560_v56 }
0x16b7   : > { %3751 = vmatmul.mubr.bf16.gmra.mrb[52].mxu0 %v3493_v61  ;;  %3804 = vmatmul.mubr.bf16.gmra.mrb[100].mxu1 %v3493_v61 }
0x16b9   : > { %4904 = vmatpush3.bf16.msra.mxu0 %v5561_v43  ;;  %4932 = vmatpush3.bf16.msra.mxu1 %v5562_v44 }
0x16ba   : > { %4905 = vmatprep.subr.bf16.mxu0 %v5563_v36  ;;  %4933 = vmatprep.subr.bf16.mxu1 %v5564_v37 }
0x16bd   : > { %4906 = vmatpush3.bf16.msra.mxu0 %v5565_v17  ;;  %4934 = vmatpush3.bf16.msra.mxu1 %v5566_v63 }
0x16be   : > { %4907 = vmatprep.subr.bf16.mxu0 %v5567_v24  ;;  %4935 = vmatprep.subr.bf16.mxu1 %v5568_v1 }
0x16c1   : > { %4908 = vmatpush3.bf16.msra.mxu0 %v5569_v46  ;;  %4936 = vmatpush3.bf16.msra.mxu1 %v5570_v50 }
0x16c2   : > { %4909 = vmatprep.subr.bf16.mxu0 %v5571_v62  ;;  %4937 = vmatprep.subr.bf16.mxu1 %v5572_v58 }
0x16c5   : > { %4910 = vmatpush3.bf16.msra.mxu0 %v5573_v48  ;;  %4938 = vmatpush3.bf16.msra.mxu1 %v5574_v3 }
0x16c6   : > { %4911 = vmatprep.subr.bf16.mxu0 %v5575_v12  ;;  %4939 = vmatprep.subr.bf16.mxu1 %v5576_v0 }
0x16c9   : > { %4912 = vmatpush3.bf16.msra.mxu0 %v5577_v13  ;;  %4940 = vmatpush3.bf16.msra.mxu1 %v5578_v7 }
0x16ca   : > { %4913 = vmatprep.subr.bf16.mxu0 %v5579_v10  ;;  %4941 = vmatprep.subr.bf16.mxu1 %v5580_v30 }
0x16cd   : > { %4914 = vmatpush3.bf16.msra.mxu0 %v5581_v38  ;;  %4942 = vmatpush3.bf16.msra.mxu1 %v5582_v31 }
0x1782   : > { %v3742_v2 = vpop.f32.mrb[48].mxu0  ;;  %v3795_v51 = vpop.f32.mrb[96].mxu1 }
0x1783   : > { %v3743_v15 = vadd.f32 %v3742_v2, %v3531_v20  ;;  %v3796_v52 = vadd.f32 %v3795_v51, %v3539_v14  ;;  %v3744_v39 = vpop.f32.mrb[49].mxu0  ;;  %v3797_v57 = vpop.f32.mrb[97].mxu1 }
0x1784   : > { %v3745_v60 = vadd.f32 %v3744_v39, %v3535_v25  ;;  %v3798_v18 = vadd.f32 %v3797_v57, %v3543_v42  ;;  %v3746_v21 = vpop.f32.mrb[50].mxu0  ;;  %v3799_v27 = vpop.f32.mrb[98].mxu1 }
0x1785   : > { %v3747_v29 = vadd.f32 %v3746_v21, %v3531_v20  ;;  %v3800_v19 = vadd.f32 %v3799_v27, %v3539_v14  ;;  %v3748_v47 = vpop.f32.mrb[51].mxu0  ;;  %v3801_v5 = vpop.f32.mrb[99].mxu1  ;;  %v3814_v45 = vmax.f32 %v3743_v15, 0.0  ;;  %v3816_v6 = vmax.f32 %v3796_v52, 0.0 }
0x1786   : > { %v3749_v22 = vadd.f32 %v3748_v47, %v3535_v25  ;;  %v3802_v32 = vadd.f32 %v3801_v5, %v3543_v42  ;;  %v3815_v33 = vmax.f32 %v3745_v60, 0.0  ;;  %v3817_v55 = vmax.f32 %v3798_v18, 0.0 }
0x1787   : > { %v3818_v53 = vmax.f32 %v3747_v29, 0.0  ;;  %v3820_v54 = vmax.f32 %v3800_v19, 0.0 }
0x1788   : > { %v3819_v41 = vmax.f32 %v3749_v22, 0.0  ;;  %v3821_v56 = vmax.f32 %v3802_v32, 0.0 }
0x1789   : > { %v3830_v59 = vpack.c.bf16 %v3818_v53, %v3814_v45  ;;  %v3832_v28 = vpack.c.bf16 %v3820_v54, %v3816_v6 }
0x178a   : > { %v3831_v61 = vpack.c.bf16 %v3819_v41, %v3815_v33  ;;  %v3833_v43 = vpack.c.bf16 %v3821_v56, %v3817_v55  ;;  %v3752_v44 = vpop.f32.mrb[52].mxu0  ;;  %v3805_v36 = vpop.f32.mrb[100].mxu1 }
0x178b   : > { %v3753_v37 = vadd.f32 %v3752_v44, %v3531_v20  ;;  %v3806_v17 = vadd.f32 %v3805_v36, %v3539_v14  ;;  %v3754_v63 = vpop.f32.mrb[53].mxu0  ;;  %v3807_v24 = vpop.f32.mrb[101].mxu1 }
0x178c   : > { %v3755_v1 = vadd.f32 %v3754_v63, %v3535_v25  ;;  %v3808_v46 = vadd.f32 %v3807_v24, %v3543_v42  ;;  %v3756_v50 = vpop.f32.mrb[54].mxu0  ;;  %v3809_v62 = vpop.f32.mrb[102].mxu1  ;;  %4133 = vmatprep.mubr.bf16.mxu0 %v3831_v61  ;;  %4182 = vmatprep.mubr.bf16.mxu1 %v3833_v43 }
0x178d   : > { %v3757_v58 = vadd.f32 %v3756_v50, %v3531_v20  ;;  %v3810_v48 = vadd.f32 %v3809_v62, %v3539_v14  ;;  %v3758_v3 = vpop.f32.mrb[55].mxu0  ;;  %v3811_v12 = vpop.f32.mrb[103].mxu1  ;;  %4134 = vmatmul.mubr.bf16.vlgmr.msra.gmra.mrb[56].mxu0 %v3830_v59  ;;  %4183 = vmatmul.mubr.bf16.vlgmr.msra.gmra.mrb[104].mxu1 %v3832_v28  ;;  %v3822_v7 = vmax.f32 %v3753_v37, 0.0  ;;  %v3824_v10 = vmax.f32 %v3806_v17, 0.0 }
0x178e   : > { %v3759_v0 = vadd.f32 %v3758_v3, %v3535_v25  ;;  %v3812_v13 = vadd.f32 %v3811_v12, %v3543_v42  ;;  %v3823_v31 = vmax.f32 %v3755_v1, 0.0  ;;  %v3825_v35 = vmax.f32 %v3808_v46, 0.0  ;;  %v4681_v25 = vld [vmem:[%s6938_s13] ss:$0 sm:$0xff] }
0x178f   : > { %v3826_v30 = vmax.f32 %v3757_v58, 0.0  ;;  %v3828_v38 = vmax.f32 %v3810_v48, 0.0 }
0x1790   : > { %v3827_v23 = vmax.f32 %v3759_v0, 0.0  ;;  %v3829_v4 = vmax.f32 %v3812_v13, 0.0 }
0x1791   : > { %v3834_v34 = vpack.c.bf16 %v3826_v30, %v3822_v7  ;;  %v3836_v8 = vpack.c.bf16 %v3828_v38, %v3824_v10 }
0x1792   : > { %v3835_v9 = vpack.c.bf16 %v3827_v23, %v3823_v31  ;;  %v3837_v11 = vpack.c.bf16 %v3829_v4, %v3825_v35 }
0x1794   : > { %4141 = vmatprep.mubr.bf16.mxu0 %v3835_v9  ;;  %4190 = vmatprep.mubr.bf16.mxu1 %v3837_v11 }
0x1795   : > { %4142 = vmatmul.mubr.bf16.gmra.mrb[60].mxu0 %v3834_v34  ;;  %4191 = vmatmul.mubr.bf16.gmra.mrb[108].mxu1 %v3836_v8 }
0x1860   : > { %v4915_v20 = vpop.f32.mrb[56].mxu0  ;;  %v4943_v14 = vpop.f32.mrb[104].mxu1 }
0x1861   : > { %v4916_v42 = vpop.f32.mrb[57].mxu0  ;;  %v4944_v2 = vpop.f32.mrb[105].mxu1 }
0x1862   : > { %v4917_v51 = vadd.f32 %v4916_v42, %v4915_v20  ;;  %v4945_v15 = vadd.f32 %v4944_v2, %v4943_v14  ;;  %v4918_v52 = vpop.f32.mrb[58].mxu0  ;;  %v4946_v39 = vpop.f32.mrb[106].mxu1 }
0x1863   : > { %v4919_v57 = vpop.f32.mrb[59].mxu0  ;;  %v4947_v60 = vpop.f32.mrb[107].mxu1 }
0x1864   : > { %v4136_v18 = vadd.f32 %v4917_v51, %v4681_v25  ;;  %v4920_v21 = vadd.f32 %v4919_v57, %v4918_v52  ;;  %v4948_v27 = vadd.f32 %v4947_v60, %v4946_v39 }
0x1866   : > { %v4185_v29 = vadd.f32 %v4945_v15, %v4136_v18  ;;  %v4139_v19 = vadd.f32 %v4920_v21, %v4681_v25 }
0x1868   : > { %v4199_v47 = vadd.f32 %v4185_v29, %v6625_v16  ;;  %v4188_v5 = vadd.f32 %v4948_v27, %v4139_v19  ;;  %v4921_v22 = vpop.f32.mrb[60].mxu0  ;;  %v4949_v32 = vpop.f32.mrb[108].mxu1 }
0x1869   : > { %v4922_v45 = vpop.f32.mrb[61].mxu0  ;;  %v4950_v6 = vpop.f32.mrb[109].mxu1 }
0x186a   : > { %4203 = vst [vmem:[%s477_s0] sm:$0xff] %v4199_v47  ;;  %v4200_v53 = vadd.f32 %v4188_v5, %v6628_v26  ;;  %v4923_v54 = vadd.f32 %v4922_v45, %v4921_v22  ;;  %v4951_v33 = vadd.f32 %v4950_v6, %v4949_v32  ;;  %v4924_v55 = vpop.f32.mrb[62].mxu0  ;;  %v4952_v41 = vpop.f32.mrb[110].mxu1 }
0x186b   : > { %v4925_v56 = vpop.f32.mrb[63].mxu0  ;;  %v4953_v59 = vpop.f32.mrb[111].mxu1 }
0x186c   : > { %4204 = vst [vmem:[%s477_s0 + $0x8] sm:$0xff] %v4200_v53  ;;  %v4144_v28 = vadd.f32 %v4923_v54, %v4681_v25  ;;  %v4926_v16 = vadd.f32 %v4925_v56, %v4924_v55  ;;  %v4954_v61 = vadd.f32 %v4953_v59, %v4952_v41 }
0x186e   : > { %v4193_v43 = vadd.f32 %v4951_v33, %v4144_v28  ;;  %v4147_v44 = vadd.f32 %v4926_v16, %v4681_v25 }
0x1870   : > { %v4201_v36 = vadd.f32 %v4193_v43, %v6633_v49  ;;  %v4196_v37 = vadd.f32 %v4954_v61, %v4147_v44 }
0x1872   : > { %4205 = vst [vmem:[%s477_s0 + $0x10] sm:$0xff] %v4201_v36  ;;  %v4202_v26 = vadd.f32 %v4196_v37, %v6636_v40 }
0x1874   : > { %4206 = vst [vmem:[%s477_s0 + $0x18] sm:$0xff] %v4202_v26 }
0x1875   : > { %5682 = shalt.err (!%p5679_p3)
}
0x1876   : > { %s5683_s18 = scalar_lea.hbm %s6880_s28, 512  ;;  %s5687_s26 = scalar_lea.hbm %s6939_s14, 1024 }
0x1877   : > { %p5684_p4 = scmp.ne.s32.totalorder %s6880_s28, %s5683_s18  ;;  %p5688_p9 = scmp.lt.u32.totalorder %s6880_s28, %s6939_s14 }
0x1878   : > { %p5689_p10 = scmp.lt.u32.totalorder %s5687_s26, %s5683_s18  ;;  %p5691_p12 = scmp.lt.u32.totalorder %s5683_s18, %s6880_s28 }
0x1879   : > { %p5685_p7 = pnand %p5684_p4, %p5852_p5 }
0x187a   : > { %p5690_p11 = por %p5689_p10, %p5688_p9 }
0x187b   : > { %p5686_p8 = pneg %p5685_p7 }
0x187c   : > { %p5692_p13 = por %p5691_p12, %p5690_p11 }
0x187e   : > { %p5693_p0 = pnand %p5692_p13, %p5686_p8 }
0x1880   : > { %5696 = shalt.err (!%p5693_p0)
}
0x1881   : > { %s5737_s17 = smov 128   ;;  %s5738_s27 = smov 8  }
0x1882   : > { %5355 = dma.vmem_to_hbm [thread:$0]  (%p5852_p5), %s6874_s15, 512, %s6880_s28, %s6884_s20, %s5737_s17, %s5737_s17, %s5738_s27  }
0x1883 PF: > { %p5361_p1 = scmp.ge.s32.totalorder %s5731_s16, 2  ;;  %s4237_s1 = sand.u32 1, %s5719_s29  }
0x1884   : > { %s4238_s18 = scalar_lea.sflag [#allocation3], %s4237_s1 }
0x1885   : > { %p5358_p2 = pnand %p5361_p1, %p5856_p6 }
0x1887   : > { %5714 = dma.done.wait (!%p5358_p2), %s4238_s18, 512  }
0x1888   : > { %5716 = vsyncadd (!%p5358_p2), %s4238_s18, 4294966784  ;;  %s6949_s0 = sld [smem:[#allocation5_spill]]  ;;  %s6950_s15 = sld [smem:[#allocation6_spill]] }
0x1889   : > { %p24_p3 = scmp.ge.s32.totalorder %s5839_s19, 4   ;;  %s6951_s29 = smov %s5723_s30 }
0x188a   : > { %s6953_s16 = smov %s5839_s19 }
0x188b   :  { %26 = sbr.rel (!%p24_p3) target bundleno = 6 (0x6), region = 140 }
0x188e   : > { %s6952_s30 = smov %s6949_s0 }
0x1892   :  { %4243 = vsyncpa [#allocation3], 1 }
0x1893   :  { %4245 = vsyncpa [#allocation3 + $0x1], 1 }

</bundles_post_ra>
